<compile_context>
chip_gen: v7x
topology: tpu7x:2x2x1
jax: 0.10.0
libtpu: 0.0.40
codegen_flags: <defaults>
</compile_context>

<pallas_src>
import functools

import jax
import jax.numpy as jnp
from jax.experimental import pallas as pl
from jax.experimental.pallas import tpu as pltpu


def resblock_kernel(xs_ref, xt_ref, xb_ref, w1_ref, w2_ref,
                    s1_ref, b1_ref, s2_ref, b2_ref, o_ref):
  """One (batch, row-strip) tile of the residual block.

  xs_ref : (1, SH, W, Cp) f32  strip of the input image
  xt_ref : (1, 2, W, Cp)  f32  2 rows just above the strip (clamped at s == 0)
  xb_ref : (1, 2, W, Cp)  f32  2 rows just below the strip (clamped at s == last)
  w*_ref : (9*Cp, Cp)     bf16 conv weights, K = (ky, kx, cin) flattened
  s*/b*  : (1, Cp)        f32  folded BatchNorm scale / bias
  o_ref  : (1, SH, W, Cp) f32
  """
  _, SH, W, Cp = xs_ref.shape
  s = pl.program_id(1)
  ns = pl.num_programs(1)
  bf16 = jnp.bfloat16

  def conv3x3(p, w_ref, out_rows):
    """'same' 3x3 conv of the H-padded, row-flattened image `p` (f32).

    p has (out_rows + 2) padded rows (one halo row above/below the rows being
    produced).  dx taps: sublane roll + (rows,1) column-boundary mask (f32),
    dy taps: W-aligned row slices.  All 9 taps are cast to bf16 and
    concatenated ONCE into a lane-dense im2col slab, contracted in a single
    MXU matmul with K = 9*Cp (f32 accumulation).
    """
    pr = p.shape[0] // W
    col = jax.lax.broadcasted_iota(jnp.int32, (pr, W, 1), 1).reshape(pr * W, 1)
    left = jnp.where(col != 0, pltpu.roll(p, shift=1, axis=0), 0.0).astype(bf16)
    mid = p.astype(bf16)
    right = jnp.where(col != W - 1,
                      pltpu.roll(p, shift=pr * W - 1, axis=0), 0.0).astype(bf16)
    taps = []
    for dy in range(3):                      # dy folded into K via row offsets
      lo, hi = dy * W, dy * W + out_rows * W
      taps += [left[lo:hi], mid[lo:hi], right[lo:hi]]
    slab = jnp.concatenate(taps, axis=-1)    # (out_rows*W, 9*Cp) bf16
    return jnp.dot(slab, w_ref[...], preferred_element_type=jnp.float32)

  # ---- assemble conv1 input: [2-row top halo | strip | 2-row bottom halo] ---
  x_strip = xs_ref[...].reshape(SH * W, Cp)                        # f32 (also residual)
  top = jnp.where(s > 0, xt_ref[...].reshape(2 * W, Cp), 0.0)      # image top -> zeros
  bot = jnp.where(s < ns - 1, xb_ref[...].reshape(2 * W, Cp), 0.0)
  p1 = jnp.concatenate([top, x_strip, bot], axis=0)                # ((SH+4)*W, Cp)

  # ---- conv1 -> bn1 -> ReLU (Dropout2d(p=0.0) == identity) ------------------
  # h is produced for SH+2 rows (strip + one halo row each side, needed by
  # conv2).  Halo rows outside the image are zeroed (conv2 'same' padding);
  # in-image halo rows are bit-identical to the neighbouring strip's values.
  h = conv3x3(p1, w1_ref, SH + 2)                                  # ((SH+2)*W, Cp) f32
  h = jnp.maximum(h * s1_ref[...] + b1_ref[...], 0.0)
  ridx = jax.lax.broadcasted_iota(jnp.int32, ((SH + 2) * W, 1), 0)
  keep = jnp.logical_and(jnp.logical_or(ridx >= W, s > 0),
                         jnp.logical_or(ridx < (SH + 1) * W, s < ns - 1))
  p2 = jnp.where(keep, h, 0.0)

  # ---- conv2 -> bn2 -> +identity residual -> ReLU ---------------------------
  out = conv3x3(p2, w2_ref, SH)                                    # (SH*W, Cp) f32
  out = out * s2_ref[...] + b2_ref[...] + x_strip
  o_ref[...] = jnp.maximum(out, 0.0).reshape(1, SH, W, Cp).astype(o_ref.dtype)


def _round_up(x, m):
  return (x + m - 1) // m * m


def _vmem_capacity_bytes():
  try:
    return int(pltpu.get_tpu_info().vmem_capacity_bytes)
  except Exception:
    return 64 << 20                      # conservative (v7x-sized) fallback


def _strip_vmem_bytes(sh, W, Cp):
  """Rough per-grid-step VMEM working set (bytes) for strip height `sh`."""
  pr1w, pr2w = (sh + 4) * W, (sh + 2) * W
  io = 2 * 2 * sh * W * Cp * 4 + 2 * 2 * 2 * 2 * W * Cp * 4   # x/out blocks + halos, dbl-buffered
  wts = 2 * 2 * 9 * Cp * Cp * 2                               # both conv weights
  conv1_tmp = pr1w * Cp * (4 + 3 * 6) + pr2w * 9 * Cp * 2     # p1 + taps (f32+bf16) + slab
  mid_tmp = 2 * pr2w * Cp * 4                                 # h and masked p2 (f32)
  conv2_tmp = pr2w * Cp * 3 * 6 + sh * W * 9 * Cp * 2         # taps + slab
  out_tmp = 2 * sh * W * Cp * 4
  return io + wts + conv1_tmp + mid_tmp + conv2_tmp + out_tmp


def _pick_strip_rows(H, W, Cp, budget, max_strip_rows=None):
  cands = [d for d in range(8, H + 1, 8) if H % d == 0]
  assert cands, "H must be a multiple of 8"
  if max_strip_rows is not None:
    capped = [d for d in cands if d <= max_strip_rows]
    cands = capped or [min(cands)]
  for d in sorted(cands, reverse=True):
    if _strip_vmem_bytes(d, W, Cp) <= budget:
      return d
  return min(cands)


def residual_block_2d(x_nhwc, w1_hwio, w2_hwio, s1, b1, s2, b2,
                      max_strip_rows=None):
  """x_nhwc: (N,H,W,C) f32; w*: (3,3,C,C) HWIO; s*/b*: (C,) folded BN scale/bias."""
  N, H, W, C = x_nhwc.shape
  assert w1_hwio.shape == (3, 3, C, C) and w2_hwio.shape == (3, 3, C, C), \
      "identity shortcut requires in_channels == out_channels"
  assert H % 8 == 0 and W % 8 == 0, "H and W must be multiples of 8"

  # Lane-dense channels.  For C > 128 round to a multiple of 256 so the matmul
  # N dim fills the 2x256 MXU of v6e/v7x (v5e's 128-wide MXU is full at 128).
  Cp = 128 if C <= 128 else _round_up(C, 256)

  xp = jnp.pad(x_nhwc, ((0, 0), (0, 0), (0, 0), (0, Cp - C)))

  def prep_w(w):
    wp = jnp.pad(w, ((0, 0), (0, 0), (0, Cp - C), (0, Cp - C)))
    # (ky, kx, cin, cout) -> K = 9*Cp with (ky, kx, cin) flattened, matching
    # the in-kernel im2col slab column order.
    return wp.reshape(9 * Cp, Cp).astype(jnp.bfloat16)

  def prep_v(v):
    return jnp.pad(v, (0, Cp - C)).reshape(1, Cp).astype(jnp.float32)

  w1p, w2p = prep_w(w1_hwio), prep_w(w2_hwio)
  s1p, b1p, s2p, b2p = prep_v(s1), prep_v(b1), prep_v(s2), prep_v(b2)

  # VMEM budget: physical capacity (64 MiB v7x, 128 MiB v5e/v6e) minus ~8 MiB
  # headroom; pick the largest strip height whose working set fits.
  budget = max(_vmem_capacity_bytes() - (8 << 20), 16 << 20)
  SH = _pick_strip_rows(H, W, Cp, budget, max_strip_rows)
  num_strips = H // SH
  vmem_limit = int(min(budget, max(2 * _strip_vmem_bytes(SH, W, Cp), 32 << 20)))

  hb = SH // 2   # x-halo blocks are 2 rows tall -> block index unit is 2 rows

  grid_spec = pltpu.PrefetchScalarGridSpec(
      num_scalar_prefetch=0,
      grid=(N, num_strips),
      in_specs=[
          # the strip itself
          pl.BlockSpec((1, SH, W, Cp), lambda n, s: (n, s, 0, 0)),
          # 2 rows above the strip (clamped at the image top; kernel zeroes it
          # when s == 0)
          pl.BlockSpec((1, 2, W, Cp),
                       lambda n, s: (n, jnp.maximum(s * hb - 1, 0), 0, 0)),
          # 2 rows below the strip (clamped at the image bottom; kernel zeroes
          # it when s == last)
          pl.BlockSpec((1, 2, W, Cp),
                       lambda n, s: (n, jnp.minimum((s + 1) * hb, H // 2 - 1), 0, 0)),
          pl.BlockSpec((9 * Cp, Cp), lambda n, s: (0, 0)),
          pl.BlockSpec((9 * Cp, Cp), lambda n, s: (0, 0)),
          pl.BlockSpec((1, Cp), lambda n, s: (0, 0)),
          pl.BlockSpec((1, Cp), lambda n, s: (0, 0)),
          pl.BlockSpec((1, Cp), lambda n, s: (0, 0)),
          pl.BlockSpec((1, Cp), lambda n, s: (0, 0)),
      ],
      out_specs=pl.BlockSpec((1, SH, W, Cp), lambda n, s: (n, s, 0, 0)),
  )
  out = pl.pallas_call(
      resblock_kernel,
      out_shape=jax.ShapeDtypeStruct((N, H, W, Cp), jnp.float32),
      grid_spec=grid_spec,
      compiler_params=pltpu.CompilerParams(
          dimension_semantics=("parallel", "parallel"),
          vmem_limit_bytes=vmem_limit),
  )(xp, xp, xp, w1p, w2p, s1p, b1p, s2p, b2p)
  return out[..., :C]


def reference_forward(x_nhwc, w1_hwio, w2_hwio, s1, b1, s2, b2):
  """Pure-JAX reference with matching bf16 matmul operands / f32 accumulation."""
  conv = functools.partial(
      jax.lax.conv_general_dilated,
      window_strides=(1, 1), padding="SAME",
      dimension_numbers=("NHWC", "HWIO", "NHWC"),
      preferred_element_type=jnp.float32)
  h = jnp.maximum(
      conv(x_nhwc.astype(jnp.bfloat16), w1_hwio.astype(jnp.bfloat16)) * s1 + b1, 0.0)
  out = conv(h.astype(jnp.bfloat16), w2_hwio.astype(jnp.bfloat16)) * s2 + b2 + x_nhwc
  return jnp.maximum(out, 0.0)


if __name__ == "__main__":
  N, C, Hs, Ws = 2, 4, 16, 16          # in_channels = out_channels = 4, stride = 1
  eps = 1e-5

  key = jax.random.PRNGKey(0)
  kx, kw1, kw2, kg1, kb1, km1, kv1, kg2, kb2, km2, kv2 = jax.random.split(key, 11)

  # PyTorch-style input (NCHW) and weights (OIHW), built deterministically.
  x_nchw = jax.random.normal(kx, (N, C, Hs, Ws), jnp.float32)
  w1_oihw = 0.1 * jax.random.normal(kw1, (C, C, 3, 3), jnp.float32)
  w2_oihw = 0.1 * jax.random.normal(kw2, (C, C, 3, 3), jnp.float32)

  # BatchNorm parameters / running stats (inference mode).
  gamma1 = 1.0 + 0.1 * jax.random.normal(kg1, (C,), jnp.float32)
  beta1 = 0.1 * jax.random.normal(kb1, (C,), jnp.float32)
  mean1 = 0.1 * jax.random.normal(km1, (C,), jnp.float32)
  var1 = 1.0 + 0.5 * jax.random.uniform(kv1, (C,), jnp.float32)
  gamma2 = 1.0 + 0.1 * jax.random.normal(kg2, (C,), jnp.float32)
  beta2 = 0.1 * jax.random.normal(kb2, (C,), jnp.float32)
  mean2 = 0.1 * jax.random.normal(km2, (C,), jnp.float32)
  var2 = 1.0 + 0.5 * jax.random.uniform(kv2, (C,), jnp.float32)

  # Glue: NCHW -> NHWC, OIHW -> HWIO, fold BN into per-channel scale/bias.
  x_nhwc = jnp.transpose(x_nchw, (0, 2, 3, 1))
  w1_hwio = jnp.transpose(w1_oihw, (2, 3, 1, 0))
  w2_hwio = jnp.transpose(w2_oihw, (2, 3, 1, 0))
  s1 = gamma1 / jnp.sqrt(var1 + eps)
  b1 = beta1 - mean1 * s1
  s2 = gamma2 / jnp.sqrt(var2 + eps)
  b2 = beta2 - mean2 * s2

  ref = reference_forward(x_nhwc, w1_hwio, w2_hwio, s1, b1, s2, b2)

  # Default strip sizing (whole image fits in one strip at this size).
  out = residual_block_2d(x_nhwc, w1_hwio, w2_hwio, s1, b1, s2, b2)
  out = jax.block_until_ready(out)
  assert out.shape == (N, Hs, Ws, C) and out.dtype == jnp.float32
  assert jnp.allclose(out, ref, atol=5e-3, rtol=5e-3), "mismatch vs JAX reference"

  # Force 2 row-strips to exercise the cross-strip halo path.
  out_strips = residual_block_2d(x_nhwc, w1_hwio, w2_hwio, s1, b1, s2, b2,
                                 max_strip_rows=8)
  out_strips = jax.block_until_ready(out_strips)
  assert jnp.allclose(out_strips, ref, atol=5e-3, rtol=5e-3), \
      "mismatch vs JAX reference (strip path)"

  print("KERNEL_OK")
</pallas_src>

<mosaic_0001>
module attributes {stable_mosaic.version = 11 : i64} {
  func.func @resblock_kernel(%arg0: i32, %arg1: i32, %arg2: memref<1x16x16x128xf32, #tpu.memory_space<vmem>>, %arg3: memref<1x2x16x128xf32, #tpu.memory_space<vmem>>, %arg4: memref<1x2x16x128xf32, #tpu.memory_space<vmem>>, %arg5: memref<1152x128xbf16, #tpu.memory_space<vmem>>, %arg6: memref<1152x128xbf16, #tpu.memory_space<vmem>>, %arg7: memref<1x128xf32, #tpu.memory_space<vmem>>, %arg8: memref<1x128xf32, #tpu.memory_space<vmem>>, %arg9: memref<1x128xf32, #tpu.memory_space<vmem>>, %arg10: memref<1x128xf32, #tpu.memory_space<vmem>>, %arg11: memref<1x16x16x128xf32, #tpu.memory_space<vmem>>) attributes {dimension_semantics = [#tpu.dimension_semantics<parallel>, #tpu.dimension_semantics<parallel>], iteration_bounds = array<i64: 2, 1>, scalar_prefetch = 0 : i64, scratch_operands = 0 : i64, tpu.core_type = #tpu.core_type<tc>, window_params = [{transform_indices = @transform_0, window_bounds = array<i64: 1, 16, 16, 128>}, {transform_indices = @transform_1, window_bounds = array<i64: 1, 2, 16, 128>}, {transform_indices = @transform_2, window_bounds = array<i64: 1, 2, 16, 128>}, {pipeline_mode = #tpu.pipeline_mode<synchronous>, transform_indices = @transform_3, window_bounds = array<i64: 1152, 128>}, {pipeline_mode = #tpu.pipeline_mode<synchronous>, transform_indices = @transform_4, window_bounds = array<i64: 1152, 128>}, {pipeline_mode = #tpu.pipeline_mode<synchronous>, transform_indices = @transform_5, window_bounds = array<i64: 1, 128>}, {pipeline_mode = #tpu.pipeline_mode<synchronous>, transform_indices = @transform_6, window_bounds = array<i64: 1, 128>}, {pipeline_mode = #tpu.pipeline_mode<synchronous>, transform_indices = @transform_7, window_bounds = array<i64: 1, 128>}, {pipeline_mode = #tpu.pipeline_mode<synchronous>, transform_indices = @transform_8, window_bounds = array<i64: 1, 128>}, {transform_indices = @transform_9, window_bounds = array<i64: 1, 16, 16, 128>}]} {
    %c0 = arith.constant 0 : index
    %c0_0 = arith.constant 0 : index
    %c0_1 = arith.constant 0 : index
    %c0_2 = arith.constant 0 : index
    %0 = vector.load %arg2[%c0, %c0_0, %c0_1, %c0_2] : memref<1x16x16x128xf32, #tpu.memory_space<vmem>>, vector<1x16x16x128xf32>
    %1 = vector.shape_cast %0 : vector<1x16x16x128xf32> to vector<256x128xf32>
    %c0_i32 = arith.constant 0 : i32
    %2 = arith.cmpi sgt, %arg1, %c0_i32 : i32
    %c0_3 = arith.constant 0 : index
    %c0_4 = arith.constant 0 : index
    %c0_5 = arith.constant 0 : index
    %c0_6 = arith.constant 0 : index
    %3 = vector.load %arg3[%c0_3, %c0_4, %c0_5, %c0_6] : memref<1x2x16x128xf32, #tpu.memory_space<vmem>>, vector<1x2x16x128xf32>
    %4 = vector.shape_cast %3 : vector<1x2x16x128xf32> to vector<32x128xf32>
    %cst = arith.constant 0.000000e+00 : f32
    %5 = vector.broadcast %cst : f32 to vector<32x128xf32>
    %6 = arith.select %2, %4, %5 : vector<32x128xf32>
    %c0_i32_7 = arith.constant 0 : i32
    %7 = arith.cmpi slt, %arg1, %c0_i32_7 : i32
    %c0_8 = arith.constant 0 : index
    %c0_9 = arith.constant 0 : index
    %c0_10 = arith.constant 0 : index
    %c0_11 = arith.constant 0 : index
    %8 = vector.load %arg4[%c0_8, %c0_9, %c0_10, %c0_11] : memref<1x2x16x128xf32, #tpu.memory_space<vmem>>, vector<1x2x16x128xf32>
    %9 = vector.shape_cast %8 : vector<1x2x16x128xf32> to vector<32x128xf32>
    %cst_12 = arith.constant 0.000000e+00 : f32
    %10 = vector.broadcast %cst_12 : f32 to vector<32x128xf32>
    %11 = arith.select %7, %9, %10 : vector<32x128xf32>
    %12 = tpu.concatenate %6, %1, %11 in 0 : vector<32x128xf32>, vector<256x128xf32>, vector<32x128xf32> -> vector<320x128xf32>
    %13 = tpu.iota {dimensions = array<i32: 1>} : vector<20x16x1xi32>
    %14 = vector.shape_cast %13 : vector<20x16x1xi32> to vector<320x1xi32>
    %c0_i32_13 = arith.constant 0 : i32
    %15 = vector.broadcast %c0_i32_13 : i32 to vector<320x1xi32>
    %16 = arith.cmpi ne, %14, %15 : vector<320x1xi32>
    %c1_i32 = arith.constant 1 : i32
    %17 = tpu.dynamic_rotate %12 by %c1_i32 dim 0 : vector<320x128xf32>, i32 -> vector<320x128xf32>
    %cst_14 = arith.constant 0.000000e+00 : f32
    %18 = vector.shape_cast %16 : vector<320x1xi1> to vector<320x1xi1>
    %19 = vector.broadcast %18 : vector<320x1xi1> to vector<320x128xi1>
    %20 = vector.broadcast %cst_14 : f32 to vector<320x128xf32>
    %21 = arith.select %19, %17, %20 : vector<320x128xi1>, vector<320x128xf32>
    %22 = arith.truncf %21 : vector<320x128xf32> to vector<320x128xbf16>
    %23 = arith.truncf %12 : vector<320x128xf32> to vector<320x128xbf16>
    %c15_i32 = arith.constant 15 : i32
    %24 = vector.broadcast %c15_i32 : i32 to vector<320x1xi32>
    %25 = arith.cmpi ne, %14, %24 : vector<320x1xi32>
    %c319_i32 = arith.constant 319 : i32
    %26 = tpu.dynamic_rotate %12 by %c319_i32 dim 0 : vector<320x128xf32>, i32 -> vector<320x128xf32>
    %cst_15 = arith.constant 0.000000e+00 : f32
    %27 = vector.shape_cast %25 : vector<320x1xi1> to vector<320x1xi1>
    %28 = vector.broadcast %27 : vector<320x1xi1> to vector<320x128xi1>
    %29 = vector.broadcast %cst_15 : f32 to vector<320x128xf32>
    %30 = arith.select %28, %26, %29 : vector<320x128xi1>, vector<320x128xf32>
    %31 = arith.truncf %30 : vector<320x128xf32> to vector<320x128xbf16>
    %32 = vector.extract_strided_slice %22 {offsets = [0, 0], sizes = [288, 128], strides = [1, 1]} : vector<320x128xbf16> to vector<288x128xbf16>
    %33 = vector.extract_strided_slice %23 {offsets = [0, 0], sizes = [288, 128], strides = [1, 1]} : vector<320x128xbf16> to vector<288x128xbf16>
    %34 = vector.extract_strided_slice %31 {offsets = [0, 0], sizes = [288, 128], strides = [1, 1]} : vector<320x128xbf16> to vector<288x128xbf16>
    %35 = vector.extract_strided_slice %22 {offsets = [16, 0], sizes = [288, 128], strides = [1, 1]} : vector<320x128xbf16> to vector<288x128xbf16>
    %36 = vector.extract_strided_slice %23 {offsets = [16, 0], sizes = [288, 128], strides = [1, 1]} : vector<320x128xbf16> to vector<288x128xbf16>
    %37 = vector.extract_strided_slice %31 {offsets = [16, 0], sizes = [288, 128], strides = [1, 1]} : vector<320x128xbf16> to vector<288x128xbf16>
    %38 = vector.extract_strided_slice %22 {offsets = [32, 0], sizes = [288, 128], strides = [1, 1]} : vector<320x128xbf16> to vector<288x128xbf16>
    %39 = vector.extract_strided_slice %23 {offsets = [32, 0], sizes = [288, 128], strides = [1, 1]} : vector<320x128xbf16> to vector<288x128xbf16>
    %40 = vector.extract_strided_slice %31 {offsets = [32, 0], sizes = [288, 128], strides = [1, 1]} : vector<320x128xbf16> to vector<288x128xbf16>
    %41 = tpu.concatenate %32, %33, %34, %35, %36, %37, %38, %39, %40 in 1 : vector<288x128xbf16>, vector<288x128xbf16>, vector<288x128xbf16>, vector<288x128xbf16>, vector<288x128xbf16>, vector<288x128xbf16>, vector<288x128xbf16>, vector<288x128xbf16>, vector<288x128xbf16> -> vector<288x1152xbf16>
    %c0_16 = arith.constant 0 : index
    %c0_17 = arith.constant 0 : index
    %42 = vector.load %arg5[%c0_16, %c0_17] : memref<1152x128xbf16, #tpu.memory_space<vmem>>, vector<1152x128xbf16>
    %cst_18 = arith.constant dense<0.000000e+00> : vector<288x128xf32>
    %43 = tpu.matmul %41, %42, %cst_18 {dimension_numbers = #tpu.dot_dimension_numbers<[1], [0], [0], [1], [0, 0, 1, 1], [], []>} : vector<288x1152xbf16>, vector<1152x128xbf16>, vector<288x128xf32> -> vector<288x128xf32>
    %c0_19 = arith.constant 0 : index
    %c0_20 = arith.constant 0 : index
    %44 = vector.load %arg7[%c0_19, %c0_20] : memref<1x128xf32, #tpu.memory_space<vmem>>, vector<1x128xf32>
    %45 = vector.broadcast %44 : vector<1x128xf32> to vector<288x128xf32>
    %46 = arith.mulf %43, %45 : vector<288x128xf32>
    %c0_21 = arith.constant 0 : index
    %c0_22 = arith.constant 0 : index
    %47 = vector.load %arg8[%c0_21, %c0_22] : memref<1x128xf32, #tpu.memory_space<vmem>>, vector<1x128xf32>
    %48 = vector.broadcast %47 : vector<1x128xf32> to vector<288x128xf32>
    %49 = arith.addf %46, %48 : vector<288x128xf32>
    %cst_23 = arith.constant 0.000000e+00 : f32
    %50 = vector.broadcast %cst_23 : f32 to vector<288x128xf32>
    %51 = arith.maximumf %49, %50 : vector<288x128xf32>
    %52 = tpu.iota {dimensions = array<i32: 0>} : vector<288x1xi32>
    %c16_i32 = arith.constant 16 : i32
    %53 = vector.broadcast %c16_i32 : i32 to vector<288x1xi32>
    %54 = arith.cmpi sge, %52, %53 : vector<288x1xi32>
    %c0_i32_24 = arith.constant 0 : i32
    %55 = arith.cmpi sgt, %arg1, %c0_i32_24 : i32
    %56 = vector.broadcast %55 : i1 to vector<288x1xi1>
    %57 = arith.ori %54, %56 : vector<288x1xi1>
    %c272_i32 = arith.constant 272 : i32
    %58 = vector.broadcast %c272_i32 : i32 to vector<288x1xi32>
    %59 = arith.cmpi slt, %52, %58 : vector<288x1xi32>
    %c0_i32_25 = arith.constant 0 : i32
    %60 = arith.cmpi slt, %arg1, %c0_i32_25 : i32
    %61 = vector.broadcast %60 : i1 to vector<288x1xi1>
    %62 = arith.ori %59, %61 : vector<288x1xi1>
    %63 = arith.andi %57, %62 : vector<288x1xi1>
    %cst_26 = arith.constant 0.000000e+00 : f32
    %64 = vector.shape_cast %63 : vector<288x1xi1> to vector<288x1xi1>
    %65 = vector.broadcast %64 : vector<288x1xi1> to vector<288x128xi1>
    %66 = vector.broadcast %cst_26 : f32 to vector<288x128xf32>
    %67 = arith.select %65, %51, %66 : vector<288x128xi1>, vector<288x128xf32>
    %68 = tpu.iota {dimensions = array<i32: 1>} : vector<18x16x1xi32>
    %69 = vector.shape_cast %68 : vector<18x16x1xi32> to vector<288x1xi32>
    %c0_i32_27 = arith.constant 0 : i32
    %70 = vector.broadcast %c0_i32_27 : i32 to vector<288x1xi32>
    %71 = arith.cmpi ne, %69, %70 : vector<288x1xi32>
    %c1_i32_28 = arith.constant 1 : i32
    %72 = tpu.dynamic_rotate %67 by %c1_i32_28 dim 0 : vector<288x128xf32>, i32 -> vector<288x128xf32>
    %cst_29 = arith.constant 0.000000e+00 : f32
    %73 = vector.shape_cast %71 : vector<288x1xi1> to vector<288x1xi1>
    %74 = vector.broadcast %73 : vector<288x1xi1> to vector<288x128xi1>
    %75 = vector.broadcast %cst_29 : f32 to vector<288x128xf32>
    %76 = arith.select %74, %72, %75 : vector<288x128xi1>, vector<288x128xf32>
    %77 = arith.truncf %76 : vector<288x128xf32> to vector<288x128xbf16>
    %78 = arith.truncf %67 : vector<288x128xf32> to vector<288x128xbf16>
    %c15_i32_30 = arith.constant 15 : i32
    %79 = vector.broadcast %c15_i32_30 : i32 to vector<288x1xi32>
    %80 = arith.cmpi ne, %69, %79 : vector<288x1xi32>
    %c287_i32 = arith.constant 287 : i32
    %81 = tpu.dynamic_rotate %67 by %c287_i32 dim 0 : vector<288x128xf32>, i32 -> vector<288x128xf32>
    %cst_31 = arith.constant 0.000000e+00 : f32
    %82 = vector.shape_cast %80 : vector<288x1xi1> to vector<288x1xi1>
    %83 = vector.broadcast %82 : vector<288x1xi1> to vector<288x128xi1>
    %84 = vector.broadcast %cst_31 : f32 to vector<288x128xf32>
    %85 = arith.select %83, %81, %84 : vector<288x128xi1>, vector<288x128xf32>
    %86 = arith.truncf %85 : vector<288x128xf32> to vector<288x128xbf16>
    %87 = vector.extract_strided_slice %77 {offsets = [0, 0], sizes = [256, 128], strides = [1, 1]} : vector<288x128xbf16> to vector<256x128xbf16>
    %88 = vector.extract_strided_slice %78 {offsets = [0, 0], sizes = [256, 128], strides = [1, 1]} : vector<288x128xbf16> to vector<256x128xbf16>
    %89 = vector.extract_strided_slice %86 {offsets = [0, 0], sizes = [256, 128], strides = [1, 1]} : vector<288x128xbf16> to vector<256x128xbf16>
    %90 = vector.extract_strided_slice %77 {offsets = [16, 0], sizes = [256, 128], strides = [1, 1]} : vector<288x128xbf16> to vector<256x128xbf16>
    %91 = vector.extract_strided_slice %78 {offsets = [16, 0], sizes = [256, 128], strides = [1, 1]} : vector<288x128xbf16> to vector<256x128xbf16>
    %92 = vector.extract_strided_slice %86 {offsets = [16, 0], sizes = [256, 128], strides = [1, 1]} : vector<288x128xbf16> to vector<256x128xbf16>
    %93 = vector.extract_strided_slice %77 {offsets = [32, 0], sizes = [256, 128], strides = [1, 1]} : vector<288x128xbf16> to vector<256x128xbf16>
    %94 = vector.extract_strided_slice %78 {offsets = [32, 0], sizes = [256, 128], strides = [1, 1]} : vector<288x128xbf16> to vector<256x128xbf16>
    %95 = vector.extract_strided_slice %86 {offsets = [32, 0], sizes = [256, 128], strides = [1, 1]} : vector<288x128xbf16> to vector<256x128xbf16>
    %96 = tpu.concatenate %87, %88, %89, %90, %91, %92, %93, %94, %95 in 1 : vector<256x128xbf16>, vector<256x128xbf16>, vector<256x128xbf16>, vector<256x128xbf16>, vector<256x128xbf16>, vector<256x128xbf16>, vector<256x128xbf16>, vector<256x128xbf16>, vector<256x128xbf16> -> vector<256x1152xbf16>
    %c0_32 = arith.constant 0 : index
    %c0_33 = arith.constant 0 : index
    %97 = vector.load %arg6[%c0_32, %c0_33] : memref<1152x128xbf16, #tpu.memory_space<vmem>>, vector<1152x128xbf16>
    %cst_34 = arith.constant dense<0.000000e+00> : vector<256x128xf32>
    %98 = tpu.matmul %96, %97, %cst_34 {dimension_numbers = #tpu.dot_dimension_numbers<[1], [0], [0], [1], [0, 0, 1, 1], [], []>} : vector<256x1152xbf16>, vector<1152x128xbf16>, vector<256x128xf32> -> vector<256x128xf32>
    %c0_35 = arith.constant 0 : index
    %c0_36 = arith.constant 0 : index
    %99 = vector.load %arg9[%c0_35, %c0_36] : memref<1x128xf32, #tpu.memory_space<vmem>>, vector<1x128xf32>
    %100 = vector.broadcast %99 : vector<1x128xf32> to vector<256x128xf32>
    %101 = arith.mulf %98, %100 : vector<256x128xf32>
    %c0_37 = arith.constant 0 : index
    %c0_38 = arith.constant 0 : index
    %102 = vector.load %arg10[%c0_37, %c0_38] : memref<1x128xf32, #tpu.memory_space<vmem>>, vector<1x128xf32>
    %103 = vector.broadcast %102 : vector<1x128xf32> to vector<256x128xf32>
    %104 = arith.addf %101, %103 : vector<256x128xf32>
    %105 = arith.addf %104, %1 : vector<256x128xf32>
    %cst_39 = arith.constant 0.000000e+00 : f32
    %106 = vector.broadcast %cst_39 : f32 to vector<256x128xf32>
    %107 = arith.maximumf %105, %106 : vector<256x128xf32>
    %108 = vector.shape_cast %107 : vector<256x128xf32> to vector<1x16x16x128xf32>
    %c0_40 = arith.constant 0 : index
    %c0_41 = arith.constant 0 : index
    %c0_42 = arith.constant 0 : index
    %c0_43 = arith.constant 0 : index
    %109 = vector.load %arg11[%c0_40, %c0_41, %c0_42, %c0_43] : memref<1x16x16x128xf32, #tpu.memory_space<vmem>>, vector<1x16x16x128xf32>
    tpu.vector_store %arg11[%c0_40, %c0_41, %c0_42, %c0_43], %108 {strides = array<i32>} : memref<1x16x16x128xf32, #tpu.memory_space<vmem>>, vector<1x16x16x128xf32>,
    return
  }
  func.func @transform_0(%arg0: i32, %arg1: i32) -> (i32, i32, i32, i32) {
    %c0_i32 = arith.constant 0 : i32
    %c0_i32_0 = arith.constant 0 : i32
    %c0_i32_1 = arith.constant 0 : i32
    return %arg0, %arg1, %c0_i32, %c0_i32_0 : i32, i32, i32, i32
  }
  func.func @transform_1(%arg0: i32, %arg1: i32) -> (i32, i32, i32, i32) {
    %c8_i32 = arith.constant 8 : i32
    %0 = arith.muli %arg1, %c8_i32 : i32
    %c1_i32 = arith.constant 1 : i32
    %1 = arith.subi %0, %c1_i32 : i32
    %c0_i32 = arith.constant 0 : i32
    %2 = arith.maxsi %1, %c0_i32 : i32
    %c0_i32_0 = arith.constant 0 : i32
    %c0_i32_1 = arith.constant 0 : i32
    %c0_i32_2 = arith.constant 0 : i32
    return %arg0, %2, %c0_i32_0, %c0_i32_1 : i32, i32, i32, i32
  }
  func.func @transform_2(%arg0: i32, %arg1: i32) -> (i32, i32, i32, i32) {
    %c1_i32 = arith.constant 1 : i32
    %0 = arith.addi %arg1, %c1_i32 : i32
    %c8_i32 = arith.constant 8 : i32
    %1 = arith.muli %0, %c8_i32 : i32
    %c7_i32 = arith.constant 7 : i32
    %2 = arith.minsi %1, %c7_i32 : i32
    %c0_i32 = arith.constant 0 : i32
    %c0_i32_0 = arith.constant 0 : i32
    %c0_i32_1 = arith.constant 0 : i32
    return %arg0, %2, %c0_i32, %c0_i32_0 : i32, i32, i32, i32
  }
  func.func @transform_3(%arg0: i32, %arg1: i32) -> (i32, i32) {
    %c0_i32 = arith.constant 0 : i32
    %c0_i32_0 = arith.constant 0 : i32
    %c0_i32_1 = arith.constant 0 : i32
    return %c0_i32, %c0_i32_0 : i32, i32
  }
  func.func @transform_4(%arg0: i32, %arg1: i32) -> (i32, i32) {
    %c0_i32 = arith.constant 0 : i32
    %c0_i32_0 = arith.constant 0 : i32
    %c0_i32_1 = arith.constant 0 : i32
    return %c0_i32, %c0_i32_0 : i32, i32
  }
  func.func @transform_5(%arg0: i32, %arg1: i32) -> (i32, i32) {
    %c0_i32 = arith.constant 0 : i32
    %c0_i32_0 = arith.constant 0 : i32
    %c0_i32_1 = arith.constant 0 : i32
    return %c0_i32, %c0_i32_0 : i32, i32
  }
  func.func @transform_6(%arg0: i32, %arg1: i32) -> (i32, i32) {
    %c0_i32 = arith.constant 0 : i32
    %c0_i32_0 = arith.constant 0 : i32
    %c0_i32_1 = arith.constant 0 : i32
    return %c0_i32, %c0_i32_0 : i32, i32
  }
  func.func @transform_7(%arg0: i32, %arg1: i32) -> (i32, i32) {
    %c0_i32 = arith.constant 0 : i32
    %c0_i32_0 = arith.constant 0 : i32
    %c0_i32_1 = arith.constant 0 : i32
    return %c0_i32, %c0_i32_0 : i32, i32
  }
  func.func @transform_8(%arg0: i32, %arg1: i32) -> (i32, i32) {
    %c0_i32 = arith.constant 0 : i32
    %c0_i32_0 = arith.constant 0 : i32
    %c0_i32_1 = arith.constant 0 : i32
    return %c0_i32, %c0_i32_0 : i32, i32
  }
  func.func @transform_9(%arg0: i32, %arg1: i32) -> (i32, i32, i32, i32) {
    %c0_i32 = arith.constant 0 : i32
    %c0_i32_0 = arith.constant 0 : i32
    %c0_i32_1 = arith.constant 0 : i32
    return %arg0, %arg1, %c0_i32, %c0_i32_0 : i32, i32, i32, i32
  }
}

</mosaic_0001>

<bundles_post_ra>
// kernel: tpu_custom_call.1
= control target key start
LH: loop header
LB: loop body
LE: loop exit
PB: predicated region body
PF: predicated region fallthrough
CT: control target
= control target key end

     0   :  { %s9621_s0 = inlined_call_operand.hbm [shape: f32[2,16,16,128], index: 0, kind: input, shape index: {}]   ;;  %s9622_s1 = inlined_call_operand.hbm [shape: f32[2,16,16,128], index: 1, kind: input, shape index: {}]   ;;  %s9623_s2 = inlined_call_operand.hbm [shape: f32[2,16,16,128], index: 2, kind: input, shape index: {}]   ;;  %s9624_s3 = inlined_call_operand.hbm [shape: bf16[1152,128], index: 3, kind: input, shape index: {}]   ;;  %s9625_s4 = inlined_call_operand.hbm [shape: bf16[1152,128], index: 4, kind: input, shape index: {}]   ;;  %s9626_s5 = inlined_call_operand.vmem [shape: f32[1,128], index: 5, kind: input, shape index: {}]   ;;  %s9627_s6 = inlined_call_operand.vmem [shape: f32[1,128], index: 6, kind: input, shape index: {}]   ;;  %s9628_s7 = inlined_call_operand.vmem [shape: f32[1,128], index: 7, kind: input, shape index: {}]   ;;  %s9629_s8 = inlined_call_operand.vmem [shape: f32[1,128], index: 8, kind: input, shape index: {}]   ;;  %s9630_s9 = inlined_call_operand.hbm [shape: f32[2,16,16,128], index: 9, kind: output, shape index: {}]  }
   0x1   :  { %9738 = sst [smem:[#allocation60_spill]] %s9622_s1 }
   0x2   :  { %9739 = sst [smem:[#allocation61_spill]] %s9624_s3 }
   0x3   :  { %9740 = sst [smem:[#allocation62_spill]] %s9630_s9 }
   0x4   :  { %14 = vsyncpa [#allocation3], 0 }
   0x5   :  { %16 = vsyncpa [#allocation3 + $0x1], 0 }
   0x6   :  { %17 = vsyncpa [#allocation6], 0 }
   0x7   :  { %19 = vsyncpa [#allocation6 + $0x1], 0 }
   0x8   :  { %20 = vsyncpa [#allocation9], 0 }
   0x9   :  { %21 = vsyncpa [#allocation4], 0 }
   0xa   :  { %23 = vsyncpa [#allocation4 + $0x1], 0  ;;  %s6984_s30 = smov 0   ;;  %s6986_s10 = smov 0  }
   0xb   :  { %s6988_s11 = smov 0   ;;  %s6990_s12 = smov 0  }
   0xc   :  { %s6992_s13 = smov 0   ;;  %s6994_s14 = smov 0  }
   0xd LB: > { %9741 = sst [smem:[#allocation16_spill]] %s6896_s30  ;;  %s7015_s15 = sadd.s32 4294967295, %s6916_s14   ;;  %s6916_s14 = sphi %s6994_s14, %s29_s14   ;;  %s6912_s13 = sphi %s6992_s13, %s9917_s13   ;;  %s6908_s12 = sphi %s6990_s12, %s9916_s12   ;;  %s6904_s11 = sphi %s6988_s11, %s9915_s11   ;;  %s6900_s10 = sphi %s6986_s10, %s9919_s10   ;;  %s6896_s30 = sphi %s6984_s30, %s9918_s30  }
   0xe   : > { %9742 = sst [smem:[#allocation17_spill]] %s6904_s11  ;;  %s4799_s16 = sadd.s32 4294967294, %s6916_s14  }
   0xf   : > { %9743 = sst [smem:[#allocation18_spill]] %s6908_s12  ;;  %p57_p0 = scmp.ne.s32.totalorder %s6904_s11, %s6900_s10 }
  0x10   : > { %9744 = sst [smem:[#allocation19_spill]] %s6912_s13  ;;  %p58_p1 = scmp.eq.s32.totalorder %s6916_s14, 0 }
  0x11   : > { %9745 = sst [smem:[#allocation20_spill]] %s6916_s14  ;;  %p63_p2 = scmp.ne.s32.totalorder %s6900_s10, %s6896_s30 }
  0x12   : > { %p9633_p3 = scmp.eq.s32.totalorder %s7015_s15, 0  ;;  %p7024_p4 = por %p58_p1, %p57_p0 }
  0x13   : > { %p287_p5 = scmp.eq.s32.totalorder %s7015_s15, 1  ;;  %p293_p7 = scmp.eq.s32.totalorder %s4799_s16, 1 }
  0x14   : > { %p7031_p6 = por %p9633_p3, %p63_p2  ;;  %p4800_p9 = scmp.ge.s32.totalorder %s6916_s14, 1 }
  0x15   : > { %p7035_p8 = por %p287_p5, %p57_p0  ;;  %p7040_p10 = por %p293_p7, %p63_p2 }
  0x16   : > { %s9747_s18 = scalar_select %p7031_p6, 1, 0 }
  0x17   : > { %s9748_s19 = scalar_select %p7035_p8, 1, 0 }
  0x18   : > { %s9750_s20 = scalar_select %p7040_p10, 1, 0 }
  0x19   : > { %9749 = sst [smem:[#allocation21_spill]] %s9748_s19  ;;  %p300_p11 = scmp.lt.s32.totalorder %s6916_s14, 3 }
  0x1a   : > { %9751 = sst [smem:[#allocation22_spill]] %s9750_s20  ;;  %s6918_s22 = smov [#allocation8]  }
  0x1b   : > { %p7045_p12 = pnand %p4800_p9, %p300_p11  ;;  %s312_s23 = sshll.u32 %s6918_s22, 4  ;;  %s7049_s23 = int_to_ptr.vmem [resolvable:$true] %s312_s23 }
  0x1c   : > { %s41_s25 = sadd.s32 1, %s6912_s13  ;;  %s9755_s3 = sld [smem:[#allocation61_spill]] }
  0x1d   : > { %s9752_s21 = scalar_select %p7045_p12, 1, 0 }
  0x1e   : > { %p6417_p13 = pneg %p7045_p12  ;;  %p7062_p2 = scmp.ge.s32.totalorder %s41_s25, 2 }
  0x20   : > { %p7056_p1 = pnand %p6417_p13, %p9633_p3 }
  0x22   : > { %s9753_s24 = scalar_select %p7056_p1, 1, 0 }
  0x23   : > { %s6680_s16 = scalar_lea.hbm %s9755_s3, 9216  ;;  %p9645_p7 = pneg %p7056_p1 }
  0x24   : > { %p6681_p5 = scmp.ne.s32.totalorder %s9755_s3, %s6680_s16  ;;  %p6687_p13 = scmp.lt.u32.totalorder %s6680_s16, %s9755_s3 }
  0x26   : > { %p6683_p9 = pnand %p9645_p7, %p6681_p5 }
  0x28   : > { %p6684_p11 = pneg %p6683_p9 }
  0x2a   : > { %p6689_p0 = pnand %p6687_p13, %p6684_p11 }
  0x2c   : > { %6692 = shalt.err (!%p6689_p0)
}
  0x2d   : > { %s6693_s28 = scalar_lea.vmem %s7049_s23, 9216  ;;  %p6701_p6 = scmp.lt.s32.totalorder %s7049_s23, %s7049_s23 }
  0x2e   : > { %p6694_p3 = scmp.ne.s32.totalorder %s7049_s23, %s6693_s28  ;;  %p6702_p5 = scmp.lt.s32.totalorder %s6693_s28, %s6693_s28 }
  0x30   : > { %p6696_p10 = pnand %p6694_p3, %p9645_p7  ;;  %p6703_p9 = por %p6702_p5, %p6701_p6 }
  0x32   : > { %p6697_p8 = pneg %p6696_p10 }
  0x34   : > { %p6704_p12 = pnand %p6703_p9, %p6697_p8 }
  0x36   : > { %6707 = shalt.err (!%p6704_p12)
}
  0x37   : > { %s9638_s30 = smov 64   ;;  %s9639_s20 = smov 4  }
  0x38   : > { %6420 = dma.hbm_to_vmem [thread:$0]  (!%p7056_p1), %s9755_s3, 9216, %s7049_s23, [#allocation9], %s9638_s30, %s9638_s30, %s9639_s20  }
  0x39   : > { %s9921_s25 = smov (%p7062_p2, %s41_s25), 0  ;;  %p6440_p3 = scmp.lt.s32.totalorder %s6916_s14, 2 }
  0x3a   : > { %9756 = sst [smem:[#allocation23_spill]] %s9921_s25  ;;  %s7102_s16 = sand.u32 1, %s6904_s11  }
  0x3b   : > { %s45_s22 = ssub.s32 %s6912_s13, %s9921_s25  ;;  %s7107_s28 = sshll.u32 %s6912_s13, 12 }
  0x3c   : > { %p48_p6 = scmp.eq.s32.totalorder %s45_s22, 0  ;;  %p7111_p8 = pnand %p6440_p3, %p7024_p4 }
  0x3d   : > { %s9758_s26 = sadd.s32 1, %s6904_s11  ;;  %s375_s27 = sand.u32 1, %s6916_s14  }
  0x3e   : > { %s9757_s9 = scalar_select %p7111_p8, 1, 0 }
  0x3f   : > { %s7118_s23 = scalar_select %p48_p6, %s6904_s11, %s9758_s26  }
  0x40   : > { %s4807_s29 = sshll.u32 %s7102_s16, 5  ;;  %s9760_s1 = sld [smem:[#allocation60_spill]] }
  0x41   : > { %9759 = sst [smem:[#allocation24_spill]] %s7118_s23  ;;  %s379_s17 = scalar_lea.vmem [#allocation5], %s4807_s29 }
  0x42   : > { %s393_s22 = sshll.u32 %s379_s17, 4  ;;  %s7130_s25 = scalar_lea.vmem [#allocation7], %s4807_s29  ;;  %s7128_s22 = int_to_ptr.vmem [resolvable:$true] %s393_s22 }
  0x43   : > { %s421_s26 = sshll.u32 %s7130_s25, 4  ;;  %s7133_s13 = scalar_lea.sflag [#allocation6], %s375_s27  ;;  %s7168_s26 = int_to_ptr.vmem [resolvable:$true] %s421_s26 }
  0x44   : > { %p7139_p10 = pneg %p7111_p8 }
  0x46   : > { %s7126_s3 = scalar_lea.hbm %s9760_s1, %s7107_s28  ;;  %s6713_s29 = scalar_lea.hbm %s9760_s1, 8192 }
  0x47   : > { %s6708_s23 = scalar_lea.hbm %s7126_s3, 512  ;;  %p6714_p2 = scmp.lt.u32.totalorder %s7126_s3, %s9760_s1 }
  0x48   : > { %p6709_p4 = scmp.ne.s32.totalorder %s7126_s3, %s6708_s23  ;;  %p6715_p11 = scmp.lt.u32.totalorder %s6713_s29, %s6708_s23 }
  0x49   : > { %s9761_s30 = scalar_select %p7139_p10, 1, 0 }
  0x4a   : > { %p6711_p12 = pnand %p7139_p10, %p6709_p4  ;;  %p6716_p13 = por %p6715_p11, %p6714_p2 }
  0x4b   : > { %p6717_p5 = scmp.lt.u32.totalorder %s6708_s23, %s7126_s3 }
  0x4c   : > { %p6712_p0 = pneg %p6711_p12 }
  0x4d   : > { %p6718_p9 = por %p6717_p5, %p6716_p13 }
  0x4f   : > { %p6719_p3 = pnand %p6718_p9, %p6712_p0 }
  0x51   : > { %6722 = shalt.err (!%p6719_p3)
}
  0x52   : > { %s6723_s27 = scalar_lea.vmem %s7128_s22, 512  ;;  %s6921_s20 = smov [#allocation5]  }
  0x53   : > { %p6724_p6 = scmp.ne.s32.totalorder %s7128_s22, %s6723_s27  ;;  %s6728_s17 = sshll.u32 %s6921_s20, 4  ;;  %s6729_s17 = int_to_ptr.vmem [resolvable:$false] %s6728_s17 }
  0x54   : > { %s6730_s11 = scalar_lea.vmem %s6729_s17, 1024  ;;  %p6731_p7 = scmp.lt.s32.totalorder %s7128_s22, %s6729_s17 }
  0x55   : > { %p6726_p4 = pnand %p6724_p6, %p7139_p10  ;;  %p6732_p1 = scmp.lt.s32.totalorder %s6730_s11, %s6723_s27 }
  0x57   : > { %p6727_p12 = pneg %p6726_p4  ;;  %p6733_p2 = por %p6732_p1, %p6731_p7 }
  0x59   : > { %p6734_p11 = pnand %p6733_p2, %p6727_p12 }
  0x5b   : > { %6737 = shalt.err (!%p6734_p11)
}
  0x5c   : > { %s9654_s14 = smov 128   ;;  %s6923_s23 = smov 8  }
  0x5d   : > { %6430 = dma.hbm_to_vmem [thread:$0]  (!%p7111_p8), %s7126_s3, 512, %s7128_s22, %s7133_s13, %s9654_s14, %s9654_s14, %s6923_s23  }
  0x5e   : > { %s6924_s29 = smov [#allocation10]   ;;  %s4804_s20 = sshll.u32 %s7102_s16, 8 }
  0x5f   : > { %s325_s27 = sshll.u32 %s6924_s29, 4  ;;  %s6738_s1 = scalar_lea.hbm %s9625_s4, 9216  ;;  %s326_s27 = int_to_ptr.vmem [resolvable:$true] %s325_s27 }
  0x60   : > { %p6739_p1 = scmp.ne.s32.totalorder %s9625_s4, %s6738_s1  ;;  %p9762_p7 = scmp.ne.s32.totalorder %s9753_s24, 0 }
  0x61   : > { %p6745_p9 = scmp.lt.u32.totalorder %s6738_s1, %s9625_s4 }
  0x62   : > { %p9763_p0 = pneg %p9762_p7 }
  0x64   : > { %p6741_p13 = pnand %p6739_p1, %p9763_p0 }
  0x66   : > { %p6742_p5 = pneg %p6741_p13 }
  0x68   : > { %p6747_p3 = pnand %p6745_p9, %p6742_p5 }
  0x6a   : > { %6750 = shalt.err (!%p6747_p3)
}
  0x6b   : > { %s6751_s22 = scalar_lea.vmem %s326_s27, 9216  ;;  %p9764_p4 = pmov %p9763_p0 }
  0x6c   : > { %p6752_p6 = scmp.ne.s32.totalorder %s326_s27, %s6751_s22  ;;  %p6759_p11 = scmp.lt.s32.totalorder %s326_s27, %s326_s27 }
  0x6d   : > { %p6760_p8 = scmp.lt.s32.totalorder %s6751_s22, %s6751_s22 }
  0x6e   : > { %p6754_p12 = pnand %p6752_p6, %p9764_p4 }
  0x6f   : > { %p6761_p10 = por %p6760_p8, %p6759_p11 }
  0x70   : > { %p6755_p2 = pneg %p6754_p12 }
  0x72   : > { %p6762_p0 = pnand %p6761_p10, %p6755_p2 }
  0x74   : > { %6765 = shalt.err (!%p6762_p0)
}
  0x75   : > { %s9765_s12 = smov 4   ;;  %s9766_s19 = smov 64  }
  0x76   : > { %6423 = dma.hbm_to_vmem [thread:$0]  (!%p9762_p7), %s9625_s4, 9216, %s326_s27, [#allocation9], %s9766_s19, %s9766_s19, %s9765_s12  }
  0x77   : > { %s7198_s3 = scalar_lea.hbm %s9621_s0, %s7107_s28  ;;  %s355_s24 = scalar_lea.vmem [#allocation2], %s4804_s20 }
  0x78   : > { %s365_s25 = sshll.u32 %s355_s24, 4  ;;  %s5588_s22 = sadd.s32 3584, %s7107_s28  ;;  %s7201_s25 = int_to_ptr.vmem [resolvable:$true] %s365_s25 }
  0x79   : > { %s7206_s14 = scalar_lea.hbm %s9623_s2, %s5588_s22  ;;  %s352_s27 = scalar_lea.sflag [#allocation3], %s7102_s16 }
  0x7a   : > { %s6766_s12 = scalar_lea.hbm %s7198_s3, 4096  ;;  %p9767_p10 = scmp.ne.s32.totalorder %s9761_s30, 0 }
  0x7b   : > { %p6767_p8 = scmp.ne.s32.totalorder %s7198_s3, %s6766_s12  ;;  %s6771_s11 = scalar_lea.hbm %s9621_s0, 8192 }
  0x7c   : > { %p6772_p13 = scmp.lt.u32.totalorder %s7198_s3, %s9621_s0  ;;  %p6773_p5 = scmp.lt.u32.totalorder %s6771_s11, %s6766_s12 }
  0x7d   : > { %p6769_p1 = pnand %p6767_p8, %p9767_p10  ;;  %p6775_p3 = scmp.lt.u32.totalorder %s6766_s12, %s7198_s3 }
  0x7e   : > { %p6774_p9 = por %p6773_p5, %p6772_p13 }
  0x7f   : > { %p6770_p7 = pneg %p6769_p1 }
  0x80   : > { %p6776_p6 = por %p6775_p3, %p6774_p9 }
  0x82   : > { %p6777_p4 = pnand %p6776_p6, %p6770_p7 }
  0x84   : > { %6780 = shalt.err (!%p6777_p4)
}
  0x85   : > { %s6781_s28 = scalar_lea.vmem %s7201_s25, 4096  ;;  %s6925_s22 = smov [#allocation2]  }
  0x86   : > { %p6782_p12 = scmp.ne.s32.totalorder %s7201_s25, %s6781_s28  ;;  %s6786_s1 = sshll.u32 %s6925_s22, 4  ;;  %s6787_s1 = int_to_ptr.vmem [resolvable:$false] %s6786_s1 }
  0x87   : > { %s6788_s29 = scalar_lea.vmem %s6787_s1, 8192  ;;  %p6789_p0 = scmp.lt.s32.totalorder %s7201_s25, %s6787_s1 }
  0x88   : > { %p6784_p2 = pnand %p6782_p12, %p9767_p10  ;;  %p6790_p8 = scmp.lt.s32.totalorder %s6788_s29, %s6781_s28 }
  0x8a   : > { %p6785_p11 = pneg %p6784_p2  ;;  %p6791_p1 = por %p6790_p8, %p6789_p0 }
  0x8c   : > { %p6792_p13 = pnand %p6791_p1, %p6785_p11 }
  0x8e   : > { %6795 = shalt.err (!%p6792_p13)
}
  0x8f   : > { %p9768_p7 = scmp.ne.s32.totalorder %s9757_s9, 0  ;;  %s9769_s12 = smov 128  }
  0x90   : > { %s6796_s19 = scalar_lea.hbm %s7206_s14, 512  ;;  %s6801_s20 = scalar_lea.hbm %s9623_s2, 8192 }
  0x91   : > { %6427 = dma.hbm_to_vmem [thread:$0]  (!%p9768_p7), %s7198_s3, 4096, %s7201_s25, %s352_s27, %s9769_s12, %s9769_s12, %s6923_s23  }
  0x92   : > { %p6797_p5 = scmp.ne.s32.totalorder %s7206_s14, %s6796_s19  ;;  %p6802_p6 = scmp.lt.u32.totalorder %s7206_s14, %s9623_s2 }
  0x93   : > { %p6803_p4 = scmp.lt.u32.totalorder %s6801_s20, %s6796_s19  ;;  %p6805_p2 = scmp.lt.u32.totalorder %s6796_s19, %s7206_s14 }
  0x94   : > { %p6799_p9 = pnand %p6797_p5, %p9767_p10 }
  0x95   : > { %p6804_p12 = por %p6803_p4, %p6802_p6 }
  0x96   : > { %p6800_p3 = pneg %p6799_p9 }
  0x97   : > { %p6806_p11 = por %p6805_p2, %p6804_p12 }
  0x99   : > { %p6807_p0 = pnand %p6806_p11, %p6800_p3 }
  0x9b   : > { %6810 = shalt.err (!%p6807_p0)
}
  0x9c   : > { %s6811_s16 = scalar_lea.vmem %s7168_s26, 512  ;;  %s6926_s3 = smov [#allocation7]  }
  0x9d   : > { %p6812_p8 = scmp.ne.s32.totalorder %s7168_s26, %s6811_s16  ;;  %s6816_s25 = sshll.u32 %s6926_s3, 4  ;;  %s6817_s25 = int_to_ptr.vmem [resolvable:$false] %s6816_s25 }
  0x9e   : > { %s6818_s27 = scalar_lea.vmem %s6817_s25, 1024  ;;  %p6819_p5 = scmp.lt.s32.totalorder %s7168_s26, %s6817_s25 }
  0x9f   : > { %p6814_p1 = pnand %p6812_p8, %p9767_p10  ;;  %p6820_p9 = scmp.lt.s32.totalorder %s6818_s27, %s6811_s16 }
  0xa1   : > { %p6815_p13 = pneg %p6814_p1  ;;  %p6821_p6 = por %p6820_p9, %p6819_p5 }
  0xa3   : > { %p6822_p4 = pnand %p6821_p6, %p6815_p13 }
  0xa5   : > { %6825 = shalt.err (!%p6822_p4)
}
  0xa6   : > { %6433 = dma.hbm_to_vmem [thread:$0]  (!%p9768_p7), %s7206_s14, 512, %s7168_s26, %s7133_s13, %s9769_s12, %s9769_s12, %s6923_s23  }
  0xa7   : > { %p9770_p10 = scmp.ne.s32.totalorder %s9752_s21, 0 }
  0xa9   : > { %433 = sbr.rel (%p9770_p10) target bundleno = 1855 (0x73f), region = 56 }
  0xb0   : > { %s7263_s30 = sand.u32 1, %s6900_s10   ;;  %p9771_p3 = scmp.ne.s32.totalorder %s9747_s18, 0 }
  0xb1   : > { %s4814_s22 = sshll.u32 %s7263_s30, 8  ;;  %s436_s1 = scalar_lea.sflag [#allocation3], %s7263_s30 }
  0xb2   : > { %s7269_s9 = scalar_lea.vmem [#allocation2], %s4814_s22 }
  0xb3   : > { %6879 = dma.done.wait (%p9771_p3), %s436_s1, 4096  }
  0xb4   : > { %6881 = vsyncadd (%p9771_p3), %s436_s1, 4294963200  ;;  %s444_s13 = sand.u32 1, %s7015_s15  }
  0xb5   : > { %s445_s21 = scalar_lea.sflag [#allocation6], %s444_s13 }
  0xb6   : > { %6883 = dma.done.wait (%p9771_p3), %s445_s21, 1024  }
  0xb7   : > { %6885 = vsyncadd (%p9771_p3), %s445_s21, 4294966272  ;;  %p9772_p7 = scmp.eq.s32.totalorder %s7015_s15, 0 }
  0xb9   : > { %6887 = dma.done.wait (%p9772_p7), [#allocation9], 18432   ;;  %p9773_p12 = pmov %p9772_p7 }
  0xba   : > { %v9660_v0 = vmov 0   ;;  %v9656_v1 = vmov 0.0|0.0   ;;  %v6504_v2 = vld [vmem:[#allocation8] sm:$0xff]   ;;  %v6505_v3 = vld [vmem:[#allocation8 + $0x8] sm:$0xff]   ;;  %v6506_v4 = vld [vmem:[#allocation8 + $0x10] sm:$0xff]   ;;  %v579_v13 = vlaneseq  ;;  %v9662_v19 = vmov 0.0  }
  0xbb   : > { %6889 = vsyncadd (%p9773_p12), [#allocation9], 4294948864  ;;  %1472 = vmatprep.subr.bf16.mxu0 %v9660_v0  ;;  %1504 = vmatprep.mubr.bf16.mxu0 %v9656_v1  ;;  %v6507_v5 = vld [vmem:[#allocation8 + $0x18] sm:$0xff]   ;;  %v6508_v6 = vld [vmem:[#allocation8 + $0x20] sm:$0xff]   ;;  %v7304_v20 = vrot.slane %v9662_v19, 7  ;;  %vm6930_vm1 = vmmov 1  }
  0xbc   : > { %1473 = vmatpush1.bf16.msra.mxu0 %v6504_v2  ;;  %v6509_v7 = vld [vmem:[#allocation8 + $0x28] sm:$0xff]   ;;  %v6510_v8 = vld [vmem:[#allocation8 + $0x30] sm:$0xff]   ;;  %v6511_v9 = vld [vmem:[#allocation8 + $0x38] sm:$0xff]   ;;  %v7297_v16 = vshrl.u32 %v579_v13, 7  ;;  %s9421_s17 = scalar_lea.vmem [#allocation11], %s4814_s22  ;;  %s9905_s11 = sld [smem:[#allocation18_spill]] }
  0xbd   : > { %1474 = vmatprep.subr.bf16.mxu0 %v9660_v0  ;;  %v6512_v10 = vld [vmem:[#allocation8 + $0x40] sm:$0xff]   ;;  %v6513_v11 = vld [vmem:[#allocation8 + $0x48] sm:$0xff]   ;;  %v6514_v12 = vld [vmem:[#allocation8 + $0x50] sm:$0xff]   ;;  %9775 = vst [vmem:[#allocation26_spill] sm:$0xff] %v7304_v20  ;;  %v7314_v24 = vpack.c.bf16 %v7304_v20, %v7304_v20  ;;  %s4643_s24 = sshll.u32 %s9421_s17, 4  ;;  %s9906_s28 = sld [smem:[#allocation21_spill]]  ;;  %s9569_s24 = int_to_ptr.vmem [resolvable:$true] %s4643_s24 }
  0xbe   : > { %v6515_v14 = vld [vmem:[#allocation8 + $0x58] sm:$0xff]   ;;  %v6516_v15 = vld [vmem:[#allocation8 + $0x60] sm:$0xff]   ;;  %9774 = vst [vmem:[#allocation25_spill] sm:$0xff] %v7297_v16  ;;  %v6517_v17 = vld [vmem:[#allocation8 + $0x68] sm:$0xff]   ;;  %vm582_vm0 = vcmp.ne.s32.totalorder %v7297_v16, 0  ;;  %vm624_vm3 = vcmp.lt.s32.totalorder %v7297_v16, 1 }
  0xbf   : > { %v6518_v18 = vld [vmem:[#allocation8 + $0x70] sm:$0xff]   ;;  %v6519_v21 = vld [vmem:[#allocation8 + $0x78] sm:$0xff]   ;;  %vm7308_vm2 = vmpackc.low %vm6930_vm1, %vm582_vm0  ;;  %9778 = vst [vmem:[#allocation27_spill] sm:$0xff] %v7314_v24  ;;  %vm791_vm5 = vcmp.lt.s32.totalorder %v7297_v16, 7  ;;  %s9907_s25 = sld [smem:[#allocation62_spill]]  ;;  %s4627_s22 = scalar_lea.sflag [#allocation4], %s7263_s30 }
  0xc0   : > { %1475 = vmatpush1.bf16.msra.mxu0 %v6505_v3  ;;  %v6520_v23 = vld [vmem:[#allocation8 + $0x80] sm:$0xff]   ;;  %v7320_v26 = vld [vmem:[%s7269_s9 + $0x8] sm:$0xff]  ;;  %v7323_v27 = vld [vmem:[%s7269_s9 + $0x10] sm:$0xff]  ;;  %s6826_s1 = scalar_lea.vmem %s9569_s24, 4096 }
  0xc1   : > { %1476 = vmatprep.subr.bf16.mxu0 %v9660_v0  ;;  %v7317_v25 = vld [vmem:[%s7269_s9] sm:$0xff]  ;;  %v6521_v28 = vld [vmem:[#allocation8 + $0x88] sm:$0xff]   ;;  %v589_v30 = vrot.slane %v7320_v26, 7  ;;  %v590_v31 = vrot.slane %v7323_v27, 7  ;;  %v6522_v32 = vld [vmem:[#allocation8 + $0x90] sm:$0xff]   ;;  %p6827_p2 = scmp.ne.s32.totalorder %s9569_s24, %s6826_s1 }
  0xc2   : > { %v588_v29 = vrot.slane %v7317_v25, 7  ;;  %v7336_v33 = vld [vmem:[%s7269_s9 + $0x18] sm:$0xff]  ;;  %v7339_v34 = vld [vmem:[%s7269_s9 + $0x20] sm:$0xff]  ;;  %v7343_v35 = vpack.c.bf16 %v7320_v26, %v7317_v25  ;;  %v7351_v38 = vld [vmem:[%s7269_s9 + $0x28] sm:$0xff]  ;;  %s5589_s20 = sshll.u32 %s9905_s11, 12 }
  0xc3   : > { %v6523_v36 = vld [vmem:[#allocation8 + $0x98] sm:$0xff]   ;;  %v591_v37 = vrot.slane %v7336_v33, 7  ;;  %v592_v41 = vrot.slane %v7339_v34, 7  ;;  %v7361_v42 = vld [vmem:[%s7269_s9 + $0x30] sm:$0xff]  ;;  %v593_v43 = vrot.slane %v7351_v38, 7  ;;  %v6524_v44 = vld [vmem:[#allocation8 + $0xa0] sm:$0xff]   ;;  %v7379_v50 = vpack.c.bf16 %v7336_v33, %v7323_v27 }
  0xc4   : > { %1477 = vmatpush1.bf16.msra.mxu0 %v6506_v4  ;;  %v659_v39 = vsel %vm624_vm3, %v588_v29, %v589_v30  ;;  %v660_v40 = vsel %vm624_vm3, %v7304_v20, %v588_v29  ;;  %v7366_v45 = vld [vmem:[%s7269_s9 + $0x38] sm:$0xff]  ;;  %v594_v47 = vrot.slane %v7361_v42, 7  ;;  %v7372_v48 = vld [vmem:[%s7269_s9 + $0x40] sm:$0xff]  ;;  %v7375_v49 = vld [vmem:[%s7269_s9 + $0x48] sm:$0xff]  ;;  %v658_v54 = vsel %vm624_vm3, %v589_v30, %v590_v31  ;;  %p9908_p11 = scmp.ne.s32.totalorder %s9906_s28, 0 }
  0xc5   : > { %1478 = vmatprep.subr.bf16.mxu0 %v9660_v0  ;;  %v7368_v46 = vpack.c.bf16 %v659_v39, %v660_v40  ;;  %v595_v51 = vrot.slane %v7366_v45, 7  ;;  %v6525_v52 = vld [vmem:[#allocation8 + $0xa8] sm:$0xff]   ;;  %v657_v53 = vsel %vm624_vm3, %v590_v31, %v591_v37  ;;  %v596_v55 = vrot.slane %v7372_v48, 7  ;;  %v7395_v57 = vld [vmem:[%s7269_s9 + $0x50] sm:$0xff]  ;;  %v7398_v58 = vld [vmem:[%s7269_s9 + $0x58] sm:$0xff]  ;;  %s9567_s27 = scalar_lea.hbm %s9907_s25, %s5589_s20 }
  0xc6   : > { %v597_v56 = vrot.slane %v7375_v49, 7  ;;  %v6526_v59 = vld [vmem:[#allocation8 + $0xb0] sm:$0xff]   ;;  %v7400_v60 = vpack.c.bf16 %v657_v53, %v658_v54  ;;  %v7404_v61 = vpack.c.bf16 %v7351_v38, %v7339_v34  ;;  %v6527_v62 = vld [vmem:[#allocation8 + $0xb8] sm:$0xff]   ;;  %v598_v63 = vrot.slane %v7395_v57, 7  ;;  %v7439_v13 = vld [vmem:[%s7269_s9 + $0x68] sm:$0xff]  ;;  %p6828_p0 = pnand %p6827_p2, %p9908_p11 }
  0xc7   : > { %9779 = vst [vmem:[#allocation28_spill] sm:$0xff] %v7368_v46  ;;  %v599_v2 = vrot.slane %v7398_v58, 7  ;;  %v655_v3 = vsel %vm624_vm3, %v592_v41, %v593_v43  ;;  %v656_v4 = vsel %vm624_vm3, %v591_v37, %v592_v41  ;;  %v7459_v29 = vld [vmem:[%s7269_s9 + $0x70] sm:$0xff]  ;;  %v6532_v30 = vld [vmem:[#allocation8 + $0xe0] sm:$0xff]   ;;  %v6533_v37 = vld [vmem:[#allocation8 + $0xe8] sm:$0xff]  }
  0xc8   : > { %1479 = vmatpush1.bf16.msra.mxu0 %v6507_v5  ;;  %9780 = vst [vmem:[#allocation29_spill] sm:$0xff] %v7404_v61  ;;  %v7419_v5 = vld [vmem:[%s7269_s9 + $0x60] sm:$0xff]  ;;  %v650_v40 = vsel %vm624_vm3, %v597_v56, %v598_v63  ;;  %v7479_v41 = vld [vmem:[%s7269_s9 + $0x78] sm:$0xff]  ;;  %p6829_p8 = pneg %p6828_p0 }
  0xc9   : > { %1480 = vmatprep.subr.bf16.mxu0 %v9660_v0  ;;  %v649_v39 = vsel %vm624_vm3, %v598_v63, %v599_v2  ;;  %v7514_v63 = vld [vmem:[%s7269_s9 + $0x80] sm:$0xff] }
  0xcc   : > { %1481 = vmatpush1.bf16.msra.mxu0 %v6508_v6  ;;  %v6528_v6 = vld [vmem:[#allocation8 + $0xc0] sm:$0xff]  }
  0xcd   : > { %1482 = vmatprep.subr.bf16.mxu0 %v9660_v0 }
  0xd0   : > { %1483 = vmatpush1.bf16.msra.mxu0 %v6509_v7  ;;  %v7421_v7 = vpack.c.bf16 %v655_v3, %v656_v4  ;;  %v768_v3 = vrot.slane %v7439_v13, 1 }
  0xd1   : > { %1484 = vmatprep.subr.bf16.mxu0 %v9660_v0 }
  0xd4   : > { %1485 = vmatpush1.bf16.msra.mxu0 %v6510_v8  ;;  %v7425_v8 = vpack.c.bf16 %v7366_v45, %v7361_v42 }
  0xd5   : > { %1486 = vmatprep.subr.bf16.mxu0 %v9660_v0 }
  0xd6   : > { %9781 = vst [vmem:[#allocation30_spill] sm:$0xff] %v7425_v8 }
  0xd8   : > { %1487 = vmatpush1.bf16.msra.mxu0 %v6511_v9  ;;  %v600_v9 = vrot.slane %v7419_v5, 7 }
  0xd9   : > { %1488 = vmatprep.subr.bf16.mxu0 %v9660_v0 }
  0xda   : > { %v648_v54 = vsel %vm624_vm3, %v599_v2, %v600_v9  ;;  %v7517_v2 = vld [vmem:[%s7269_s9 + $0x88] sm:$0xff] }
  0xdc   : > { %1489 = vmatpush1.bf16.msra.mxu0 %v6512_v10  ;;  %v6529_v10 = vld [vmem:[#allocation8 + $0xc8] sm:$0xff]  }
  0xdd   : > { %1490 = vmatprep.subr.bf16.mxu0 %v9660_v0 }
  0xe0   : > { %1491 = vmatpush1.bf16.msra.mxu0 %v6513_v11  ;;  %v653_v11 = vsel %vm624_vm3, %v594_v47, %v595_v51 }
  0xe1   : > { %1492 = vmatprep.subr.bf16.mxu0 %v9660_v0 }
  0xe4   : > { %1493 = vmatpush1.bf16.msra.mxu0 %v6514_v12  ;;  %v654_v12 = vsel %vm624_vm3, %v593_v43, %v594_v47  ;;  %v6534_v43 = vld [vmem:[#allocation8 + $0xf0] sm:$0xff]   ;;  %v7485_v47 = vpack.c.bf16 %v7439_v13, %v7419_v5 }
  0xe5   : > { %1494 = vmatprep.subr.bf16.mxu0 %v9660_v0 }
  0xe6   : > { %9784 = vst [vmem:[#allocation33_spill] sm:$0xff] %v7485_v47 }
  0xe8   : > { %1495 = vmatpush1.bf16.msra.mxu0 %v6515_v14  ;;  %v6530_v14 = vld [vmem:[#allocation8 + $0xd0] sm:$0xff]  }
  0xe9   : > { %1496 = vmatprep.subr.bf16.mxu0 %v9660_v0 }
  0xec   : > { %1497 = vmatpush1.bf16.msra.mxu0 %v6516_v15  ;;  %v7441_v15 = vpack.c.bf16 %v653_v11, %v654_v12  ;;  %v605_v11 = vrot.slane %v7517_v2, 7  ;;  %v7528_v12 = vpack.c.bf16 %v7517_v2, %v7514_v63 }
  0xed   : > { %1498 = vmatprep.subr.bf16.mxu0 %v9660_v0 }
  0xee   : > { %9786 = vst [vmem:[#allocation35_spill] sm:$0xff] %v7528_v12 }
  0xf0   : > { %1499 = vmatpush1.bf16.msra.mxu0 %v6517_v17  ;;  %v7445_v17 = vpack.c.bf16 %v7375_v49, %v7372_v48 }
  0xf1   : > { %1500 = vmatprep.subr.bf16.mxu0 %v9660_v0 }
  0xf2   : > { %9782 = vst [vmem:[#allocation31_spill] sm:$0xff] %v7445_v17 }
  0xf4   : > { %1501 = vmatpush1.bf16.msra.mxu0 %v6518_v18  ;;  %v601_v18 = vrot.slane %v7439_v13, 7 }
  0xf5   : > { %1502 = vmatprep.subr.bf16.mxu0 %v9660_v0 }
  0xf6   : > { %v647_v53 = vsel %vm624_vm3, %v600_v9, %v601_v18  ;;  %v9658_v9 = vrot.slane %v7459_v29, 1 }
  0xf8   : > { %1503 = vmatpush1.bf16.msra.mxu0 %v6519_v21  ;;  %v6531_v21 = vld [vmem:[#allocation8 + $0xd8] sm:$0xff]  }
  0xf9   : > { %1649 = vmatprep.subr.bf16.mxu0 %v9660_v0 }
  0xfb   : > { %4894 = vmatmul.mubr.msk.bf16.vlgmr.msra.gmra.mrb[0].mxu0 %vm7308_vm2, %v7314_v24 }
  0xfc   : > { %1650 = vmatpush1.bf16.msra.mxu0 %v6520_v23  ;;  %1512 = vmatprep.mubr.bf16.mxu0 %v9656_v1  ;;  %v651_v23 = vsel %vm624_vm3, %v596_v55, %v597_v56  ;;  %v7502_v56 = vpack.c.bf16 %v7479_v41, %v7459_v29 }
  0xfd   : > { %1651 = vmatprep.subr.bf16.mxu0 %v9660_v0 }
  0xfe   : > { %9785 = vst [vmem:[#allocation34_spill] sm:$0xff] %v7502_v56 }
 0x100   : > { %1652 = vmatpush1.bf16.msra.mxu0 %v6521_v28  ;;  %v652_v28 = vsel %vm624_vm3, %v595_v51, %v596_v55  ;;  %v603_v51 = vrot.slane %v7479_v41, 7  ;;  %v7498_v55 = vpack.c.bf16 %v647_v53, %v648_v54  ;;  %v7581_v54 = vld [vmem:[%s7269_s9 + $0xa0] sm:$0xff] }
 0x101   : > { %1653 = vmatprep.subr.bf16.mxu0 %v9660_v0  ;;  %v7461_v31 = vpack.c.bf16 %v651_v23, %v652_v28  ;;  %v7549_v28 = vld [vmem:[%s7269_s9 + $0x90] sm:$0xff] }
 0x103   : > { %4897 = vmatmul.mubr.msk.bf16.gmra.mrb[4].mxu0 %vm7308_vm2, %v7314_v24 }
 0x104   : > { %1520 = vmatprep.mubr.bf16.mxu0 %v7343_v35  ;;  %1654 = vmatpush1.bf16.msra.mxu0 %v6522_v32  ;;  %v7465_v32 = vpack.c.bf16 %v7398_v58, %v7395_v57 }
 0x105   : > { %1655 = vmatprep.subr.bf16.mxu0 %v9660_v0 }
 0x106   : > { %9783 = vst [vmem:[#allocation32_spill] sm:$0xff] %v7465_v32 }
 0x108   : > { %1656 = vmatpush1.bf16.msra.mxu0 %v6523_v36  ;;  %v602_v36 = vrot.slane %v7459_v29, 7 }
 0x109   : > { %1657 = vmatprep.subr.bf16.mxu0 %v9660_v0 }
 0x10b   : > { %4900 = vmatmul.mubr.msk.bf16.gmra.mrb[8].mxu0 %vm7308_vm2, %v7368_v46 }
 0x10c   : > { %1528 = vmatprep.mubr.bf16.mxu0 %v7379_v50  ;;  %1658 = vmatpush1.bf16.msra.mxu0 %v6524_v44  ;;  %v7481_v44 = vpack.c.bf16 %v649_v39, %v650_v40  ;;  %v606_v40 = vrot.slane %v7549_v28, 7 }
 0x10d   : > { %1659 = vmatprep.subr.bf16.mxu0 %v9660_v0 }
 0x10e   : > { %v642_v53 = vsel %vm624_vm3, %v605_v11, %v606_v40 }
 0x110   : > { %1660 = vmatpush1.bf16.msra.mxu0 %v6525_v52  ;;  %v6535_v52 = vld [vmem:[#allocation8 + $0xf8] sm:$0xff]  }
 0x111   : > { %1661 = vmatprep.subr.bf16.mxu0 %v9660_v0 }
 0x113   : > { %4903 = vmatmul.mubr.msk.bf16.gmra.mrb[12].mxu0 %vm7308_vm2, %v7400_v60 }
 0x114   : > { %1536 = vmatprep.mubr.bf16.mxu0 %v7404_v61  ;;  %1662 = vmatpush1.bf16.msra.mxu0 %v6526_v59  ;;  %v645_v59 = vsel %vm624_vm3, %v602_v36, %v603_v51  ;;  %v6540_v61 = vld [vmem:[#allocation8 + $0x120] sm:$0xff]  }
 0x115   : > { %1663 = vmatprep.subr.bf16.mxu0 %v9660_v0 }
 0x118   : > { %1664 = vmatpush1.bf16.msra.mxu0 %v6527_v62  ;;  %v646_v62 = vsel %vm624_vm3, %v601_v18, %v602_v36 }
 0x119   : > { %1665 = vmatprep.subr.bf16.mxu0 %v9660_v0  ;;  %v7520_v4 = vpack.c.bf16 %v645_v59, %v646_v62  ;;  %v7584_v59 = vld [vmem:[%s7269_s9 + $0xa8] sm:$0xff] }
 0x11b   : > { %4906 = vmatmul.mubr.msk.bf16.gmra.mrb[16].mxu0 %vm7308_vm2, %v7421_v7 }
 0x11c   : > { %1544 = vmatprep.mubr.bf16.mxu0 %v7425_v8  ;;  %1666 = vmatpush1.bf16.msra.mxu0 %v6528_v6  ;;  %v581_v6 = vadd.s32 8, %v7297_v16  ;;  %v6625_v16 = vld [vmem:[#allocation10 + $0x180] sm:$0xff]  }
 0x11d   : > { %1667 = vmatprep.subr.bf16.mxu0 %v9660_v0 }
 0x11e   : > { %vm750_vm4 = vcmp.ne.s32.totalorder %v581_v6, 15  ;;  %v609_v6 = vrot.slane %v7584_v59, 7 }
 0x11f   : > { %vm7557_vm6 = vmpackc.low %vm750_vm4, %vm6930_vm1 }
 0x120   : > { %1668 = vmatpush1.bf16.msra.mxu0 %v6529_v10  ;;  %v604_v10 = vrot.slane %v7514_v63, 7 }
 0x121   : > { %1669 = vmatprep.subr.bf16.mxu0 %v9660_v0 }
 0x122   : > { %v643_v13 = vsel %vm624_vm3, %v604_v10, %v605_v11  ;;  %v644_v18 = vsel %vm624_vm3, %v603_v51, %v604_v10  ;;  %v7592_v10 = vpack.c.bf16 %v7584_v59, %v7581_v54 }
 0x123   : > { %4909 = vmatmul.mubr.msk.bf16.gmra.mrb[20].mxu0 %vm7308_vm2, %v7441_v15  ;;  %v7561_v39 = vpack.c.bf16 %v643_v13, %v644_v18  ;;  %v7603_v18 = vld [vmem:[%s7269_s9 + $0xb0] sm:$0xff] }
 0x124   : > { %1552 = vmatprep.mubr.bf16.mxu0 %v7445_v17  ;;  %1670 = vmatpush1.bf16.msra.mxu0 %v6530_v14  ;;  %v9659_v14 = vrot.slane %v7419_v5, 1  ;;  %9790 = vst [vmem:[#allocation37_spill] sm:$0xff] %v7592_v10 }
 0x125   : > { %1671 = vmatprep.subr.bf16.mxu0 %v9660_v0 }
 0x126   : > { %v814_v23 = vsel %vm791_vm5, %v9659_v14, %v768_v3 }
 0x128   : > { %1672 = vmatpush1.bf16.msra.mxu0 %v6531_v21  ;;  %v813_v21 = vsel %vm791_vm5, %v768_v3, %v9658_v9  ;;  %v608_v3 = vrot.slane %v7581_v54, 7 }
 0x129   : > { %1673 = vmatprep.subr.bf16.mxu0 %v9660_v0  ;;  %v7554_v36 = vpack.c.bf16 %v813_v21, %v814_v23  ;;  %v7606_v21 = vld [vmem:[%s7269_s9 + $0xb8] sm:$0xff] }
 0x12a   : > { %v639_v11 = vsel %vm624_vm3, %v608_v3, %v609_v6 }
 0x12b   : > { %4912 = vmatmul.mubr.msk.bf16.gmra.mrb[24].mxu0 %vm7308_vm2, %v7461_v31  ;;  %6117 = vmatprep.mubr.msk.bf16.mxu1 %vm7557_vm6, %v7554_v36 }
 0x12c   : > { %1560 = vmatprep.mubr.bf16.mxu0 %v7465_v32  ;;  %1674 = vmatpush1.bf16.msra.mxu0 %v6532_v30  ;;  %v7552_v30 = vld [vmem:[%s7269_s9 + $0x98] sm:$0xff] }
 0x12d   : > { %1675 = vmatprep.subr.bf16.mxu0 %v9660_v0  ;;  %v7570_v51 = vpack.c.bf16 %v7552_v30, %v7549_v28 }
 0x12f   : > { %9789 = vst [vmem:[#allocation36_spill] sm:$0xff] %v7570_v51 }
 0x130   : > { %1676 = vmatpush1.bf16.msra.mxu0 %v6533_v37 }
 0x131   : > { %1677 = vmatprep.subr.bf16.mxu0 %v9660_v0 }
 0x133   : > { %4915 = vmatmul.mubr.msk.bf16.gmra.mrb[28].mxu0 %vm7308_vm2, %v7481_v44 }
 0x134   : > { %1568 = vmatprep.mubr.bf16.mxu0 %v7485_v47  ;;  %1678 = vmatpush1.bf16.msra.mxu0 %v6534_v43  ;;  %v607_v43 = vrot.slane %v7552_v30, 7 }
 0x135   : > { %1679 = vmatprep.subr.bf16.mxu0 %v9660_v0 }
 0x136   : > { %v640_v13 = vsel %vm624_vm3, %v607_v43, %v608_v3 }
 0x137   : > { %v7608_v23 = vpack.c.bf16 %v639_v11, %v640_v13  ;;  %v7625_v11 = vld [vmem:[%s7269_s9 + $0xc0] sm:$0xff]  ;;  %v7628_v13 = vld [vmem:[%s7269_s9 + $0xc8] sm:$0xff] }
 0x138   : > { %1680 = vmatpush1.bf16.msra.mxu0 %v6535_v52  ;;  %v641_v52 = vsel %vm624_vm3, %v606_v40, %v607_v43  ;;  %v610_v40 = vrot.slane %v7603_v18, 7  ;;  %v612_v9 = vrot.slane %v7625_v11, 7  ;;  %v613_v14 = vrot.slane %v7628_v13, 7 }
 0x139   : > { %1826 = vmatprep.subr.bf16.mxu0 %v9660_v0  ;;  %v7586_v62 = vpack.c.bf16 %v641_v52, %v642_v53  ;;  %v611_v52 = vrot.slane %v7606_v21, 7  ;;  %v7614_v53 = vpack.c.bf16 %v7606_v21, %v7603_v18  ;;  %v7636_v0 = vpack.c.bf16 %v7628_v13, %v7625_v11 }
 0x13a   : > { %v638_v3 = vsel %vm624_vm3, %v609_v6, %v610_v40  ;;  %v635_v6 = vsel %vm624_vm3, %v612_v9, %v613_v14 }
 0x13b   : > { %4918 = vmatmul.mubr.msk.bf16.gmra.mrb[32].mxu0 %vm7308_vm2, %v7498_v55  ;;  %9791 = vst [vmem:[#allocation38_spill] sm:$0xff] %v7614_v53  ;;  %v637_v43 = vsel %vm624_vm3, %v610_v40, %v611_v52  ;;  %9792 = vst [vmem:[#allocation39_spill] sm:$0xff] %v7636_v0  ;;  %v636_v40 = vsel %vm624_vm3, %v611_v52, %v612_v9 }
 0x13c   : > { %1576 = vmatprep.mubr.bf16.mxu0 %v7502_v56  ;;  %v7630_v1 = vpack.c.bf16 %v637_v43, %v638_v3  ;;  %v7647_v43 = vld [vmem:[%s7269_s9 + $0xd0] sm:$0xff]  ;;  %v7650_v3 = vld [vmem:[%s7269_s9 + $0xd8] sm:$0xff]  ;;  %v7652_v19 = vpack.c.bf16 %v635_v6, %v636_v40  ;;  %v7669_v6 = vld [vmem:[%s7269_s9 + $0xe0] sm:$0xff] }
 0x13d   : > { %v7672_v40 = vld [vmem:[%s7269_s9 + $0xe8] sm:$0xff] }
 0x13e   : > { %v617_v56 = vrot.slane %v7672_v40, 7  ;;  %v7680_v47 = vpack.c.bf16 %v7672_v40, %v7669_v6 }
 0x140   : > { %9794 = vst [vmem:[#allocation41_spill] sm:$0xff] %v7680_v47 }
 0x143   : > { %4921 = vmatmul.mubr.msk.bf16.gmra.mrb[36].mxu0 %vm7308_vm2, %v7520_v4 }
 0x144   : > { %1584 = vmatprep.mubr.bf16.mxu0 %v7528_v12  ;;  %v616_v12 = vrot.slane %v7669_v6, 7 }
 0x14b   : > { %4924 = vmatmul.mubr.msk.bf16.gmra.mrb[40].mxu0 %vm7308_vm2, %v7561_v39 }
 0x14c   : > { %1592 = vmatprep.mubr.bf16.mxu0 %v7570_v51 }
 0x153   : > { %4927 = vmatmul.mubr.msk.bf16.gmra.mrb[44].mxu0 %vm7308_vm2, %v7586_v62 }
 0x154   : > { %1600 = vmatprep.mubr.bf16.mxu0 %v7592_v10  ;;  %v615_v10 = vrot.slane %v7650_v3, 7 }
 0x15b   : > { %4930 = vmatmul.mubr.msk.bf16.gmra.mrb[48].mxu0 %vm7308_vm2, %v7608_v23 }
 0x15c   : > { %1608 = vmatprep.mubr.bf16.mxu0 %v7614_v53  ;;  %v614_v53 = vrot.slane %v7647_v43, 7 }
 0x15e   : > { %v633_v9 = vsel %vm624_vm3, %v614_v53, %v615_v10  ;;  %v634_v52 = vsel %vm624_vm3, %v613_v14, %v614_v53  ;;  %v631_v14 = vsel %vm624_vm3, %v616_v12, %v617_v56  ;;  %v632_v53 = vsel %vm624_vm3, %v615_v10, %v616_v12 }
 0x15f   : > { %v7674_v51 = vpack.c.bf16 %v633_v9, %v634_v52  ;;  %v7691_v9 = vld [vmem:[%s7269_s9 + $0xf0] sm:$0xff]  ;;  %v7694_v52 = vld [vmem:[%s7269_s9 + $0xf8] sm:$0xff] }
 0x160   : > { %v618_v32 = vrot.slane %v7691_v9, 7  ;;  %v9689_v17 = vrot.slane %v7694_v52, 7  ;;  %v7702_v8 = vpack.c.bf16 %v7694_v52, %v7691_v9 }
 0x162   : > { %9795 = vst [vmem:[#allocation42_spill] sm:$0xff] %v7702_v8  ;;  %v629_v12 = vsel %vm624_vm3, %v618_v32, %v9689_v17  ;;  %v630_v10 = vsel %vm624_vm3, %v617_v56, %v618_v32  ;;  %v755_v17 = vrot.slane %v7317_v25, 1  ;;  %v6536_v32 = vld [vmem:[#allocation8 + $0x100] sm:$0xff]   ;;  %v756_v25 = vrot.slane %v7320_v26, 1 }
 0x163   : > { %4933 = vmatmul.mubr.msk.bf16.gmra.mrb[52].mxu0 %vm7308_vm2, %v7630_v1 }
 0x164   : > { %1616 = vmatprep.mubr.bf16.mxu0 %v7636_v0  ;;  %v7658_v0 = vpack.c.bf16 %v7650_v3, %v7647_v43  ;;  %v826_v26 = vsel %vm791_vm5, %v755_v17, %v756_v25 }
 0x166   : > { %9793 = vst [vmem:[#allocation40_spill] sm:$0xff] %v7658_v0 }
 0x16b   : > { %4936 = vmatmul.mubr.msk.bf16.gmra.mrb[56].mxu0 %vm7308_vm2, %v7652_v19 }
 0x16c   : > { %1624 = vmatprep.mubr.bf16.mxu0 %v7658_v0  ;;  %v7696_v0 = vpack.c.bf16 %v631_v14, %v632_v53  ;;  %v7714_v14 = vpack.c.bf16 %v629_v12, %v630_v10  ;;  %v9796_v53 = vmov 0.0   ;;  %v6537_v12 = vld [vmem:[#allocation8 + $0x108] sm:$0xff]   ;;  %v9798_v10 = vmov 0  }
 0x173   : > { %4939 = vmatmul.mubr.msk.bf16.gmra.mrb[60].mxu0 %vm7308_vm2, %v7674_v51 }
 0x174   : > { %1632 = vmatprep.mubr.bf16.mxu0 %v7680_v47  ;;  %v7717_v47 = vrot.slane %v9796_v53, 1 }
 0x176   : > { %v827_v56 = vsel %vm791_vm5, %v7717_v47, %v755_v17 }
 0x177   : > { %v7741_v53 = vpack.c.bf16 %v827_v56, %v7717_v47 }
 0x17b   : > { %4942 = vmatmul.mubr.msk.bf16.gmra.mrb[64].mxu0 %vm7308_vm2, %v7696_v0 }
 0x17c   : > { %1640 = vmatprep.mubr.bf16.mxu0 %v7702_v8  ;;  %v7727_v8 = vpack.c.bf16 %v7717_v47, %v7717_v47 }
 0x17e   : > { %9797 = vst [vmem:[#allocation43_spill] sm:$0xff] %v7727_v8 }
 0x183   : > { %4945 = vmatmul.mubr.msk.bf16.gmra.mrb[68].mxu0 %vm7308_vm2, %v7714_v14 }
 0x184   : > { %4948 = vmatprep.mubr.msk.bf16.mxu0 %vm7308_vm2, %v7314_v24  ;;  %v757_v24 = vrot.slane %v7323_v27, 1  ;;  %v6539_v27 = vld [vmem:[#allocation8 + $0x118] sm:$0xff]  }
 0x186   : > { %v825_v56 = vsel %vm791_vm5, %v756_v25, %v757_v24 }
 0x18b   : > { %4951 = vmatmul.mubr.msk.bf16.vlgmr.msra.gmra.mrb[72].mxu0 %vm7557_vm6, %v7727_v8  ;;  %v759_v8 = vrot.slane %v7339_v34, 1  ;;  %v6541_v34 = vld [vmem:[#allocation8 + $0x128] sm:$0xff]  }
 0x18c   : > { %1827 = vmatpush1.bf16.msra.mxu0 %v6536_v32  ;;  %4954 = vmatprep.mubr.msk.bf16.mxu0 %vm7308_vm2, %v7368_v46  ;;  %v6538_v32 = vld [vmem:[#allocation8 + $0x110] sm:$0xff]   ;;  %v758_v46 = vrot.slane %v7336_v33, 1 }
 0x18d   : > { %1828 = vmatprep.subr.bf16.mxu0 %v9798_v10 }
 0x18e   : > { %v823_v17 = vsel %vm791_vm5, %v758_v46, %v759_v8  ;;  %v824_v33 = vsel %vm791_vm5, %v757_v24, %v758_v46 }
 0x18f   : > { %v7773_v25 = vpack.c.bf16 %v823_v17, %v824_v33  ;;  %v6544_v17 = vld [vmem:[#allocation8 + $0x140] sm:$0xff]  }
 0x190   : > { %1829 = vmatpush1.bf16.msra.mxu0 %v6537_v12  ;;  %v7757_v12 = vpack.c.bf16 %v825_v56, %v826_v26  ;;  %v761_v56 = vrot.slane %v7361_v42, 1  ;;  %v6542_v26 = vld [vmem:[#allocation8 + $0x130] sm:$0xff]   ;;  %v6543_v42 = vld [vmem:[#allocation8 + $0x138] sm:$0xff]  }
 0x191   : > { %1830 = vmatprep.subr.bf16.mxu0 %v9798_v10 }
 0x193   : > { %4957 = vmatmul.mubr.msk.bf16.gmra.mrb[4].mxu0 %vm7557_vm6, %v7741_v53 }
 0x194   : > { %4960 = vmatprep.mubr.msk.bf16.mxu0 %vm7308_vm2, %v7400_v60  ;;  %1831 = vmatpush1.bf16.msra.mxu0 %v6538_v32  ;;  %v760_v32 = vrot.slane %v7351_v38, 1 }
 0x195   : > { %1832 = vmatprep.subr.bf16.mxu0 %v9798_v10 }
 0x196   : > { %v821_v24 = vsel %vm791_vm5, %v760_v32, %v761_v56  ;;  %v822_v38 = vsel %vm791_vm5, %v759_v8, %v760_v32  ;;  %v765_v32 = vrot.slane %v7395_v57, 1  ;;  %v6547_v57 = vld [vmem:[#allocation8 + $0x158] sm:$0xff]  }
 0x197   : > { %v7789_v46 = vpack.c.bf16 %v821_v24, %v822_v38  ;;  %v766_v38 = vrot.slane %v7398_v58, 1 }
 0x198   : > { %1833 = vmatpush1.bf16.msra.mxu0 %v6539_v27  ;;  %v763_v27 = vrot.slane %v7372_v48, 1  ;;  %v6545_v48 = vld [vmem:[#allocation8 + $0x148] sm:$0xff]  }
 0x199   : > { %1834 = vmatprep.subr.bf16.mxu0 %v9798_v10  ;;  %v816_v58 = vsel %vm791_vm5, %v765_v32, %v766_v38 }
 0x19b   : > { %4963 = vmatmul.mubr.msk.bf16.gmra.mrb[8].mxu0 %vm7557_vm6, %v7757_v12 }
 0x19c   : > { %4966 = vmatprep.mubr.msk.bf16.mxu0 %vm7308_vm2, %v7421_v7  ;;  %1835 = vmatpush1.bf16.msra.mxu0 %v6540_v61  ;;  %v762_v61 = vrot.slane %v7366_v45, 1 }
 0x19d   : > { %1836 = vmatprep.subr.bf16.mxu0 %v9798_v10 }
 0x19e   : > { %v819_v8 = vsel %vm791_vm5, %v762_v61, %v763_v27  ;;  %v820_v45 = vsel %vm791_vm5, %v761_v56, %v762_v61  ;;  %v9799_v61 = vrot.slane %v7419_v5, 1  ;;  %v6551_v5 = vld [vmem:[#allocation8 + $0x178] sm:$0xff]  }
 0x19f   : > { %v7805_v33 = vpack.c.bf16 %v819_v8, %v820_v45  ;;  %v6550_v45 = vld [vmem:[#allocation8 + $0x170] sm:$0xff]  }
 0x1a0   : > { %1837 = vmatpush1.bf16.msra.mxu0 %v6541_v34  ;;  %v764_v34 = vrot.slane %v7375_v49, 1 }
 0x1a1   : > { %1838 = vmatprep.subr.bf16.mxu0 %v9798_v10 }
 0x1a2   : > { %v817_v56 = vsel %vm791_vm5, %v764_v34, %v765_v32  ;;  %v818_v49 = vsel %vm791_vm5, %v763_v27, %v764_v34  ;;  %v815_v27 = vsel %vm791_vm5, %v766_v38, %v9799_v61  ;;  %v771_v34 = vrot.slane %v7514_v63, 1 }
 0x1a3   : > { %4969 = vmatmul.mubr.msk.bf16.gmra.mrb[12].mxu0 %vm7557_vm6, %v7773_v25  ;;  %v7821_v24 = vpack.c.bf16 %v817_v56, %v818_v49  ;;  %v7838_v8 = vpack.c.bf16 %v815_v27, %v816_v58  ;;  %v773_v38 = vrot.slane %v7549_v28, 1  ;;  %v775_v28 = vrot.slane %v7581_v54, 1 }
 0x1a4   : > { %4972 = vmatprep.mubr.msk.bf16.mxu0 %vm7308_vm2, %v7441_v15  ;;  %1839 = vmatpush1.bf16.msra.mxu0 %v6542_v26  ;;  %v6546_v26 = vld [vmem:[#allocation8 + $0x150] sm:$0xff]   ;;  %v777_v54 = vrot.slane %v7603_v18, 1  ;;  %v779_v18 = vrot.slane %v7625_v11, 1  ;;  %v781_v11 = vrot.slane %v7647_v43, 1  ;;  %v783_v43 = vrot.slane %v7669_v6, 1 }
 0x1a5   : > { %1840 = vmatprep.subr.bf16.mxu0 %v9798_v10  ;;  %v785_v6 = vrot.slane %v7691_v9, 1 }
 0x1a8   : > { %1841 = vmatpush1.bf16.msra.mxu0 %v6543_v42  ;;  %v6548_v42 = vld [vmem:[#allocation8 + $0x160] sm:$0xff]  }
 0x1a9   : > { %1842 = vmatprep.subr.bf16.mxu0 %v9798_v10 }
 0x1ab   : > { %4975 = vmatmul.mubr.msk.bf16.gmra.mrb[16].mxu0 %vm7557_vm6, %v7789_v46 }
 0x1ac   : > { %4978 = vmatprep.mubr.msk.bf16.mxu0 %vm7308_vm2, %v7461_v31  ;;  %1843 = vmatpush1.bf16.msra.mxu0 %v6544_v17  ;;  %v6549_v17 = vld [vmem:[#allocation8 + $0x168] sm:$0xff]  }
 0x1ad   : > { %1844 = vmatprep.subr.bf16.mxu0 %v9798_v10 }
 0x1b0   : > { %1845 = vmatpush1.bf16.msra.mxu0 %v6545_v48  ;;  %v770_v48 = vrot.slane %v7479_v41, 1 }
 0x1b1   : > { %1846 = vmatprep.subr.bf16.mxu0 %v9798_v10 }
 0x1b2   : > { %v811_v32 = vsel %vm791_vm5, %v770_v48, %v771_v34 }
 0x1b3   : > { %4981 = vmatmul.mubr.msk.bf16.gmra.mrb[20].mxu0 %vm7557_vm6, %v7805_v33 }
 0x1b4   : > { %4984 = vmatprep.mubr.msk.bf16.mxu0 %vm7308_vm2, %v7481_v44  ;;  %1847 = vmatpush1.bf16.msra.mxu0 %v6546_v26  ;;  %v9800_v26 = vrot.slane %v7459_v29, 1 }
 0x1b5   : > { %1848 = vmatprep.subr.bf16.mxu0 %v9798_v10 }
 0x1b6   : > { %v812_v41 = vsel %vm791_vm5, %v9800_v26, %v770_v48 }
 0x1b7   : > { %v7863_v49 = vpack.c.bf16 %v811_v32, %v812_v41 }
 0x1b8   : > { %1849 = vmatpush1.bf16.msra.mxu0 %v6547_v57  ;;  %v772_v57 = vrot.slane %v7517_v2, 1  ;;  %v774_v2 = vrot.slane %v7552_v30, 1  ;;  %v776_v30 = vrot.slane %v7584_v59, 1  ;;  %v778_v59 = vrot.slane %v7606_v21, 1 }
 0x1b9   : > { %1850 = vmatprep.subr.bf16.mxu0 %v9798_v10  ;;  %v780_v21 = vrot.slane %v7628_v13, 1  ;;  %v782_v13 = vrot.slane %v7650_v3, 1  ;;  %v784_v3 = vrot.slane %v7672_v40, 1 }
 0x1ba   : > { %v809_v29 = vsel %vm791_vm5, %v772_v57, %v773_v38  ;;  %v810_v27 = vsel %vm791_vm5, %v771_v34, %v772_v57  ;;  %v805_v48 = vsel %vm791_vm5, %v776_v30, %v777_v54  ;;  %v806_v34 = vsel %vm791_vm5, %v775_v28, %v776_v30 }
 0x1bb   : > { %4987 = vmatmul.mubr.msk.bf16.gmra.mrb[24].mxu0 %vm7557_vm6, %v7821_v24  ;;  %v7877_v58 = vpack.c.bf16 %v809_v29, %v810_v27  ;;  %v7905_v32 = vpack.c.bf16 %v805_v48, %v806_v34  ;;  %v803_v26 = vsel %vm791_vm5, %v778_v59, %v779_v18  ;;  %v804_v41 = vsel %vm791_vm5, %v777_v54, %v778_v59  ;;  %v6553_v59 = vld [vmem:[#allocation8 + $0x188] sm:$0xff]  }
 0x1bc   : > { %4990 = vmatprep.mubr.msk.bf16.mxu0 %vm7308_vm2, %v7498_v55  ;;  %1851 = vmatpush1.bf16.msra.mxu0 %v6548_v42  ;;  %v802_v57 = vsel %vm791_vm5, %v779_v18, %v780_v21  ;;  %v797_v27 = vsel %vm791_vm5, %v784_v3, %v785_v6  ;;  %v9802_v34 = vmov 0.0|0.0   ;;  %v6554_v18 = vld [vmem:[#allocation8 + $0x190] sm:$0xff]  }
 0x1bd   : > { %1852 = vmatprep.subr.bf16.mxu0 %v9798_v10 }
 0x1c0   : > { %1853 = vmatpush1.bf16.msra.mxu0 %v6549_v17  ;;  %v807_v17 = vsel %vm791_vm5, %v774_v2, %v775_v28  ;;  %v9801_v28 = vrot.slane %v7694_v52, 7 }
 0x1c1   : > { %1854 = vmatprep.subr.bf16.mxu0 %v9798_v10 }
 0x1c2   : > { %v628_v40 = vsel %vm624_vm3, %v9801_v28, %v7304_v20  ;;  %v6563_v28 = vld [vmem:[#allocation8 + $0x1d8] sm:$0xff]  }
 0x1c3   : > { %4993 = vmatmul.mubr.msk.bf16.gmra.mrb[28].mxu0 %vm7557_vm6, %v7838_v8 }
 0x1c4   : > { %4996 = vmatprep.mubr.msk.bf16.mxu0 %vm7308_vm2, %v7520_v4  ;;  %1855 = vmatpush1.bf16.msra.mxu0 %v6550_v45  ;;  %v808_v45 = vsel %vm791_vm5, %v773_v38, %v774_v2  ;;  %v798_v2 = vsel %vm791_vm5, %v783_v43, %v784_v3  ;;  %v8025_v3 = vld [vmem:[#allocation8 + $0x210] sm:$0xff]  }
 0x1c5   : > { %1856 = vmatprep.subr.bf16.mxu0 %v9798_v10  ;;  %v7966_v9 = vpack.c.bf16 %v797_v27, %v798_v2  ;;  %v9805_v27 = vld [vmem:[#allocation31_spill] sm:$0xff]  ;;  %v8034_v2 = vld [vmem:[#allocation8 + $0x218] sm:$0xff]  }
 0x1c8   : > { %1857 = vmatpush1.bf16.msra.mxu0 %v6551_v5  ;;  %v7891_v5 = vpack.c.bf16 %v807_v17, %v808_v45  ;;  %v786_v17 = vrot.slane %v7694_v52, 1  ;;  %v7970_v45 = vpack.c.bf16 %v7304_v20, %v628_v40  ;;  %v6552_v52 = vld [vmem:[#allocation8 + $0x180] sm:$0xff]  }
 0x1c9   : > { %2003 = vmatprep.subr.bf16.mxu0 %v9798_v10  ;;  %v8039_v40 = vld [vmem:[#allocation8 + $0x220] sm:$0xff]  }
 0x1ca   : > { %v795_v30 = vsel %vm791_vm5, %v786_v17, %v7717_v47  ;;  %v796_v54 = vsel %vm791_vm5, %v785_v6, %v786_v17  ;;  %v6562_v6 = vld [vmem:[#allocation8 + $0x1d0] sm:$0xff]   ;;  %v6564_v17 = vld [vmem:[#allocation8 + $0x1e0] sm:$0xff]  }
 0x1cb   : > { %4999 = vmatmul.mubr.msk.bf16.gmra.mrb[32].mxu0 %vm7557_vm6, %v7554_v36  ;;  %v7983_v48 = vpack.c.bf16 %v795_v30, %v796_v54  ;;  %v9806_v30 = vld [vmem:[#allocation32_spill] sm:$0xff]  ;;  %v8048_v54 = vld [vmem:[#allocation8 + $0x228] sm:$0xff]  }
 0x1cc   : > { %5002 = vmatprep.mubr.msk.bf16.mxu0 %vm7308_vm2, %v7561_v39 }
 0x1ce   : > { %v1506_v63 = vpop.f32.mrb[0].mxu0 }
 0x1cf   : > { %v1508_v56 = vpop.f32.mrb[1].mxu0  ;;  %v7919_v63 = vpack.c.bf16 %v803_v26, %v804_v41  ;;  %v6556_v26 = vld [vmem:[#allocation8 + $0x1a0] sm:$0xff]  }
 0x1d0   : > { %v1509_v42 = vpop.f32.mrb[2].mxu0  ;;  %v801_v56 = vsel %vm791_vm5, %v780_v21, %v781_v11  ;;  %v8004_v41 = vld [vmem:[#allocation8 + $0x200] sm:$0xff]   ;;  %v6557_v21 = vld [vmem:[#allocation8 + $0x1a8] sm:$0xff]  }
 0x1d1   : > { %v1511_v61 = vpop.f32.mrb[3].mxu0  ;;  %v7933_v38 = vpack.c.bf16 %v801_v56, %v802_v57  ;;  %v799_v42 = vsel %vm791_vm5, %v782_v13, %v783_v43  ;;  %6189 = vmatprep.subr.bf16.mxu1 %v8004_v41  ;;  %v9803_v56 = vld [vmem:[#allocation29_spill] sm:$0xff]  ;;  %v6559_v57 = vld [vmem:[#allocation8 + $0x1b8] sm:$0xff]   ;;  %v9804_v43 = vld [vmem:[#allocation30_spill] sm:$0xff] }
 0x1d2   : > { %v800_v61 = vsel %vm791_vm5, %v781_v11, %v782_v13  ;;  %6197 = vmatpush3.bf16.msra.mxu1 %v8004_v41  ;;  %v6558_v11 = vld [vmem:[#allocation8 + $0x1b0] sm:$0xff]   ;;  %v6560_v13 = vld [vmem:[#allocation8 + $0x1c0] sm:$0xff]  }
 0x1d3   : > { %5005 = vmatmul.mubr.msk.bf16.gmra.mrb[36].mxu0 %vm7557_vm6, %v7863_v49  ;;  %v7947_v29 = vpack.c.bf16 %v799_v42, %v800_v61  ;;  %v8020_v42 = vld [vmem:[#allocation8 + $0x208] sm:$0xff]  }
 0x1d4   : > { %5008 = vmatprep.mubr.msk.bf16.mxu0 %vm7308_vm2, %v7586_v62  ;;  %v6561_v61 = vld [vmem:[#allocation8 + $0x1c8] sm:$0xff]   ;;  %6190 = vmatprep.subr.bf16.mxu1 %v8020_v42 }
 0x1d6   : > { %6198 = vmatpush3.bf16.msra.mxu1 %v8020_v42 }
 0x1d7   : > { %6191 = vmatprep.subr.bf16.mxu1 %v8025_v3 }
 0x1da   : > { %6199 = vmatpush3.bf16.msra.mxu1 %v8025_v3 }
 0x1db   : > { %5011 = vmatmul.mubr.msk.bf16.gmra.mrb[40].mxu0 %vm7557_vm6, %v7877_v58  ;;  %6192 = vmatprep.subr.bf16.mxu1 %v8034_v2 }
 0x1dc   : > { %5014 = vmatprep.mubr.msk.bf16.mxu0 %vm7308_vm2, %v7608_v23 }
 0x1de   : > { %6200 = vmatpush3.bf16.msra.mxu1 %v8034_v2 }
 0x1df   : > { %6193 = vmatprep.subr.bf16.mxu1 %v8039_v40 }
 0x1e2   : > { %6201 = vmatpush3.bf16.msra.mxu1 %v8039_v40 }
 0x1e3   : > { %5017 = vmatmul.mubr.msk.bf16.gmra.mrb[44].mxu0 %vm7557_vm6, %v7891_v5  ;;  %6194 = vmatprep.subr.bf16.mxu1 %v8048_v54 }
 0x1e4   : > { %5020 = vmatprep.mubr.msk.bf16.mxu0 %vm7308_vm2, %v7630_v1 }
 0x1e6   : > { %6202 = vmatpush3.bf16.msra.mxu1 %v8048_v54 }
 0x1eb   : > { %5023 = vmatmul.mubr.msk.bf16.gmra.mrb[48].mxu0 %vm7557_vm6, %v7905_v32 }
 0x1ec   : > { %5026 = vmatprep.mubr.msk.bf16.mxu0 %vm7308_vm2, %v7652_v19 }
 0x1f3   : > { %5029 = vmatmul.mubr.msk.bf16.gmra.mrb[52].mxu0 %vm7557_vm6, %v7919_v63 }
 0x1f4   : > { %5032 = vmatprep.mubr.msk.bf16.mxu0 %vm7308_vm2, %v7674_v51 }
 0x1fb   : > { %5035 = vmatmul.mubr.msk.bf16.gmra.mrb[56].mxu0 %vm7557_vm6, %v7933_v38 }
 0x1fc   : > { %5038 = vmatprep.mubr.msk.bf16.mxu0 %vm7308_vm2, %v7696_v0 }
 0x203   : > { %5041 = vmatmul.mubr.msk.bf16.gmra.mrb[60].mxu0 %vm7557_vm6, %v7947_v29 }
 0x204   : > { %5044 = vmatprep.mubr.msk.bf16.mxu0 %vm7308_vm2, %v7714_v14 }
 0x20b   : > { %5047 = vmatmul.mubr.msk.bf16.gmra.mrb[64].mxu0 %vm7557_vm6, %v7966_v9 }
 0x20c   : > { %5050 = vmatprep.mubr.msk.bf16.mxu0 %vm7308_vm2, %v7970_v45 }
 0x213   : > { %5053 = vmatmul.mubr.msk.bf16.gmra.mrb[76].mxu0 %vm7557_vm6, %v7983_v48 }
 0x214   : > { %5056 = vmatprep.mubr.msk.bf16.mxu0 %vm7557_vm6, %v7741_v53  ;;  %v6555_v53 = vld [vmem:[#allocation8 + $0x198] sm:$0xff]  }
 0x21b   : > { %1859 = vmatmul.mubr.bf16.vlgmr.msra.gmra.mrb[80].mxu0 %v9802_v34 }
 0x21c   : > { %2004 = vmatpush1.bf16.msra.mxu0 %v6552_v52  ;;  %5059 = vmatprep.mubr.msk.bf16.mxu0 %vm7557_vm6, %v7757_v12  ;;  %v6565_v52 = vld [vmem:[#allocation8 + $0x1e8] sm:$0xff]  }
 0x21d   : > { %2005 = vmatprep.subr.bf16.mxu0 %v9798_v10 }
 0x220   : > { %2006 = vmatpush1.bf16.msra.mxu0 %v6553_v59  ;;  %v8053_v59 = vld [vmem:[#allocation8 + $0x230] sm:$0xff]  }
 0x221   : > { %2007 = vmatprep.subr.bf16.mxu0 %v9798_v10  ;;  %6195 = vmatprep.subr.bf16.mxu1 %v8053_v59 }
 0x222   : > { %6203 = vmatpush3.bf16.msra.mxu1 %v8053_v59 }
 0x223   : > { %1867 = vmatmul.mubr.bf16.gmra.mrb[4].mxu0 %v7343_v35 }
 0x224   : > { %5062 = vmatprep.mubr.msk.bf16.mxu0 %vm7557_vm6, %v7773_v25  ;;  %2008 = vmatpush1.bf16.msra.mxu0 %v6554_v18  ;;  %v6566_v18 = vld [vmem:[#allocation8 + $0x1f0] sm:$0xff]  }
 0x225   : > { %2009 = vmatprep.subr.bf16.mxu0 %v9798_v10 }
 0x228   : > { %2010 = vmatpush1.bf16.msra.mxu0 %v6555_v53  ;;  %v9807_v53 = vld [vmem:[#allocation33_spill] sm:$0xff] }
 0x229   : > { %2011 = vmatprep.subr.bf16.mxu0 %v9798_v10 }
 0x22b   : > { %1875 = vmatmul.mubr.bf16.gmra.mrb[8].mxu0 %v7379_v50 }
 0x22c   : > { %5065 = vmatprep.mubr.msk.bf16.mxu0 %vm7557_vm6, %v7789_v46  ;;  %2012 = vmatpush1.bf16.msra.mxu0 %v6556_v26  ;;  %v6567_v26 = vld [vmem:[#allocation8 + $0x1f8] sm:$0xff]  }
 0x22d   : > { %2013 = vmatprep.subr.bf16.mxu0 %v9798_v10 }
 0x230   : > { %2014 = vmatpush1.bf16.msra.mxu0 %v6557_v21 }
 0x231   : > { %2015 = vmatprep.subr.bf16.mxu0 %v9798_v10 }
 0x233   : > { %1883 = vmatmul.mubr.bf16.gmra.mrb[12].mxu0 %v9803_v56 }
 0x234   : > { %5068 = vmatprep.mubr.msk.bf16.mxu0 %vm7557_vm6, %v7805_v33  ;;  %2016 = vmatpush1.bf16.msra.mxu0 %v6558_v11 }
 0x235   : > { %2017 = vmatprep.subr.bf16.mxu0 %v9798_v10 }
 0x238   : > { %2018 = vmatpush1.bf16.msra.mxu0 %v6559_v57 }
 0x239   : > { %2019 = vmatprep.subr.bf16.mxu0 %v9798_v10 }
 0x23b   : > { %1891 = vmatmul.mubr.bf16.gmra.mrb[16].mxu0 %v9804_v43 }
 0x23c   : > { %5071 = vmatprep.mubr.msk.bf16.mxu0 %vm7557_vm6, %v7821_v24  ;;  %2020 = vmatpush1.bf16.msra.mxu0 %v6560_v13 }
 0x23d   : > { %2021 = vmatprep.subr.bf16.mxu0 %v9798_v10 }
 0x240   : > { %2022 = vmatpush1.bf16.msra.mxu0 %v6561_v61 }
 0x241   : > { %2023 = vmatprep.subr.bf16.mxu0 %v9798_v10 }
 0x243   : > { %1899 = vmatmul.mubr.bf16.gmra.mrb[20].mxu0 %v9805_v27 }
 0x244   : > { %5074 = vmatprep.mubr.msk.bf16.mxu0 %vm7557_vm6, %v7838_v8  ;;  %2024 = vmatpush1.bf16.msra.mxu0 %v6562_v6 }
 0x245   : > { %2025 = vmatprep.subr.bf16.mxu0 %v9798_v10 }
 0x248   : > { %2026 = vmatpush1.bf16.msra.mxu0 %v6563_v28 }
 0x249   : > { %2027 = vmatprep.subr.bf16.mxu0 %v9798_v10 }
 0x24b   : > { %1907 = vmatmul.mubr.bf16.gmra.mrb[24].mxu0 %v9806_v30 }
 0x24c   : > { %5077 = vmatprep.mubr.msk.bf16.mxu0 %vm7557_vm6, %v7554_v36  ;;  %2028 = vmatpush1.bf16.msra.mxu0 %v6564_v17  ;;  %v8062_v36 = vld [vmem:[#allocation8 + $0x238] sm:$0xff]  }
 0x24d   : > { %2029 = vmatprep.subr.bf16.mxu0 %v9798_v10  ;;  %6196 = vmatprep.subr.bf16.mxu1 %v8062_v36 }
 0x24e   : > { %6204 = vmatpush3.bf16.msra.mxu1 %v8062_v36 }
 0x250   : > { %2030 = vmatpush1.bf16.msra.mxu0 %v6565_v52  ;;  %v9812_v52 = vld [vmem:[#allocation43_spill] sm:$0xff] }
 0x251   : > { %2031 = vmatprep.subr.bf16.mxu0 %v9798_v10  ;;  %6118 = vmatmul.mubr.msk.bf16.vlgmr.msra.gmra.mrb[0].mxu1 %vm7557_vm6, %v7863_v49 }
 0x252   : > { %6121 = vmatprep.mubr.msk.bf16.mxu1 %vm7557_vm6, %v7877_v58 }
 0x253   : > { %1915 = vmatmul.mubr.bf16.gmra.mrb[28].mxu0 %v9807_v53 }
 0x254   : > { %5080 = vmatprep.mubr.msk.bf16.mxu0 %vm7557_vm6, %v7863_v49  ;;  %2032 = vmatpush1.bf16.msra.mxu0 %v6566_v18  ;;  %v9809_v49 = vld [vmem:[#allocation35_spill] sm:$0xff]  ;;  %v9815_v18 = vld [vmem:[#allocation40_spill] sm:$0xff] }
 0x255   : > { %2033 = vmatprep.subr.bf16.mxu0 %v9798_v10  ;;  %v9808_v10 = vld [vmem:[#allocation34_spill] sm:$0xff] }
 0x256   : > { %v1642_v21 = vpop.f32.mrb[68].mxu0 }
 0x257   : > { %v1644_v11 = vpop.f32.mrb[69].mxu0  ;;  %v6581_v21 = vld [vmem:[#allocation10 + $0x10] sm:$0xff]  }
 0x258   : > { %v1645_v57 = vpop.f32.mrb[70].mxu0  ;;  %2034 = vmatpush1.bf16.msra.mxu0 %v6567_v26  ;;  %v9816_v26 = vld [vmem:[#allocation41_spill] sm:$0xff] }
 0x259   : > { %v1647_v13 = vpop.f32.mrb[71].mxu0  ;;  %6089 = vmatprep.subr.bf16.mxu0 %v8004_v41  ;;  %6122 = vmatmul.mubr.msk.bf16.gmra.mrb[4].mxu1 %vm7557_vm6, %v7891_v5  ;;  %v6582_v57 = vld [vmem:[#allocation10 + $0x58] sm:$0xff]  }
 0x25a   : > { %6125 = vmatprep.mubr.msk.bf16.mxu1 %vm7557_vm6, %v7905_v32 }
 0x25b   : > { %1923 = vmatmul.mubr.bf16.gmra.mrb[32].mxu0 %v9808_v10 }
 0x25c   : > { %5083 = vmatprep.mubr.msk.bf16.mxu0 %vm7557_vm6, %v7877_v58  ;;  %v9810_v58 = vld [vmem:[#allocation36_spill] sm:$0xff] }
 0x25e   : > { %v1683_v61 = vpop.f32.mrb[72].mxu0 }
 0x25f   : > { %v1685_v6 = vpop.f32.mrb[73].mxu0  ;;  %v6583_v61 = vld [vmem:[#allocation10 + $0x18] sm:$0xff]  }
 0x260   : > { %v1686_v28 = vpop.f32.mrb[74].mxu0 }
 0x261   : > { %v1688_v17 = vpop.f32.mrb[75].mxu0  ;;  %6126 = vmatmul.mubr.msk.bf16.gmra.mrb[8].mxu1 %vm7557_vm6, %v7919_v63 }
 0x262   : > { %6129 = vmatprep.mubr.msk.bf16.mxu1 %vm7557_vm6, %v7933_v38 }
 0x263   : > { %1931 = vmatmul.mubr.bf16.gmra.mrb[36].mxu0 %v9809_v49 }
 0x264   : > { %5086 = vmatprep.mubr.msk.bf16.mxu0 %vm7557_vm6, %v7891_v5  ;;  %v9811_v5 = vld [vmem:[#allocation37_spill] sm:$0xff] }
 0x269   : > { %6130 = vmatmul.mubr.msk.bf16.gmra.mrb[12].mxu1 %vm7557_vm6, %v7947_v29 }
 0x26a   : > { %6133 = vmatprep.mubr.msk.bf16.mxu1 %vm7557_vm6, %v7966_v9 }
 0x26b   : > { %1939 = vmatmul.mubr.bf16.gmra.mrb[40].mxu0 %v9810_v58 }
 0x26c   : > { %5089 = vmatprep.mubr.msk.bf16.mxu0 %vm7557_vm6, %v7905_v32  ;;  %v9813_v32 = vld [vmem:[#allocation38_spill] sm:$0xff] }
 0x271   : > { %6134 = vmatmul.mubr.msk.bf16.gmra.mrb[16].mxu1 %vm7557_vm6, %v7983_v48 }
 0x272   : > { %6137 = vmatprep.mubr.msk.bf16.mxu1 %vm7557_vm6, %v9812_v52 }
 0x273   : > { %1947 = vmatmul.mubr.bf16.gmra.mrb[44].mxu0 %v9811_v5 }
 0x274   : > { %5092 = vmatprep.mubr.msk.bf16.mxu0 %vm7557_vm6, %v7919_v63  ;;  %v9814_v63 = vld [vmem:[#allocation39_spill] sm:$0xff] }
 0x279   : > { %6138 = vmatmul.mubr.msk.bf16.gmra.mrb[20].mxu1 %vm7557_vm6, %v9812_v52 }
 0x27a   : > { %3679 = vmatprep.mubr.bf16.mxu1 %v9802_v34 }
 0x27b   : > { %1955 = vmatmul.mubr.bf16.gmra.mrb[48].mxu0 %v9813_v32 }
 0x27c   : > { %5095 = vmatprep.mubr.msk.bf16.mxu0 %vm7557_vm6, %v7933_v38  ;;  %v9817_v38 = vld [vmem:[#allocation42_spill] sm:$0xff] }
 0x283   : > { %1963 = vmatmul.mubr.bf16.gmra.mrb[52].mxu0 %v9814_v63 }
 0x284   : > { %5098 = vmatprep.mubr.msk.bf16.mxu0 %vm7557_vm6, %v7947_v29  ;;  %v9818_v29 = vld [vmem:[#allocation28_spill] sm:$0xff] }
 0x28b   : > { %1971 = vmatmul.mubr.bf16.gmra.mrb[56].mxu0 %v9815_v18 }
 0x28c   : > { %5101 = vmatprep.mubr.msk.bf16.mxu0 %vm7557_vm6, %v7966_v9 }
 0x293   : > { %1979 = vmatmul.mubr.bf16.gmra.mrb[60].mxu0 %v9816_v26 }
 0x294   : > { %5104 = vmatprep.mubr.msk.bf16.mxu0 %vm7557_vm6, %v7983_v48 }
 0x29b   : > { %1987 = vmatmul.mubr.bf16.gmra.mrb[64].mxu0 %v9817_v38 }
 0x29c   : > { %5107 = vmatprep.mubr.msk.bf16.mxu0 %vm7557_vm6, %v9812_v52 }
 0x2a3   : > { %1995 = vmatmul.mubr.bf16.gmra.mrb[84].mxu0 %v9802_v34 }
 0x2a4   : > { %2035 = vmatprep.mubr.bf16.mxu0 %v7343_v35 }
 0x2ab   : > { %5110 = vmatmul.mubr.msk.bf16.vlgmr.msra.gmra.mrb[88].mxu0 %vm7308_vm2, %v9818_v29  ;;  %v6590_v29 = vld [vmem:[#allocation10 + $0x78] sm:$0xff]  }
 0x2ac   : > { %6090 = vmatpush3.bf16.msra.mxu0 %v8004_v41  ;;  %2043 = vmatprep.mubr.bf16.mxu0 %v7379_v50 }
 0x2ad   : > { %6091 = vmatprep.subr.bf16.mxu0 %v8020_v42 }
 0x2b0   : > { %6092 = vmatpush3.bf16.msra.mxu0 %v8020_v42 }
 0x2b1   : > { %6093 = vmatprep.subr.bf16.mxu0 %v8025_v3 }
 0x2b3   : > { %5113 = vmatmul.mubr.msk.bf16.gmra.mrb[4].mxu0 %vm7308_vm2, %v7400_v60 }
 0x2b4   : > { %2051 = vmatprep.mubr.bf16.mxu0 %v9803_v56  ;;  %6094 = vmatpush3.bf16.msra.mxu0 %v8025_v3  ;;  %v6577_v3 = vld [vmem:[#allocation10] sm:$0xff]  }
 0x2b5   : > { %6095 = vmatprep.subr.bf16.mxu0 %v8034_v2 }
 0x2b8   : > { %6096 = vmatpush3.bf16.msra.mxu0 %v8034_v2 }
 0x2b9   : > { %6097 = vmatprep.subr.bf16.mxu0 %v8039_v40 }
 0x2bb   : > { %5116 = vmatmul.mubr.msk.bf16.gmra.mrb[8].mxu0 %vm7308_vm2, %v7421_v7 }
 0x2bc   : > { %2059 = vmatprep.mubr.bf16.mxu0 %v9804_v43  ;;  %6098 = vmatpush3.bf16.msra.mxu0 %v8039_v40 }
 0x2bd   : > { %6099 = vmatprep.subr.bf16.mxu0 %v8048_v54 }
 0x2c0   : > { %6100 = vmatpush3.bf16.msra.mxu0 %v8048_v54  ;;  %v6579_v54 = vld [vmem:[#allocation10 + $0x8] sm:$0xff]  }
 0x2c1   : > { %6101 = vmatprep.subr.bf16.mxu0 %v8053_v59 }
 0x2c3   : > { %5119 = vmatmul.mubr.msk.bf16.gmra.mrb[12].mxu0 %vm7308_vm2, %v7441_v15 }
 0x2c4   : > { %2067 = vmatprep.mubr.bf16.mxu0 %v9805_v27  ;;  %6102 = vmatpush3.bf16.msra.mxu0 %v8053_v59  ;;  %v6578_v27 = vld [vmem:[#allocation10 + $0x48] sm:$0xff]  }
 0x2c5   : > { %6103 = vmatprep.subr.bf16.mxu0 %v8062_v36 }
 0x2c8   : > { %6104 = vmatpush3.bf16.msra.mxu0 %v8062_v36  ;;  %v6580_v36 = vld [vmem:[#allocation10 + $0x50] sm:$0xff]  }
 0x2cb   : > { %5122 = vmatmul.mubr.msk.bf16.gmra.mrb[16].mxu0 %vm7308_vm2, %v7461_v31 }
 0x2cc   : > { %2075 = vmatprep.mubr.bf16.mxu0 %v9806_v30 }
 0x2d3   : > { %5125 = vmatmul.mubr.msk.bf16.gmra.mrb[20].mxu0 %vm7308_vm2, %v7481_v44 }
 0x2d4   : > { %2083 = vmatprep.mubr.bf16.mxu0 %v9807_v53 }
 0x2db   : > { %5128 = vmatmul.mubr.msk.bf16.gmra.mrb[24].mxu0 %vm7308_vm2, %v7498_v55 }
 0x2dc   : > { %2091 = vmatprep.mubr.bf16.mxu0 %v9808_v10 }
 0x2e3   : > { %5131 = vmatmul.mubr.msk.bf16.gmra.mrb[28].mxu0 %vm7308_vm2, %v7520_v4 }
 0x2e4   : > { %2099 = vmatprep.mubr.bf16.mxu0 %v9809_v49 }
 0x2e6   : > { %v1819_v35 = vpop.f32.mrb[76].mxu0 }
 0x2e7   : > { %v1821_v50 = vpop.f32.mrb[77].mxu0 }
 0x2e8   : > { %v1822_v60 = vpop.f32.mrb[78].mxu0  ;;  %v6591_v50 = vld [vmem:[#allocation10 + $0x38] sm:$0xff]  }
 0x2e9   : > { %v1824_v7 = vpop.f32.mrb[79].mxu0 }
 0x2eb   : > { %5134 = vmatmul.mubr.msk.bf16.gmra.mrb[32].mxu0 %vm7308_vm2, %v7561_v39  ;;  %v9819_v39 = vld [vmem:[#allocation27_spill] sm:$0xff] }
 0x2ec   : > { %2107 = vmatprep.mubr.bf16.mxu0 %v9810_v58  ;;  %v6584_v58 = vld [vmem:[#allocation10 + $0x60] sm:$0xff]  }
 0x2ee   : > { %v1860_v15 = vpop.f32.mrb[80].mxu0 }
 0x2ef   : > { %v1862_v31 = vpop.f32.mrb[81].mxu0 }
 0x2f0   : > { %v1863_v44 = vpop.f32.mrb[82].mxu0 }
 0x2f1   : > { %v1865_v55 = vpop.f32.mrb[83].mxu0 }
 0x2f3   : > { %5137 = vmatmul.mubr.msk.bf16.gmra.mrb[36].mxu0 %vm7308_vm2, %v7586_v62 }
 0x2f4   : > { %2115 = vmatprep.mubr.bf16.mxu0 %v9811_v5  ;;  %v6585_v5 = vld [vmem:[#allocation10 + $0x20] sm:$0xff]  }
 0x2fb   : > { %5140 = vmatmul.mubr.msk.bf16.gmra.mrb[40].mxu0 %vm7308_vm2, %v7608_v23 }
 0x2fc   : > { %2123 = vmatprep.mubr.bf16.mxu0 %v9813_v32  ;;  %v6586_v32 = vld [vmem:[#allocation10 + $0x68] sm:$0xff]  }
 0x303   : > { %5143 = vmatmul.mubr.msk.bf16.gmra.mrb[44].mxu0 %vm7308_vm2, %v7630_v1 }
 0x304   : > { %2131 = vmatprep.mubr.bf16.mxu0 %v9814_v63  ;;  %v6587_v63 = vld [vmem:[#allocation10 + $0x28] sm:$0xff]  }
 0x30b   : > { %5146 = vmatmul.mubr.msk.bf16.gmra.mrb[48].mxu0 %vm7308_vm2, %v7652_v19 }
 0x30c   : > { %2139 = vmatprep.mubr.bf16.mxu0 %v9815_v18  ;;  %v6588_v18 = vld [vmem:[#allocation10 + $0x70] sm:$0xff]  }
 0x313   : > { %5149 = vmatmul.mubr.msk.bf16.gmra.mrb[52].mxu0 %vm7308_vm2, %v7674_v51 }
 0x314   : > { %2147 = vmatprep.mubr.bf16.mxu0 %v9816_v26  ;;  %v6589_v26 = vld [vmem:[#allocation10 + $0x30] sm:$0xff]  }
 0x31b   : > { %5152 = vmatmul.mubr.msk.bf16.gmra.mrb[56].mxu0 %vm7308_vm2, %v7696_v0 }
 0x31c   : > { %2155 = vmatprep.mubr.bf16.mxu0 %v9817_v38 }
 0x323   : > { %5155 = vmatmul.mubr.msk.bf16.gmra.mrb[60].mxu0 %vm7308_vm2, %v7714_v14 }
 0x324   : > { %2163 = vmatprep.mubr.bf16.mxu0 %v9802_v34  ;;  %v8226_v1 = vpop.f32.mrb[0].mxu1 }
 0x325   : > { %v8228_v19 = vpop.f32.mrb[1].mxu1 }
 0x326   : > { %v8230_v4 = vpop.f32.mrb[2].mxu1 }
 0x327   : > { %v8232_v0 = vpop.f32.mrb[3].mxu1 }
 0x32b   : > { %5158 = vmatmul.mubr.msk.bf16.gmra.mrb[64].mxu0 %vm7308_vm2, %v7970_v45 }
 0x32c   : > { %2171 = vmatprep.mubr.bf16.mxu0 %v9802_v34  ;;  %v8246_v51 = vpop.f32.mrb[4].mxu1 }
 0x32d   : > { %v8248_v62 = vpop.f32.mrb[5].mxu1 }
 0x32e   : > { %v8250_v23 = vpop.f32.mrb[6].mxu1 }
 0x32f   : > { %v8252_v14 = vpop.f32.mrb[7].mxu1 }
 0x333   : > { %5161 = vmatmul.mubr.msk.bf16.gmra.mrb[92].mxu0 %vm7308_vm2, %v9819_v39 }
 0x334   : > { %6105 = vmatprep.mubr.msk.bf16.mxu0 %vm7557_vm6, %v7757_v12  ;;  %v8263_v12 = vpop.f32.mrb[8].mxu1 }
 0x33b   : > { %6106 = vmatmul.mubr.msk.bf16.vlgmr.msra.gmra.mrb[4].mxu0 %vm7557_vm6, %v7773_v25  ;;  %v8265_v25 = vpop.f32.mrb[9].mxu1 }
 0x33c   : > { %6109 = vmatprep.mubr.msk.bf16.mxu0 %vm7557_vm6, %v7789_v46  ;;  %v8267_v46 = vpop.f32.mrb[10].mxu1 }
 0x33d   : > { %v8269_v9 = vpop.f32.mrb[11].mxu1 }
 0x33e   : > { %v8271_v45 = vpop.f32.mrb[12].mxu1 }
 0x33f   : > { %v8273_v48 = vpop.f32.mrb[13].mxu1 }
 0x343   : > { %6110 = vmatmul.mubr.msk.bf16.gmra.mrb[96].mxu0 %vm7557_vm6, %v7805_v33  ;;  %v8275_v33 = vpop.f32.mrb[14].mxu1 }
 0x344   : > { %6113 = vmatprep.mubr.msk.bf16.mxu0 %vm7557_vm6, %v7821_v24  ;;  %v8277_v41 = vpop.f32.mrb[15].mxu1 }
 0x345   : > { %v8279_v24 = vpop.f32.mrb[16].mxu1 }
 0x346   : > { %v8281_v56 = vpop.f32.mrb[17].mxu1 }
 0x347   : > { %v8283_v43 = vpop.f32.mrb[18].mxu1 }
 0x348   : > { %v8285_v42 = vpop.f32.mrb[19].mxu1 }
 0x34b   : > { %6114 = vmatmul.mubr.msk.bf16.gmra.mrb[100].mxu0 %vm7557_vm6, %v7838_v8  ;;  %v6576_v8 = vld [vmem:[#allocation10 + $0x40] sm:$0xff]  }
 0x34c   : > { %5617 = vmatprep.subr.bf16.mxu1 %v6576_v8  ;;  %v6139_v2 = vpop.f32.mrb[20].mxu1 }
 0x34d   : > { %5618 = vmatpush3.bf16.msra.mxu1 %v6577_v3  ;;  %v8287_v13 = vpop.f32.mrb[21].mxu1  ;;  %v6592_v2 = vld [vmem:[#allocation10 + $0xc0] sm:$0xff]  }
 0x34e   : > { %5619 = vmatprep.subr.bf16.mxu1 %v6578_v27  ;;  %v6140_v6 = vpop.f32.mrb[22].mxu1 }
 0x34f   : > { %v8289_v17 = vpop.f32.mrb[23].mxu1  ;;  %v8319_v6 = vld [vmem:[%s9627_s6] ss:$0 sm:$0xff] }
 0x351   : > { %5620 = vmatpush3.bf16.msra.mxu1 %v6579_v54 }
 0x352   : > { %5621 = vmatprep.subr.bf16.mxu1 %v6580_v36  ;;  %v6594_v36 = vld [vmem:[#allocation10 + $0xc8] sm:$0xff]  }
 0x355   : > { %5622 = vmatpush3.bf16.msra.mxu1 %v6581_v21  ;;  %v6595_v21 = vld [vmem:[#allocation10 + $0x88] sm:$0xff]  }
 0x356   : > { %5623 = vmatprep.subr.bf16.mxu1 %v6582_v57  ;;  %v8313_v57 = vld [vmem:[%s9626_s5] ss:$0 sm:$0xff] }
 0x359   : > { %5624 = vmatpush3.bf16.msra.mxu1 %v6583_v61 }
 0x35a   : > { %5625 = vmatprep.subr.bf16.mxu1 %v6584_v58 }
 0x35d   : > { %5626 = vmatpush3.bf16.msra.mxu1 %v6585_v5 }
 0x35e   : > { %5627 = vmatprep.subr.bf16.mxu1 %v6586_v32 }
 0x361   : > { %5628 = vmatpush3.bf16.msra.mxu1 %v6587_v63 }
 0x362   : > { %5629 = vmatprep.subr.bf16.mxu1 %v6588_v18 }
 0x365   : > { %5630 = vmatpush3.bf16.msra.mxu1 %v6589_v26 }
 0x366   : > { %5631 = vmatprep.subr.bf16.mxu1 %v6590_v29 }
 0x369   : > { %5632 = vmatpush3.bf16.msra.mxu1 %v6591_v50 }
 0x36a   : > { %5729 = vmatprep.subr.bf16.mxu1 %v6592_v2 }
 0x36c   : > { %5292 = vmatmul.mubr.msk.bf16.vlgmr.msra.gmra.mrb[24].mxu1 %vm7308_vm2, %v9819_v39 }
 0x376   : > { %v1996_v40 = vpop.f32.mrb[84].mxu0 }
 0x377   : > { %v1998_v30 = vpop.f32.mrb[85].mxu0 }
 0x378   : > { %v1999_v59 = vpop.f32.mrb[86].mxu0  ;;  %v6593_v30 = vld [vmem:[#allocation10 + $0x80] sm:$0xff]  }
 0x379   : > { %v2001_v53 = vpop.f32.mrb[87].mxu0  ;;  %5730 = vmatpush3.bf16.msra.mxu1 %v6593_v30 }
 0x37a   : > { %5731 = vmatprep.subr.bf16.mxu1 %v6594_v36 }
 0x37d   : > { %5732 = vmatpush3.bf16.msra.mxu1 %v6595_v21 }
 0x37e   : > { %v2037_v11 = vpop.f32.mrb[88].mxu0 }
 0x37f   : > { %v2039_v10 = vpop.f32.mrb[89].mxu0 }
 0x380   : > { %v2040_v28 = vpop.f32.mrb[90].mxu0 }
 0x381   : > { %v2042_v49 = vpop.f32.mrb[91].mxu0 }
 0x38e   : > { %v8291_v38 = vpop.f32.mrb[8].mxu0 }
 0x38f   : > { %v2055_v35 = vpop.f32.mrb[9].mxu0 }
 0x390   : > { %v8293_v60 = vpop.f32.mrb[10].mxu0 }
 0x391   : > { %v2058_v7 = vpop.f32.mrb[11].mxu0 }
 0x392   : > { %v6596_v7 = vld [vmem:[#allocation10 + $0xd0] sm:$0xff]  }
 0x393   : > { %5733 = vmatprep.subr.bf16.mxu1 %v6596_v7 }
 0x396   : > { %v8298_v15 = vpop.f32.mrb[12].mxu0 }
 0x397   : > { %v2063_v31 = vpop.f32.mrb[13].mxu0 }
 0x398   : > { %v8300_v44 = vpop.f32.mrb[14].mxu0 }
 0x399   : > { %v2066_v55 = vpop.f32.mrb[15].mxu0 }
 0x39e   : > { %v8302_v8 = vpop.f32.mrb[16].mxu0 }
 0x39f   : > { %v2071_v3 = vpop.f32.mrb[17].mxu0 }
 0x3a0   : > { %v8304_v27 = vpop.f32.mrb[18].mxu0  ;;  %v6597_v3 = vld [vmem:[#allocation10 + $0x90] sm:$0xff]  }
 0x3a1   : > { %v2074_v40 = vpop.f32.mrb[19].mxu0  ;;  %5734 = vmatpush3.bf16.msra.mxu1 %v6597_v3 }
 0x3a6   : > { %v8306_v54 = vpop.f32.mrb[20].mxu0 }
 0x3a7   : > { %v2079_v59 = vpop.f32.mrb[21].mxu0 }
 0x3a8   : > { %v8308_v39 = vpop.f32.mrb[22].mxu0 }
 0x3a9   : > { %v2082_v53 = vpop.f32.mrb[23].mxu0 }
 0x3ae   : > { %v2085_v11 = vpop.f32.mrb[24].mxu0 }
 0x3af   : > { %v2263_v10 = vadd.f32 %v8228_v19, %v2085_v11  ;;  %v2087_v61 = vpop.f32.mrb[25].mxu0 }
 0x3b0   : > { %v2088_v28 = vpop.f32.mrb[26].mxu0 }
 0x3b1   : > { %v2376_v49 = vmul.f32 %v8313_v57, %v2263_v10  ;;  %v2266_v58 = vadd.f32 %v8232_v0, %v2088_v28  ;;  %v2090_v5 = vpop.f32.mrb[27].mxu0 }
 0x3b3   : > { %v2419_v32 = vadd.f32 %v8319_v6, %v2376_v49  ;;  %v2377_v63 = vmul.f32 %v8313_v57, %v2266_v58 }
 0x3b5   : > { %v8325_v18 = vmax.f32 %v2419_v32, 0.0  ;;  %v2420_v19 = vadd.f32 %v8319_v6, %v2377_v63 }
 0x3b6   : > { %v2093_v26 = vpop.f32.mrb[28].mxu0 }
 0x3b7   : > { %v2456_v29 = vmax.f32 %v2420_v19, 0.0  ;;  %v2271_v35 = vadd.f32 %v8226_v1, %v2093_v26  ;;  %v2095_v50 = vpop.f32.mrb[29].mxu0  ;;  %v9698_v31 = vrot.slane %v8325_v18, 7  ;;  %v9697_v55 = vrot.slane %v8325_v18, 1 }
 0x3b8   : > { %v2096_v0 = vpop.f32.mrb[30].mxu0 }
 0x3b9   : > { %v2814_v2 = vrot.slane %v2456_v29, 7  ;;  %v2958_v40 = vrot.slane %v2456_v29, 1  ;;  %v2378_v30 = vmul.f32 %v8313_v57, %v2271_v35  ;;  %v2274_v59 = vadd.f32 %v8230_v4, %v2096_v0  ;;  %v2098_v53 = vpop.f32.mrb[31].mxu0 }
 0x3ba   : > { %v8334_v36 = vpack.c.bf16 %v2456_v29, %v8325_v18 }
 0x3bb   : > { %v2421_v1 = vadd.f32 %v8319_v6, %v2378_v30  ;;  %v2379_v21 = vmul.f32 %v8313_v57, %v2274_v59  ;;  %v8342_v11 = vsel %vm624_vm3, %v9698_v31, %v2814_v2  ;;  %v3003_v4 = vsel %vm791_vm5, %v9697_v55, %v2958_v40 }
 0x3bd   : > { %v2457_v10 = vmax.f32 %v2421_v1, 0.0  ;;  %v2422_v61 = vadd.f32 %v8319_v6, %v2379_v21 }
 0x3be   : > { %v2101_v28 = vpop.f32.mrb[32].mxu0 }
 0x3bf   : > { %v2815_v49 = vrot.slane %v2457_v10, 7  ;;  %v2959_v58 = vrot.slane %v2457_v10, 1  ;;  %v2458_v5 = vmax.f32 %v2422_v61, 0.0  ;;  %v2279_v32 = vadd.f32 %v8248_v62, %v2101_v28  ;;  %v2103_v63 = vpop.f32.mrb[33].mxu0 }
 0x3c0   : > { %v2104_v19 = vpop.f32.mrb[34].mxu0 }
 0x3c1   : > { %v2816_v26 = vrot.slane %v2458_v5, 7  ;;  %v2960_v29 = vrot.slane %v2458_v5, 1  ;;  %v2380_v35 = vmul.f32 %v8313_v57, %v2279_v32  ;;  %v2282_v50 = vadd.f32 %v8252_v14, %v2104_v19  ;;  %v2106_v7 = vpop.f32.mrb[35].mxu0  ;;  %v6598_v19 = vld [vmem:[#allocation10 + $0xd8] sm:$0xff]  }
 0x3c2   : > { %v8352_v0 = vpack.c.bf16 %v2458_v5, %v2457_v10  ;;  %v2858_v3 = vsel %vm624_vm3, %v2814_v2, %v2815_v49  ;;  %v3002_v30 = vsel %vm791_vm5, %v2958_v40, %v2959_v58  ;;  %5735 = vmatprep.subr.bf16.mxu1 %v6598_v19 }
 0x3c3   : > { %v2423_v59 = vadd.f32 %v8319_v6, %v2380_v35  ;;  %v2381_v62 = vmul.f32 %v8313_v57, %v2282_v50  ;;  %v2857_v53 = vsel %vm624_vm3, %v2815_v49, %v2816_v26  ;;  %v8362_v1 = vpack.c.bf16 %v3002_v30, %v3003_v4  ;;  %v6599_v49 = vld [vmem:[#allocation10 + $0x98] sm:$0xff]  }
 0x3c4   : > { %v8364_v21 = vpack.c.bf16 %v2857_v53, %v2858_v3  ;;  %v3001_v14 = vsel %vm791_vm5, %v2959_v58, %v2960_v29  ;;  %5736 = vmatpush3.bf16.msra.mxu1 %v6599_v49 }
 0x3c5   : > { %9820 = vst [vmem:[#allocation29_spill] sm:$0xff] %v8362_v1  ;;  %v2459_v10 = vmax.f32 %v2423_v59, 0.0  ;;  %v2424_v2 = vadd.f32 %v8319_v6, %v2381_v62 }
 0x3c6   : > { %v2109_v61 = vpop.f32.mrb[36].mxu0 }
 0x3c7   : > { %v2817_v28 = vrot.slane %v2459_v10, 7  ;;  %v2961_v40 = vrot.slane %v2459_v10, 1  ;;  %v2460_v5 = vmax.f32 %v2424_v2, 0.0  ;;  %v2287_v32 = vadd.f32 %v8246_v51, %v2109_v61  ;;  %v2111_v63 = vpop.f32.mrb[37].mxu0 }
 0x3c8   : > { %v2112_v35 = vpop.f32.mrb[38].mxu0 }
 0x3c9   : > { %v2818_v4 = vrot.slane %v2460_v5, 7  ;;  %v2962_v50 = vrot.slane %v2460_v5, 1  ;;  %v2382_v7 = vmul.f32 %v8313_v57, %v2287_v32  ;;  %v2290_v3 = vadd.f32 %v8250_v23, %v2112_v35  ;;  %v2114_v58 = vpop.f32.mrb[39].mxu0 }
 0x3ca   : > { %v8372_v30 = vpack.c.bf16 %v2460_v5, %v2459_v10  ;;  %v2856_v59 = vsel %vm624_vm3, %v2816_v26, %v2817_v28  ;;  %v3000_v51 = vsel %vm791_vm5, %v2960_v29, %v2961_v40 }
 0x3cb   : > { %v2425_v62 = vadd.f32 %v8319_v6, %v2382_v7  ;;  %v2383_v53 = vmul.f32 %v8313_v57, %v2290_v3  ;;  %v2855_v2 = vsel %vm624_vm3, %v2817_v28, %v2818_v4  ;;  %v8382_v61 = vpack.c.bf16 %v3000_v51, %v3001_v14 }
 0x3cc   : > { %v8384_v23 = vpack.c.bf16 %v2855_v2, %v2856_v59  ;;  %v2999_v10 = vsel %vm791_vm5, %v2961_v40, %v2962_v50 }
 0x3cd   : > { %9821 = vst [vmem:[#allocation30_spill] sm:$0xff] %v8382_v61  ;;  %v2461_v5 = vmax.f32 %v2425_v62, 0.0  ;;  %v2426_v26 = vadd.f32 %v8319_v6, %v2383_v53 }
 0x3ce   : > { %9822 = vst [vmem:[#allocation31_spill] sm:$0xff] %v8384_v23  ;;  %v2117_v32 = vpop.f32.mrb[40].mxu0 }
 0x3cf   : > { %v2819_v63 = vrot.slane %v2461_v5, 7  ;;  %v2963_v29 = vrot.slane %v2461_v5, 1  ;;  %v2462_v19 = vmax.f32 %v2426_v26, 0.0  ;;  %v2295_v35 = vadd.f32 %v8265_v25, %v2117_v32  ;;  %v2119_v49 = vpop.f32.mrb[41].mxu0 }
 0x3d0   : > { %v2120_v7 = vpop.f32.mrb[42].mxu0 }
 0x3d1   : > { %v2820_v3 = vrot.slane %v2462_v19, 7  ;;  %v2964_v28 = vrot.slane %v2462_v19, 1  ;;  %v2384_v14 = vmul.f32 %v8313_v57, %v2295_v35  ;;  %v2298_v58 = vadd.f32 %v8269_v9, %v2120_v7  ;;  %v2122_v59 = vpop.f32.mrb[43].mxu0 }
 0x3d2   : > { %v8392_v51 = vpack.c.bf16 %v2462_v19, %v2461_v5  ;;  %v2854_v40 = vsel %vm624_vm3, %v2818_v4, %v2819_v63  ;;  %v2998_v62 = vsel %vm791_vm5, %v2962_v50, %v2963_v29 }
 0x3d3   : > { %v2427_v53 = vadd.f32 %v8319_v6, %v2384_v14  ;;  %v2385_v25 = vmul.f32 %v8313_v57, %v2298_v58  ;;  %v2853_v2 = vsel %vm624_vm3, %v2819_v63, %v2820_v3  ;;  %v8402_v26 = vpack.c.bf16 %v2998_v62, %v2999_v10  ;;  %v6600_v58 = vld [vmem:[#allocation10 + $0xe0] sm:$0xff]  }
 0x3d4   : > { %v8404_v32 = vpack.c.bf16 %v2853_v2, %v2854_v40  ;;  %v2997_v9 = vsel %vm791_vm5, %v2963_v29, %v2964_v28  ;;  %v6601_v63 = vld [vmem:[#allocation10 + $0xa0] sm:$0xff]   ;;  %5737 = vmatprep.subr.bf16.mxu1 %v6600_v58 }
 0x3d5   : > { %9823 = vst [vmem:[#allocation32_spill] sm:$0xff] %v8402_v26  ;;  %v2463_v5 = vmax.f32 %v2427_v53, 0.0  ;;  %v2428_v4 = vadd.f32 %v8319_v6, %v2385_v25  ;;  %5738 = vmatpush3.bf16.msra.mxu1 %v6601_v63 }
 0x3d6   : > { %9824 = vst [vmem:[#allocation33_spill] sm:$0xff] %v8404_v32  ;;  %v2125_v19 = vpop.f32.mrb[44].mxu0 }
 0x3d7   : > { %v2821_v35 = vrot.slane %v2463_v5, 7  ;;  %v2965_v50 = vrot.slane %v2463_v5, 1  ;;  %v2464_v49 = vmax.f32 %v2428_v4, 0.0  ;;  %v2303_v7 = vadd.f32 %v8263_v12, %v2125_v19  ;;  %v2127_v14 = vpop.f32.mrb[45].mxu0 }
 0x3d8   : > { %v2128_v59 = vpop.f32.mrb[46].mxu0 }
 0x3d9   : > { %v2822_v10 = vrot.slane %v2464_v49, 7  ;;  %v2966_v62 = vrot.slane %v2464_v49, 1  ;;  %v2386_v40 = vmul.f32 %v8313_v57, %v2303_v7  ;;  %v2306_v2 = vadd.f32 %v8267_v46, %v2128_v59  ;;  %v2130_v29 = vpop.f32.mrb[47].mxu0 }
 0x3da   : > { %v8412_v53 = vpack.c.bf16 %v2464_v49, %v2463_v5  ;;  %v2852_v25 = vsel %vm624_vm3, %v2820_v3, %v2821_v35  ;;  %v2996_v12 = vsel %vm791_vm5, %v2964_v28, %v2965_v50 }
 0x3db   : > { %v2429_v4 = vadd.f32 %v8319_v6, %v2386_v40  ;;  %v2387_v19 = vmul.f32 %v8313_v57, %v2306_v2  ;;  %v2851_v7 = vsel %vm624_vm3, %v2821_v35, %v2822_v10  ;;  %v8422_v14 = vpack.c.bf16 %v2996_v12, %v2997_v9 }
 0x3dc   : > { %v8424_v46 = vpack.c.bf16 %v2851_v7, %v2852_v25  ;;  %v2995_v5 = vsel %vm791_vm5, %v2965_v50, %v2966_v62 }
 0x3dd   : > { %9825 = vst [vmem:[#allocation34_spill] sm:$0xff] %v8422_v14  ;;  %v2465_v49 = vmax.f32 %v2429_v4, 0.0  ;;  %v2430_v3 = vadd.f32 %v8319_v6, %v2387_v19 }
 0x3de   : > { %9826 = vst [vmem:[#allocation35_spill] sm:$0xff] %v8424_v46  ;;  %v2133_v58 = vpop.f32.mrb[48].mxu0 }
 0x3df   : > { %v2823_v59 = vrot.slane %v2465_v49, 7  ;;  %v2967_v28 = vrot.slane %v2465_v49, 1  ;;  %v2466_v63 = vmax.f32 %v2430_v3, 0.0  ;;  %v2311_v40 = vadd.f32 %v8273_v48, %v2133_v58  ;;  %v2135_v2 = vpop.f32.mrb[49].mxu0 }
 0x3e0   : > { %v2136_v29 = vpop.f32.mrb[50].mxu0 }
 0x3e1   : > { %v2824_v55 = vrot.slane %v2466_v63, 7  ;;  %v2968_v35 = vrot.slane %v2466_v63, 1  ;;  %v2388_v9 = vmul.f32 %v8313_v57, %v2311_v40  ;;  %v2314_v25 = vadd.f32 %v8277_v41, %v2136_v29  ;;  %v2138_v12 = vpop.f32.mrb[51].mxu0 }
 0x3e2   : > { %v8432_v7 = vpack.c.bf16 %v2466_v63, %v2465_v49  ;;  %v2850_v50 = vsel %vm624_vm3, %v2822_v10, %v2823_v59  ;;  %v2994_v4 = vsel %vm791_vm5, %v2966_v62, %v2967_v28  ;;  %v6602_v12 = vld [vmem:[#allocation10 + $0xe8] sm:$0xff]  }
 0x3e3   : > { %v2431_v19 = vadd.f32 %v8319_v6, %v2388_v9  ;;  %v2389_v48 = vmul.f32 %v8313_v57, %v2314_v25  ;;  %v2849_v3 = vsel %vm624_vm3, %v2823_v59, %v2824_v55  ;;  %v8442_v58 = vpack.c.bf16 %v2994_v4, %v2995_v5  ;;  %v6603_v59 = vld [vmem:[#allocation10 + $0xa8] sm:$0xff]   ;;  %5739 = vmatprep.subr.bf16.mxu1 %v6602_v12 }
 0x3e4   : > { %v8444_v40 = vpack.c.bf16 %v2849_v3, %v2850_v50  ;;  %v2993_v41 = vsel %vm791_vm5, %v2967_v28, %v2968_v35  ;;  %5740 = vmatpush3.bf16.msra.mxu1 %v6603_v59 }
 0x3e5   : > { %9827 = vst [vmem:[#allocation36_spill] sm:$0xff] %v8442_v58  ;;  %v2467_v49 = vmax.f32 %v2431_v19, 0.0  ;;  %v2432_v10 = vadd.f32 %v8319_v6, %v2389_v48 }
 0x3e6   : > { %9828 = vst [vmem:[#allocation37_spill] sm:$0xff] %v8444_v40  ;;  %v2141_v63 = vpop.f32.mrb[52].mxu0 }
 0x3e7   : > { %v2825_v2 = vrot.slane %v2467_v49, 7  ;;  %v2969_v62 = vrot.slane %v2467_v49, 1  ;;  %v2468_v29 = vmax.f32 %v2432_v10, 0.0  ;;  %v2319_v9 = vadd.f32 %v8271_v45, %v2141_v63  ;;  %v2143_v25 = vpop.f32.mrb[53].mxu0 }
 0x3e8   : > { %v2144_v31 = vpop.f32.mrb[54].mxu0 }
 0x3e9   : > { %v2826_v5 = vrot.slane %v2468_v29, 7  ;;  %v2970_v4 = vrot.slane %v2468_v29, 1  ;;  %v2390_v50 = vmul.f32 %v8313_v57, %v2319_v9  ;;  %v2322_v3 = vadd.f32 %v8275_v33, %v2144_v31  ;;  %v2146_v28 = vpop.f32.mrb[55].mxu0 }
 0x3ea   : > { %v8452_v19 = vpack.c.bf16 %v2468_v29, %v2467_v49  ;;  %v2848_v48 = vsel %vm624_vm3, %v2824_v55, %v2825_v2  ;;  %v2992_v45 = vsel %vm791_vm5, %v2968_v35, %v2969_v62 }
 0x3eb   : > { %v2433_v10 = vadd.f32 %v8319_v6, %v2390_v50  ;;  %v2391_v63 = vmul.f32 %v8313_v57, %v2322_v3  ;;  %v2847_v9 = vsel %vm624_vm3, %v2825_v2, %v2826_v5  ;;  %v8462_v25 = vpack.c.bf16 %v2992_v45, %v2993_v41 }
 0x3ec   : > { %v8464_v33 = vpack.c.bf16 %v2847_v9, %v2848_v48  ;;  %v2991_v31 = vsel %vm791_vm5, %v2969_v62, %v2970_v4 }
 0x3ed   : > { %9829 = vst [vmem:[#allocation38_spill] sm:$0xff] %v8462_v25  ;;  %v2469_v49 = vmax.f32 %v2433_v10, 0.0  ;;  %v2434_v55 = vadd.f32 %v8319_v6, %v2391_v63 }
 0x3ee   : > { %9830 = vst [vmem:[#allocation39_spill] sm:$0xff] %v8464_v33  ;;  %v2149_v29 = vpop.f32.mrb[56].mxu0 }
 0x3ef   : > { %v2827_v12 = vrot.slane %v2469_v49, 7  ;;  %v2971_v35 = vrot.slane %v2469_v49, 1  ;;  %v2470_v59 = vmax.f32 %v2434_v55, 0.0  ;;  %v2327_v50 = vadd.f32 %v8281_v56, %v2149_v29  ;;  %v2151_v3 = vpop.f32.mrb[57].mxu0 }
 0x3f0   : > { %v2152_v28 = vpop.f32.mrb[58].mxu0 }
 0x3f1   : > { %v2828_v52 = vrot.slane %v2470_v59, 7  ;;  %v2972_v2 = vrot.slane %v2470_v59, 1  ;;  %v2392_v41 = vmul.f32 %v8313_v57, %v2327_v50  ;;  %v2330_v48 = vadd.f32 %v8285_v42, %v2152_v28  ;;  %v2154_v45 = vpop.f32.mrb[59].mxu0 }
 0x3f2   : > { %v8472_v9 = vpack.c.bf16 %v2470_v59, %v2469_v49  ;;  %v2846_v62 = vsel %vm624_vm3, %v2826_v5, %v2827_v12  ;;  %v2990_v10 = vsel %vm791_vm5, %v2970_v4, %v2971_v35  ;;  %v6604_v45 = vld [vmem:[#allocation10 + $0xf0] sm:$0xff]  }
 0x3f3   : > { %v2435_v63 = vadd.f32 %v8319_v6, %v2392_v41  ;;  %v2393_v56 = vmul.f32 %v8313_v57, %v2330_v48  ;;  %v2845_v55 = vsel %vm624_vm3, %v2827_v12, %v2828_v52  ;;  %v8482_v29 = vpack.c.bf16 %v2990_v10, %v2991_v31  ;;  %v6605_v12 = vld [vmem:[#allocation10 + $0xb0] sm:$0xff]   ;;  %5741 = vmatprep.subr.bf16.mxu1 %v6604_v45 }
 0x3f4   : > { %v8484_v50 = vpack.c.bf16 %v2845_v55, %v2846_v62  ;;  %v2989_v42 = vsel %vm791_vm5, %v2971_v35, %v2972_v2  ;;  %5742 = vmatpush3.bf16.msra.mxu1 %v6605_v12 }
 0x3f5   : > { %9831 = vst [vmem:[#allocation40_spill] sm:$0xff] %v8482_v29  ;;  %v2471_v49 = vmax.f32 %v2435_v63, 0.0  ;;  %v2436_v5 = vadd.f32 %v8319_v6, %v2393_v56 }
 0x3f6   : > { %9832 = vst [vmem:[#allocation41_spill] sm:$0xff] %v8484_v50  ;;  %v2157_v59 = vpop.f32.mrb[60].mxu0 }
 0x3f7   : > { %v2829_v3 = vrot.slane %v2471_v49, 7  ;;  %v2973_v4 = vrot.slane %v2471_v49, 1  ;;  %v2472_v28 = vmax.f32 %v2436_v5, 0.0  ;;  %v2335_v41 = vadd.f32 %v8279_v24, %v2157_v59  ;;  %v2159_v48 = vpop.f32.mrb[61].mxu0 }
 0x3f8   : > { %v2160_v34 = vpop.f32.mrb[62].mxu0 }
 0x3f9   : > { %v2830_v31 = vrot.slane %v2472_v28, 7  ;;  %v2974_v10 = vrot.slane %v2472_v28, 1  ;;  %v2394_v62 = vmul.f32 %v8313_v57, %v2335_v41  ;;  %v2338_v55 = vadd.f32 %v8283_v43, %v2160_v34  ;;  %v2162_v35 = vpop.f32.mrb[63].mxu0 }
 0x3fa   : > { %v8492_v63 = vpack.c.bf16 %v2472_v28, %v2471_v49  ;;  %v2844_v56 = vsel %vm624_vm3, %v2828_v52, %v2829_v3  ;;  %v2988_v24 = vsel %vm791_vm5, %v2972_v2, %v2973_v4 }
 0x3fb   : > { %v2437_v5 = vadd.f32 %v8319_v6, %v2394_v62  ;;  %v2395_v59 = vmul.f32 %v8313_v57, %v2338_v55  ;;  %v2843_v41 = vsel %vm624_vm3, %v2829_v3, %v2830_v31  ;;  %v8502_v48 = vpack.c.bf16 %v2988_v24, %v2989_v42 }
 0x3fc   : > { %v8504_v34 = vpack.c.bf16 %v2843_v41, %v2844_v56  ;;  %v2987_v43 = vsel %vm791_vm5, %v2973_v4, %v2974_v10 }
 0x3fd   : > { %9833 = vst [vmem:[#allocation42_spill] sm:$0xff] %v8502_v48  ;;  %v2473_v49 = vmax.f32 %v2437_v5, 0.0  ;;  %v2438_v52 = vadd.f32 %v8319_v6, %v2395_v59  ;;  %v6607_v48 = vld [vmem:[#allocation10 + $0xb8] sm:$0xff]  }
 0x3fe   : > { %9834 = vst [vmem:[#allocation28_spill] sm:$0xff] %v8504_v34  ;;  %v2165_v28 = vpop.f32.mrb[64].mxu0 }
 0x3ff   : > { %v2831_v45 = vrot.slane %v2473_v49, 7  ;;  %v2975_v2 = vrot.slane %v2473_v49, 1  ;;  %v2474_v12 = vmax.f32 %v2438_v52, 0.0  ;;  %v2343_v62 = vadd.f32 %v8287_v13, %v2165_v28  ;;  %v2167_v55 = vpop.f32.mrb[65].mxu0 }
 0x400   : > { %v2168_v35 = vpop.f32.mrb[66].mxu0 }
 0x401   : > { %v2832_v29 = vrot.slane %v2474_v12, 7  ;;  %v2976_v3 = vrot.slane %v2474_v12, 1  ;;  %v2396_v42 = vmul.f32 %v8313_v57, %v2343_v62  ;;  %v2346_v56 = vadd.f32 %v8289_v17, %v2168_v35  ;;  %v2170_v24 = vpop.f32.mrb[67].mxu0 }
 0x402   : > { %v8512_v41 = vpack.c.bf16 %v2474_v12, %v2473_v49  ;;  %v2842_v4 = vsel %vm624_vm3, %v2830_v31, %v2831_v45  ;;  %v2986_v5 = vsel %vm791_vm5, %v2974_v10, %v2975_v2 }
 0x403   : > { %v2439_v59 = vadd.f32 %v8319_v6, %v2396_v42  ;;  %v2397_v13 = vmul.f32 %v8313_v57, %v2346_v56  ;;  %v2841_v52 = vsel %vm624_vm3, %v2831_v45, %v2832_v29  ;;  %v8522_v28 = vpack.c.bf16 %v2986_v5, %v2987_v43  ;;  %v6606_v56 = vld [vmem:[#allocation10 + $0xf8] sm:$0xff]  }
 0x404   : > { %v8524_v62 = vpack.c.bf16 %v2841_v52, %v2842_v4  ;;  %v2985_v17 = vsel %vm791_vm5, %v2975_v2, %v2976_v3  ;;  %5743 = vmatprep.subr.bf16.mxu1 %v6606_v56 }
 0x405   : > { %9835 = vst [vmem:[#allocation27_spill] sm:$0xff] %v8522_v28  ;;  %v2475_v49 = vmax.f32 %v2439_v59, 0.0  ;;  %v2440_v31 = vadd.f32 %v8319_v6, %v2397_v13  ;;  %5744 = vmatpush3.bf16.msra.mxu1 %v6607_v48 }
 0x406   : > { %9836 = vst [vmem:[#allocation44_spill] sm:$0xff] %v8524_v62  ;;  %v2173_v12 = vpop.f32.mrb[92].mxu0 }
 0x407   : > { %v2833_v55 = vrot.slane %v2475_v49, 7  ;;  %v2977_v10 = vrot.slane %v2475_v49, 1  ;;  %v8529_v35 = vmax.f32 %v2440_v31, 0.0  ;;  %v2175_v42 = vpop.f32.mrb[93].mxu0 }
 0x408   : > { %v2176_v24 = vpop.f32.mrb[94].mxu0 }
 0x409   : > { %9837 = vst [vmem:[#allocation45_spill] sm:$0xff] %v8529_v35  ;;  %v9703_v43 = vrot.slane %v8529_v35, 7  ;;  %v2978_v45 = vrot.slane %v8529_v35, 1  ;;  %v2178_v4 = vpop.f32.mrb[95].mxu0  ;;  %v2840_v2 = vsel %vm624_vm3, %v2832_v29, %v2833_v55  ;;  %v2984_v5 = vsel %vm791_vm5, %v2976_v3, %v2977_v10 }
 0x40a   : > { %v8537_v59 = vpack.c.bf16 %v2984_v5, %v2985_v17  ;;  %v8540_v13 = vpack.c.bf16 %v8529_v35, %v2475_v49 }
 0x40b   : > { %v2839_v52 = vsel %vm624_vm3, %v2833_v55, %v9703_v43  ;;  %v2982_v31 = vsel %vm791_vm5, %v2978_v45, %v7717_v47  ;;  %v2983_v29 = vsel %vm791_vm5, %v2977_v10, %v2978_v45 }
 0x40c   : > { %9838 = vst [vmem:[#allocation46_spill] sm:$0xff] %v8537_v59  ;;  %9839 = vst [vmem:[#allocation47_spill] sm:$0xff] %v8540_v13  ;;  %v8551_v12 = vpack.c.bf16 %v2839_v52, %v2840_v2  ;;  %v8553_v48 = vpack.c.bf16 %v2982_v31, %v2983_v29 }
 0x40e   : > { %9840 = vst [vmem:[#allocation48_spill] sm:$0xff] %v8551_v12  ;;  %9841 = vst [vmem:[#allocation49_spill] sm:$0xff] %v8553_v48  ;;  %v6107_v3 = vpop.f32.mrb[4].mxu0 }
 0x40f   : > { %v2366_v17 = vmul.f32 %v6107_v3, %v8313_v57  ;;  %v2214_v49 = vpop.f32.mrb[5].mxu0 }
 0x410   : > { %v6108_v42 = vpop.f32.mrb[6].mxu0  ;;  %v6608_v49 = vld [vmem:[#allocation10 + $0x140] sm:$0xff]  }
 0x411   : > { %v2409_v56 = vadd.f32 %v8319_v6, %v2366_v17  ;;  %v2367_v55 = vmul.f32 %v6108_v42, %v8313_v57  ;;  %v2217_v24 = vpop.f32.mrb[7].mxu0  ;;  %5841 = vmatprep.subr.bf16.mxu1 %v6608_v49 }
 0x413   : > { %v8558_v4 = vmax.f32 %v2409_v56, 0.0  ;;  %v2410_v5 = vadd.f32 %v8319_v6, %v2367_v55 }
 0x415   : > { %v2803_v10 = vrot.slane %v8558_v4, 7  ;;  %v8562_v45 = vmax.f32 %v2410_v5, 0.0 }
 0x416   : > { %v6111_v2 = vpop.f32.mrb[96].mxu0 }
 0x417   : > { %v2804_v31 = vrot.slane %v8562_v45, 7  ;;  %v9705_v29 = vrot.slane %v8562_v45, 1  ;;  %v2239_v3 = vadd.f32 %v6111_v2, %v8298_v15  ;;  %v2230_v17 = vpop.f32.mrb[97].mxu0  ;;  %v8571_v55 = vpack.c.bf16 %v8562_v45, %v8558_v4 }
 0x418   : > { %v2231_v42 = vadd.f32 %v2230_v17, %v8291_v38  ;;  %v6112_v56 = vpop.f32.mrb[98].mxu0  ;;  %v2870_v24 = vsel %vm624_vm3, %v7304_v20, %v2803_v10  ;;  %v9843_v38 = vrot.slane %v8558_v4, 1 }
 0x419   : > { %9842 = vst [vmem:[#allocation50_spill] sm:$0xff] %v8571_v55  ;;  %v2370_v5 = vmul.f32 %v8313_v57, %v2239_v3  ;;  %v2242_v43 = vadd.f32 %v6112_v56, %v8300_v44  ;;  %v2233_v52 = vpop.f32.mrb[99].mxu0  ;;  %v2869_v15 = vsel %vm624_vm3, %v2803_v10, %v2804_v31  ;;  %3687 = vmatprep.mubr.bf16.mxu1 %v8571_v55 }
 0x41a   : > { %v3013_v2 = vsel %vm791_vm5, %v9843_v38, %v9705_v29  ;;  %v2368_v17 = vmul.f32 %v8313_v57, %v2231_v42  ;;  %v2234_v35 = vadd.f32 %v2233_v52, %v8293_v60  ;;  %v8589_v3 = vpack.c.bf16 %v2869_v15, %v2870_v24 }
 0x41b   : > { %v2413_v44 = vadd.f32 %v8319_v6, %v2370_v5  ;;  %v2371_v10 = vmul.f32 %v8313_v57, %v2242_v43 }
 0x41c   : > { %v2411_v49 = vadd.f32 %v8319_v6, %v2368_v17  ;;  %v2369_v56 = vmul.f32 %v8313_v57, %v2234_v35  ;;  %5295 = vmatmul.mubr.msk.bf16.gmra.mrb[28].mxu1 %vm7308_vm2, %v8589_v3 }
 0x41d   : > { %v8598_v38 = vmax.f32 %v2413_v44, 0.0  ;;  %v2414_v60 = vadd.f32 %v8319_v6, %v2371_v10 }
 0x41e   : > { %v2447_v52 = vmax.f32 %v2411_v49, 0.0  ;;  %v2412_v42 = vadd.f32 %v8319_v6, %v2369_v56  ;;  %v6115_v24 = vpop.f32.mrb[100].mxu0 }
 0x41f   : > { %v2807_v5 = vrot.slane %v8598_v38, 7  ;;  %v8604_v15 = vmax.f32 %v2414_v60, 0.0  ;;  %v2255_v35 = vadd.f32 %v6115_v24, %v8306_v54  ;;  %v2246_v17 = vpop.f32.mrb[101].mxu0 }
 0x420   : > { %v2805_v29 = vrot.slane %v2447_v52, 7  ;;  %v2949_v20 = vrot.slane %v2447_v52, 1  ;;  %v2448_v13 = vmax.f32 %v2412_v42, 0.0  ;;  %v2247_v44 = vadd.f32 %v2246_v17, %v8302_v8  ;;  %v6116_v48 = vpop.f32.mrb[102].mxu0 }
 0x421   : > { %v2808_v10 = vrot.slane %v8604_v15, 7  ;;  %v2952_v49 = vrot.slane %v8604_v15, 1  ;;  %v2374_v56 = vmul.f32 %v8313_v57, %v2255_v35  ;;  %v2258_v55 = vadd.f32 %v6116_v48, %v8308_v39  ;;  %v2249_v43 = vpop.f32.mrb[103].mxu0 }
 0x422   : > { %v2806_v60 = vrot.slane %v2448_v13, 7  ;;  %v2950_v59 = vrot.slane %v2448_v13, 1  ;;  %v2372_v54 = vmul.f32 %v8313_v57, %v2247_v44  ;;  %v2250_v24 = vadd.f32 %v2249_v43, %v8304_v27 }
 0x423   : > { %v2417_v42 = vadd.f32 %v8319_v6, %v2374_v56  ;;  %v2375_v8 = vmul.f32 %v8313_v57, %v2258_v55  ;;  %v8616_v17 = vpack.c.bf16 %v2448_v13, %v2447_v52  ;;  %v2868_v12 = vsel %vm624_vm3, %v2804_v31, %v2805_v29 }
 0x424   : > { %v2415_v35 = vadd.f32 %v8319_v6, %v2372_v54  ;;  %v2373_v39 = vmul.f32 %v8313_v57, %v2250_v24  ;;  %v2867_v48 = vsel %vm624_vm3, %v2805_v29, %v2806_v60  ;;  %v8626_v44 = vpack.c.bf16 %v8604_v15, %v8598_v38 }
 0x425   : > { %v2453_v27 = vmax.f32 %v2417_v42, 0.0  ;;  %v2418_v43 = vadd.f32 %v8319_v6, %v2375_v8  ;;  %3695 = vmatprep.mubr.bf16.mxu1 %v8616_v17  ;;  %v8630_v13 = vpack.c.bf16 %v2867_v48, %v2868_v12  ;;  %v2865_v31 = vsel %vm624_vm3, %v2807_v5, %v2808_v10 }
 0x426   : > { %9844 = vst [vmem:[#allocation51_spill] sm:$0xff] %v8626_v44  ;;  %v2451_v55 = vmax.f32 %v2415_v35, 0.0  ;;  %v2416_v57 = vadd.f32 %v8319_v6, %v2373_v39  ;;  %v2866_v29 = vsel %vm624_vm3, %v2806_v60, %v2807_v5  ;;  %v9845_v52 = vrot.slane %v8562_v45, 1 }
 0x427   : > { %v2811_v56 = vrot.slane %v2453_v27, 7  ;;  %v2955_v54 = vrot.slane %v2453_v27, 1  ;;  %v2454_v24 = vmax.f32 %v2418_v43, 0.0  ;;  %5298 = vmatmul.mubr.msk.bf16.gmra.mrb[32].mxu1 %vm7308_vm2, %v8630_v13  ;;  %v8644_v12 = vpack.c.bf16 %v2865_v31, %v2866_v29 }
 0x428   : > { %v3012_v15 = vsel %vm791_vm5, %v9845_v52, %v2949_v20  ;;  %v2809_v42 = vrot.slane %v2451_v55, 7  ;;  %v2953_v8 = vrot.slane %v2451_v55, 1  ;;  %v2452_v6 = vmax.f32 %v2416_v57, 0.0  ;;  %3703 = vmatprep.mubr.bf16.mxu1 %v8626_v44 }
 0x429   : > { %v8647_v5 = vpack.c.bf16 %v3012_v15, %v3013_v2  ;;  %v2812_v45 = vrot.slane %v2454_v24, 7  ;;  %v2956_v60 = vrot.slane %v2454_v24, 1  ;;  %v8649_v35 = vpack.c.bf16 %v2454_v24, %v2453_v27 }
 0x42a   : > { %v9846_v39 = vrot.slane %v8598_v38, 1  ;;  %v2810_v43 = vrot.slane %v2452_v6, 7  ;;  %v2954_v52 = vrot.slane %v2452_v6, 1  ;;  %v8655_v31 = vpack.c.bf16 %v2452_v6, %v2451_v55 }
 0x42b   : > { %v2864_v57 = vsel %vm624_vm3, %v2808_v10, %v2809_v42  ;;  %v2861_v2 = vsel %vm624_vm3, %v2811_v56, %v2812_v45  ;;  %v9847_v29 = vrot.slane %v8325_v18, 7  ;;  %v3011_v15 = vsel %vm791_vm5, %v2949_v20, %v2950_v59 }
 0x42c   : > { %v3010_v48 = vsel %vm791_vm5, %v2950_v59, %v9846_v39  ;;  %v3008_v24 = vsel %vm791_vm5, %v2952_v49, %v2953_v8  ;;  %v2863_v55 = vsel %vm624_vm3, %v2809_v42, %v2810_v43  ;;  %v2862_v10 = vsel %vm624_vm3, %v2810_v43, %v2811_v56 }
 0x42d   : > { %v2860_v27 = vsel %vm624_vm3, %v2812_v45, %v9847_v29  ;;  %v8676_v39 = vpack.c.bf16 %v3010_v48, %v3011_v15  ;;  %v8678_v44 = vpack.c.bf16 %v2863_v55, %v2864_v57  ;;  %v8680_v45 = vpack.c.bf16 %v2861_v2, %v2862_v10  ;;  %v6609_v15 = vld [vmem:[#allocation10 + $0x100] sm:$0xff]   ;;  %v6610_v55 = vld [vmem:[#allocation10 + $0x148] sm:$0xff]  }
 0x42e   : > { %v8674_v6 = vpack.c.bf16 %v8342_v11, %v2860_v27  ;;  %v9849_v20 = vrot.slane %v8598_v38, 1  ;;  %v3006_v42 = vsel %vm791_vm5, %v2954_v52, %v2955_v54  ;;  %v3007_v11 = vsel %vm791_vm5, %v2953_v8, %v2954_v52  ;;  %v6611_v10 = vld [vmem:[#allocation10 + $0x108] sm:$0xff]  }
 0x42f   : > { %9848 = vst [vmem:[#allocation52_spill] sm:$0xff] %v8676_v39  ;;  %v9851_v56 = vrot.slane %v8325_v18, 1  ;;  %v3005_v43 = vsel %vm791_vm5, %v2955_v54, %v2956_v60  ;;  %5301 = vmatmul.mubr.msk.bf16.gmra.mrb[36].mxu1 %vm7308_vm2, %v8644_v12  ;;  %v8701_v38 = vpack.c.bf16 %v3006_v42, %v3007_v11  ;;  %v9854_v2 = vrot.slane %v8558_v4, 1  ;;  %v6613_v4 = vld [vmem:[#allocation10 + $0x110] sm:$0xff]   ;;  %v6617_v42 = vld [vmem:[#allocation10 + $0x120] sm:$0xff]   ;;  %v6618_v11 = vld [vmem:[#allocation10 + $0x168] sm:$0xff]  }
 0x430   : > { %v3009_v59 = vsel %vm791_vm5, %v9849_v20, %v2952_v49  ;;  %3711 = vmatprep.mubr.bf16.mxu1 %v8655_v31  ;;  %v6614_v20 = vld [vmem:[#allocation10 + $0x158] sm:$0xff]  }
 0x431   : > { %v8688_v29 = vpack.c.bf16 %v3008_v24, %v3009_v59  ;;  %v3004_v48 = vsel %vm791_vm5, %v2956_v60, %v9851_v56  ;;  %9852 = vst [vmem:[#allocation54_spill] sm:$0xff] %v8701_v38  ;;  %v3014_v27 = vsel %vm791_vm5, %v7717_v47, %v9854_v2  ;;  %v6616_v59 = vld [vmem:[#allocation10 + $0x160] sm:$0xff]   ;;  %v6619_v56 = vld [vmem:[#allocation10 + $0x128] sm:$0xff]  }
 0x432   : > { %v8703_v49 = vpack.c.bf16 %v3004_v48, %v3005_v43  ;;  %v5342_v24 = vpack.c.bf16 %v3014_v27, %v7717_v47  ;;  %v6615_v47 = vld [vmem:[#allocation10 + $0x118] sm:$0xff]   ;;  %v6620_v48 = vld [vmem:[#allocation10 + $0x170] sm:$0xff]  }
 0x433   : > { %9850 = vst [vmem:[#allocation53_spill] sm:$0xff] %v8688_v29  ;;  %v6621_v43 = vld [vmem:[#allocation10 + $0x130] sm:$0xff]  }
 0x434   : > { %9853 = vst [vmem:[#allocation55_spill] sm:$0xff] %v8703_v49 }
 0x437   : > { %5304 = vmatmul.mubr.msk.bf16.gmra.mrb[40].mxu1 %vm7308_vm2, %v8678_v44 }
 0x438   : > { %3719 = vmatprep.mubr.bf16.mxu1 %v8649_v35 }
 0x43f   : > { %5307 = vmatmul.mubr.msk.bf16.gmra.mrb[44].mxu1 %vm7308_vm2, %v8680_v45  ;;  %v5633_v18 = vpop.f32.mrb[24].mxu1 }
 0x440   : > { %3727 = vmatprep.mubr.bf16.mxu1 %v8334_v36  ;;  %v5634_v54 = vpop.f32.mrb[25].mxu1 }
 0x441   : > { %v8734_v8 = vadd.f32 %v5634_v54, %v5633_v18  ;;  %v5636_v60 = vpop.f32.mrb[26].mxu1  ;;  %v6622_v18 = vld [vmem:[#allocation10 + $0x178] sm:$0xff]  }
 0x442   : > { %v5637_v52 = vpop.f32.mrb[27].mxu1  ;;  %v6623_v54 = vld [vmem:[#allocation10 + $0x138] sm:$0xff]  }
 0x443   : > { %v8736_v57 = vadd.f32 %v5637_v52, %v5636_v60  ;;  %v6624_v60 = vld [vmem:[#allocation10 + $0x1c0] sm:$0xff]  }
 0x447   : > { %5310 = vmatmul.mubr.msk.bf16.gmra.mrb[48].mxu1 %vm7308_vm2, %v8674_v6 }
 0x448   : > { %3735 = vmatprep.mubr.bf16.mxu1 %v8352_v0 }
 0x44f   : > { %5313 = vmatmul.mubr.msk.bf16.gmra.mrb[52].mxu1 %vm7308_vm2, %v8364_v21 }
 0x450   : > { %3743 = vmatprep.mubr.bf16.mxu1 %v8372_v30 }
 0x457   : > { %5316 = vmatmul.mubr.msk.bf16.gmra.mrb[56].mxu1 %vm7308_vm2, %v8384_v23 }
 0x458   : > { %3751 = vmatprep.mubr.bf16.mxu1 %v8392_v51 }
 0x45f   : > { %5319 = vmatmul.mubr.msk.bf16.gmra.mrb[60].mxu1 %vm7308_vm2, %v8404_v32 }
 0x460   : > { %3759 = vmatprep.mubr.bf16.mxu1 %v8412_v53 }
 0x467   : > { %5322 = vmatmul.mubr.msk.bf16.gmra.mrb[64].mxu1 %vm7308_vm2, %v8424_v46 }
 0x468   : > { %3767 = vmatprep.mubr.bf16.mxu1 %v8432_v7 }
 0x46f   : > { %5325 = vmatmul.mubr.msk.bf16.gmra.mrb[68].mxu1 %vm7308_vm2, %v8444_v40 }
 0x470   : > { %3775 = vmatprep.mubr.bf16.mxu1 %v8452_v19 }
 0x477   : > { %5328 = vmatmul.mubr.msk.bf16.gmra.mrb[72].mxu1 %vm7308_vm2, %v8464_v33 }
 0x478   : > { %3783 = vmatprep.mubr.bf16.mxu1 %v8472_v9 }
 0x47f   : > { %5331 = vmatmul.mubr.msk.bf16.gmra.mrb[76].mxu1 %vm7308_vm2, %v8484_v50 }
 0x480   : > { %3791 = vmatprep.mubr.bf16.mxu1 %v8492_v63 }
 0x487   : > { %5334 = vmatmul.mubr.msk.bf16.gmra.mrb[80].mxu1 %vm7308_vm2, %v8504_v34 }
 0x488   : > { %3799 = vmatprep.mubr.bf16.mxu1 %v8512_v41 }
 0x48f   : > { %5337 = vmatmul.mubr.msk.bf16.gmra.mrb[84].mxu1 %vm7308_vm2, %v8524_v62 }
 0x490   : > { %5340 = vmatprep.mubr.msk.bf16.mxu1 %vm7308_vm2, %v8589_v3  ;;  %v6612_v3 = vld [vmem:[#allocation10 + $0x150] sm:$0xff]  }
 0x497   : > { %5343 = vmatmul.mubr.msk.bf16.vlgmr.msra.gmra.mrb[88].mxu1 %vm7557_vm6, %v5342_v24 }
 0x498   : > { %5346 = vmatprep.mubr.msk.bf16.mxu1 %vm7308_vm2, %v8630_v13  ;;  %5842 = vmatpush3.bf16.msra.mxu1 %v6609_v15 }
 0x499   : > { %5843 = vmatprep.subr.bf16.mxu1 %v6610_v55 }
 0x49c   : > { %5844 = vmatpush3.bf16.msra.mxu1 %v6611_v10  ;;  %v9855_v10 = vld [vmem:[#allocation40_spill] sm:$0xff] }
 0x49d   : > { %5845 = vmatprep.subr.bf16.mxu1 %v6612_v3 }
 0x49f   : > { %5349 = vmatmul.mubr.msk.bf16.gmra.mrb[92].mxu1 %vm7557_vm6, %v8647_v5 }
 0x4a0   : > { %5352 = vmatprep.mubr.msk.bf16.mxu1 %vm7308_vm2, %v8644_v12  ;;  %5846 = vmatpush3.bf16.msra.mxu1 %v6613_v4 }
 0x4a1   : > { %5847 = vmatprep.subr.bf16.mxu1 %v6614_v20 }
 0x4a4   : > { %5848 = vmatpush3.bf16.msra.mxu1 %v6615_v47 }
 0x4a5   : > { %5849 = vmatprep.subr.bf16.mxu1 %v6616_v59 }
 0x4a7   : > { %5355 = vmatmul.mubr.msk.bf16.gmra.mrb[96].mxu1 %vm7557_vm6, %v8676_v39 }
 0x4a8   : > { %5358 = vmatprep.mubr.msk.bf16.mxu1 %vm7308_vm2, %v8678_v44  ;;  %5850 = vmatpush3.bf16.msra.mxu1 %v6617_v42 }
 0x4a9   : > { %5851 = vmatprep.subr.bf16.mxu1 %v6618_v11  ;;  %v9856_v11 = vld [vmem:[#allocation42_spill] sm:$0xff] }
 0x4ac   : > { %5852 = vmatpush3.bf16.msra.mxu1 %v6619_v56 }
 0x4ad   : > { %5853 = vmatprep.subr.bf16.mxu1 %v6620_v48 }
 0x4af   : > { %5361 = vmatmul.mubr.msk.bf16.gmra.mrb[100].mxu1 %vm7557_vm6, %v8688_v29 }
 0x4b0   : > { %5364 = vmatprep.mubr.msk.bf16.mxu1 %vm7308_vm2, %v8680_v45  ;;  %5854 = vmatpush3.bf16.msra.mxu1 %v6621_v43 }
 0x4b1   : > { %5855 = vmatprep.subr.bf16.mxu1 %v6622_v18 }
 0x4b4   : > { %5856 = vmatpush3.bf16.msra.mxu1 %v6623_v54 }
 0x4b5   : > { %5953 = vmatprep.subr.bf16.mxu1 %v6624_v60 }
 0x4b7   : > { %5367 = vmatmul.mubr.msk.bf16.gmra.mrb[104].mxu1 %vm7557_vm6, %v8701_v38 }
 0x4b8   : > { %5370 = vmatprep.mubr.msk.bf16.mxu1 %vm7308_vm2, %v8674_v6 }
 0x4bf   : > { %5373 = vmatmul.mubr.msk.bf16.gmra.mrb[108].mxu1 %vm7557_vm6, %v8703_v49 }
 0x4c0   : > { %5376 = vmatprep.mubr.msk.bf16.mxu1 %vm7308_vm2, %v8364_v21 }
 0x4c7   : > { %5379 = vmatmul.mubr.msk.bf16.gmra.mrb[112].mxu1 %vm7557_vm6, %v8362_v1 }
 0x4c8   : > { %5382 = vmatprep.mubr.msk.bf16.mxu1 %vm7308_vm2, %v8384_v23 }
 0x4cf   : > { %5385 = vmatmul.mubr.msk.bf16.gmra.mrb[116].mxu1 %vm7557_vm6, %v8382_v61 }
 0x4d0   : > { %5388 = vmatprep.mubr.msk.bf16.mxu1 %vm7308_vm2, %v8404_v32 }
 0x4d7   : > { %5391 = vmatmul.mubr.msk.bf16.gmra.mrb[120].mxu1 %vm7557_vm6, %v8402_v26 }
 0x4d8   : > { %5394 = vmatprep.mubr.msk.bf16.mxu1 %vm7308_vm2, %v8424_v46 }
 0x4df   : > { %5397 = vmatmul.mubr.msk.bf16.gmra.mrb[124].mxu1 %vm7557_vm6, %v8422_v14 }
 0x4e0   : > { %5400 = vmatprep.mubr.msk.bf16.mxu1 %vm7308_vm2, %v8444_v40  ;;  %v9860_v40 = vld [vmem:[#allocation51_spill] sm:$0xff] }
 0x4e7   : > { %5403 = vmatmul.mubr.msk.bf16.gmra.mrb[128].mxu1 %vm7557_vm6, %v8442_v58 }
 0x4e8   : > { %5406 = vmatprep.mubr.msk.bf16.mxu1 %vm7308_vm2, %v8464_v33 }
 0x4ef   : > { %v5639_v52 = vpop.f32.mrb[28].mxu1  ;;  %5409 = vmatmul.mubr.msk.bf16.gmra.mrb[132].mxu1 %vm7557_vm6, %v8462_v25 }
 0x4f0   : > { %v5640_v2 = vpop.f32.mrb[29].mxu1  ;;  %5412 = vmatprep.mubr.msk.bf16.mxu1 %vm7308_vm2, %v8484_v50  ;;  %v6629_v50 = vld [vmem:[#allocation10 + $0x190] sm:$0xff]  }
 0x4f1   : > { %v8837_v27 = vadd.f32 %v5640_v2, %v5639_v52  ;;  %v5642_v15 = vpop.f32.mrb[30].mxu1  ;;  %v9857_v52 = vld [vmem:[#allocation48_spill] sm:$0xff] }
 0x4f2   : > { %v5643_v24 = vpop.f32.mrb[31].mxu1 }
 0x4f3   : > { %v8839_v55 = vadd.f32 %v5643_v24, %v5642_v15 }
 0x4f7   : > { %5415 = vmatmul.mubr.msk.bf16.gmra.mrb[136].mxu1 %vm7557_vm6, %v9855_v10 }
 0x4f8   : > { %5418 = vmatprep.mubr.msk.bf16.mxu1 %vm7308_vm2, %v8504_v34 }
 0x4fa   : > { %v5645_v3 = vpop.f32.mrb[32].mxu1 }
 0x4fb   : > { %v5646_v4 = vpop.f32.mrb[33].mxu1 }
 0x4fc   : > { %v8847_v20 = vadd.f32 %v5646_v4, %v5645_v3  ;;  %v5648_v47 = vpop.f32.mrb[34].mxu1 }
 0x4fd   : > { %v5649_v59 = vpop.f32.mrb[35].mxu1 }
 0x4fe   : > { %v8849_v42 = vadd.f32 %v5649_v59, %v5648_v47  ;;  %v9858_v59 = vld [vmem:[#allocation46_spill] sm:$0xff] }
 0x4ff   : > { %5421 = vmatmul.mubr.msk.bf16.gmra.mrb[140].mxu1 %vm7557_vm6, %v9856_v11 }
 0x500   : > { %5424 = vmatprep.mubr.msk.bf16.mxu1 %vm7308_vm2, %v8524_v62 }
 0x502   : > { %v5651_v56 = vpop.f32.mrb[36].mxu1 }
 0x503   : > { %v5652_v48 = vpop.f32.mrb[37].mxu1 }
 0x504   : > { %v8857_v43 = vadd.f32 %v5652_v48, %v5651_v56  ;;  %v5654_v18 = vpop.f32.mrb[38].mxu1 }
 0x505   : > { %v5655_v54 = vpop.f32.mrb[39].mxu1 }
 0x506   : > { %v8859_v60 = vadd.f32 %v5655_v54, %v5654_v18 }
 0x507   : > { %5427 = vmatmul.mubr.msk.bf16.gmra.mrb[144].mxu1 %vm7557_vm6, %v8522_v28 }
 0x508   : > { %5430 = vmatprep.mubr.msk.bf16.mxu1 %vm7308_vm2, %v9857_v52 }
 0x50a   : > { %v5657_v2 = vpop.f32.mrb[40].mxu1 }
 0x50b   : > { %v5658_v15 = vpop.f32.mrb[41].mxu1 }
 0x50c   : > { %v8867_v24 = vadd.f32 %v5658_v15, %v5657_v2  ;;  %v5660_v3 = vpop.f32.mrb[42].mxu1  ;;  %v6626_v15 = vld [vmem:[#allocation10 + $0x1c8] sm:$0xff]  }
 0x50d   : > { %v5661_v4 = vpop.f32.mrb[43].mxu1 }
 0x50e   : > { %v8869_v47 = vadd.f32 %v5661_v4, %v5660_v3  ;;  %v9859_v3 = vld [vmem:[#allocation50_spill] sm:$0xff] }
 0x50f   : > { %5433 = vmatmul.mubr.msk.bf16.gmra.mrb[148].mxu1 %vm7557_vm6, %v9858_v59  ;;  %v6627_v4 = vld [vmem:[#allocation10 + $0x188] sm:$0xff]  }
 0x510   : > { %5436 = vmatprep.mubr.msk.bf16.mxu1 %vm7557_vm6, %v8647_v5  ;;  %v6628_v5 = vld [vmem:[#allocation10 + $0x1d0] sm:$0xff]  }
 0x512   : > { %v5663_v56 = vpop.f32.mrb[44].mxu1 }
 0x513   : > { %v5664_v48 = vpop.f32.mrb[45].mxu1 }
 0x514   : > { %v8877_v18 = vadd.f32 %v5664_v48, %v5663_v56  ;;  %v5666_v54 = vpop.f32.mrb[46].mxu1 }
 0x515   : > { %v5667_v2 = vpop.f32.mrb[47].mxu1 }
 0x516   : > { %v8879_v52 = vadd.f32 %v5667_v2, %v5666_v54  ;;  %v6630_v54 = vld [vmem:[#allocation10 + $0x1d8] sm:$0xff]  }
 0x517   : > { %4002 = vmatmul.mubr.bf16.vlgmr.msra.gmra.mrb[152].mxu1 %v9859_v3 }
 0x518   : > { %5439 = vmatprep.mubr.msk.bf16.mxu1 %vm7557_vm6, %v8676_v39  ;;  %5954 = vmatpush3.bf16.msra.mxu1 %v6625_v16  ;;  %v6631_v16 = vld [vmem:[#allocation10 + $0x198] sm:$0xff]  }
 0x519   : > { %5955 = vmatprep.subr.bf16.mxu1 %v6626_v15  ;;  %v6632_v15 = vld [vmem:[#allocation10 + $0x1e0] sm:$0xff]  }
 0x51a   : > { %v5669_v62 = vpop.f32.mrb[48].mxu1 }
 0x51b   : > { %v5670_v34 = vpop.f32.mrb[49].mxu1 }
 0x51c   : > { %v8885_v56 = vadd.f32 %v5670_v34, %v5669_v62  ;;  %v5672_v48 = vpop.f32.mrb[50].mxu1  ;;  %5956 = vmatpush3.bf16.msra.mxu1 %v6627_v4 }
 0x51d   : > { %v5673_v33 = vpop.f32.mrb[51].mxu1  ;;  %5957 = vmatprep.subr.bf16.mxu1 %v6628_v5  ;;  %v6633_v5 = vld [vmem:[#allocation10 + $0x1a0] sm:$0xff]  }
 0x51e   : > { %v8887_v2 = vadd.f32 %v5673_v33, %v5672_v48  ;;  %v6634_v33 = vld [vmem:[#allocation10 + $0x1e8] sm:$0xff]  }
 0x51f   : > { %4010 = vmatmul.mubr.bf16.gmra.mrb[156].mxu1 %v8616_v17 }
 0x520   : > { %5442 = vmatprep.mubr.msk.bf16.mxu1 %vm7557_vm6, %v8688_v29  ;;  %5958 = vmatpush3.bf16.msra.mxu1 %v6629_v50  ;;  %v6635_v50 = vld [vmem:[#allocation10 + $0x1a8] sm:$0xff]  }
 0x521   : > { %5959 = vmatprep.subr.bf16.mxu1 %v6630_v54  ;;  %v6636_v54 = vld [vmem:[#allocation10 + $0x1f0] sm:$0xff]  }
 0x522   : > { %v5675_v34 = vpop.f32.mrb[52].mxu1 }
 0x523   : > { %v5676_v62 = vpop.f32.mrb[53].mxu1 }
 0x524   : > { %v8893_v3 = vadd.f32 %v5676_v62, %v5675_v34  ;;  %v5678_v4 = vpop.f32.mrb[54].mxu1  ;;  %5960 = vmatpush3.bf16.msra.mxu1 %v6631_v16 }
 0x525   : > { %v5679_v39 = vpop.f32.mrb[55].mxu1  ;;  %5961 = vmatprep.subr.bf16.mxu1 %v6632_v15  ;;  %v6637_v15 = vld [vmem:[#allocation10 + $0x1b0] sm:$0xff]  }
 0x526   : > { %v8895_v48 = vadd.f32 %v5679_v39, %v5678_v4  ;;  %v6638_v39 = vld [vmem:[#allocation10 + $0x1f8] sm:$0xff]  }
 0x527   : > { %4018 = vmatmul.mubr.bf16.gmra.mrb[160].mxu1 %v9860_v40 }
 0x528   : > { %5445 = vmatprep.mubr.msk.bf16.mxu1 %vm7557_vm6, %v8701_v38  ;;  %5962 = vmatpush3.bf16.msra.mxu1 %v6633_v5  ;;  %v6639_v5 = vld [vmem:[#allocation10 + $0x1b8] sm:$0xff]  }
 0x529   : > { %5963 = vmatprep.subr.bf16.mxu1 %v6634_v33  ;;  %v8909_v33 = vld [vmem:[#allocation10 + $0x200] sm:$0xff]  }
 0x52a   : > { %v5681_v34 = vpop.f32.mrb[56].mxu1 }
 0x52b   : > { %v5682_v62 = vpop.f32.mrb[57].mxu1 }
 0x52c   : > { %v8901_v29 = vadd.f32 %v5682_v62, %v5681_v34  ;;  %v5684_v16 = vpop.f32.mrb[58].mxu1  ;;  %5964 = vmatpush3.bf16.msra.mxu1 %v6635_v50 }
 0x52d   : > { %v5685_v46 = vpop.f32.mrb[59].mxu1  ;;  %5965 = vmatprep.subr.bf16.mxu1 %v6636_v54 }
 0x52e   : > { %v8903_v4 = vadd.f32 %v5685_v46, %v5684_v16 }
 0x52f   : > { %4026 = vmatmul.mubr.bf16.gmra.mrb[164].mxu1 %v8655_v31 }
 0x530   : > { %5448 = vmatprep.mubr.msk.bf16.mxu1 %vm7557_vm6, %v8703_v49  ;;  %5966 = vmatpush3.bf16.msra.mxu1 %v6637_v15 }
 0x531   : > { %5967 = vmatprep.subr.bf16.mxu1 %v6638_v39 }
 0x532   : > { %v5687_v34 = vpop.f32.mrb[60].mxu1 }
 0x533   : > { %v5688_v62 = vpop.f32.mrb[61].mxu1 }
 0x534   : > { %v8911_v50 = vadd.f32 %v5688_v62, %v5687_v34  ;;  %v5690_v38 = vpop.f32.mrb[62].mxu1  ;;  %5968 = vmatpush3.bf16.msra.mxu1 %v6639_v5 }
 0x535   : > { %v5691_v54 = vpop.f32.mrb[63].mxu1  ;;  %6141 = vmatprep.subr.bf16.mxu1 %v8909_v33 }
 0x536   : > { %v8914_v46 = vadd.f32 %v5691_v54, %v5690_v38 }
 0x537   : > { %4034 = vmatmul.mubr.bf16.gmra.mrb[168].mxu1 %v8649_v35 }
 0x538   : > { %5451 = vmatprep.mubr.msk.bf16.mxu1 %vm7557_vm6, %v8362_v1 }
 0x53a   : > { %v5693_v16 = vpop.f32.mrb[64].mxu1 }
 0x53b   : > { %v5694_v15 = vpop.f32.mrb[65].mxu1 }
 0x53c   : > { %v8920_v39 = vadd.f32 %v5694_v15, %v5693_v16  ;;  %v5696_v49 = vpop.f32.mrb[66].mxu1 }
 0x53d   : > { %v5697_v34 = vpop.f32.mrb[67].mxu1 }
 0x53e   : > { %v8922_v62 = vadd.f32 %v5697_v34, %v5696_v49 }
 0x53f   : > { %4042 = vmatmul.mubr.bf16.gmra.mrb[172].mxu1 %v8334_v36 }
 0x540   : > { %9861 = vst [vmem:[#allocation50_spill] sm:$0xff] %v8922_v62  ;;  %5454 = vmatprep.mubr.msk.bf16.mxu1 %vm7557_vm6, %v8382_v61 }
 0x542   : > { %v5699_v38 = vpop.f32.mrb[68].mxu1 }
 0x543   : > { %v5700_v5 = vpop.f32.mrb[69].mxu1 }
 0x544   : > { %v8928_v54 = vadd.f32 %v5700_v5, %v5699_v38  ;;  %v5702_v32 = vpop.f32.mrb[70].mxu1 }
 0x545   : > { %v5703_v1 = vpop.f32.mrb[71].mxu1 }
 0x546   : > { %v8930_v23 = vadd.f32 %v5703_v1, %v5702_v32 }
 0x547   : > { %4050 = vmatmul.mubr.bf16.gmra.mrb[176].mxu1 %v8352_v0 }
 0x548   : > { %9862 = vst [vmem:[#allocation51_spill] sm:$0xff] %v8930_v23  ;;  %5457 = vmatprep.mubr.msk.bf16.mxu1 %vm7557_vm6, %v8402_v26 }
 0x54a   : > { %v5705_v49 = vpop.f32.mrb[72].mxu1 }
 0x54b   : > { %v5706_v16 = vpop.f32.mrb[73].mxu1 }
 0x54c   : > { %v8936_v15 = vadd.f32 %v5706_v16, %v5705_v49  ;;  %v5708_v34 = vpop.f32.mrb[74].mxu1 }
 0x54d   : > { %v5709_v61 = vpop.f32.mrb[75].mxu1 }
 0x54e   : > { %v8938_v62 = vadd.f32 %v5709_v61, %v5708_v34 }
 0x54f   : > { %4058 = vmatmul.mubr.bf16.gmra.mrb[180].mxu1 %v8372_v30 }
 0x550   : > { %9863 = vst [vmem:[#allocation56_spill] sm:$0xff] %v8938_v62  ;;  %5460 = vmatprep.mubr.msk.bf16.mxu1 %vm7557_vm6, %v8422_v14 }
 0x552   : > { %v5711_v1 = vpop.f32.mrb[76].mxu1 }
 0x553   : > { %v5712_v32 = vpop.f32.mrb[77].mxu1 }
 0x554   : > { %v8944_v38 = vadd.f32 %v5712_v32, %v5711_v1  ;;  %v5714_v5 = vpop.f32.mrb[78].mxu1 }
 0x555   : > { %v5715_v26 = vpop.f32.mrb[79].mxu1 }
 0x556   : > { %v8946_v23 = vadd.f32 %v5715_v26, %v5714_v5 }
 0x557   : > { %4066 = vmatmul.mubr.bf16.gmra.mrb[184].mxu1 %v8392_v51 }
 0x558   : > { %9864 = vst [vmem:[#allocation57_spill] sm:$0xff] %v8946_v23  ;;  %5463 = vmatprep.mubr.msk.bf16.mxu1 %vm7557_vm6, %v8442_v58 }
 0x55a   : > { %v5717_v61 = vpop.f32.mrb[80].mxu1 }
 0x55b   : > { %v5718_v49 = vpop.f32.mrb[81].mxu1 }
 0x55c   : > { %v8952_v16 = vadd.f32 %v5718_v49, %v5717_v61  ;;  %v5720_v34 = vpop.f32.mrb[82].mxu1 }
 0x55d   : > { %v5721_v14 = vpop.f32.mrb[83].mxu1 }
 0x55e   : > { %v8954_v62 = vadd.f32 %v5721_v14, %v5720_v34 }
 0x55f   : > { %4074 = vmatmul.mubr.bf16.gmra.mrb[188].mxu1 %v8412_v53 }
 0x560   : > { %9865 = vst [vmem:[#allocation58_spill] sm:$0xff] %v8954_v62  ;;  %5466 = vmatprep.mubr.msk.bf16.mxu1 %vm7557_vm6, %v8462_v25 }
 0x562   : > { %v5723_v26 = vpop.f32.mrb[84].mxu1 }
 0x563   : > { %v5724_v1 = vpop.f32.mrb[85].mxu1 }
 0x564   : > { %v8960_v32 = vadd.f32 %v5724_v1, %v5723_v26  ;;  %v5726_v5 = vpop.f32.mrb[86].mxu1 }
 0x565   : > { %v5727_v58 = vpop.f32.mrb[87].mxu1 }
 0x566   : > { %v8962_v23 = vadd.f32 %v5727_v58, %v5726_v5 }
 0x567   : > { %4082 = vmatmul.mubr.bf16.gmra.mrb[192].mxu1 %v8432_v7 }
 0x568   : > { %9866 = vst [vmem:[#allocation59_spill] sm:$0xff] %v8962_v23  ;;  %5469 = vmatprep.mubr.msk.bf16.mxu1 %vm7557_vm6, %v9855_v10 }
 0x56a   : > { %v5745_v14 = vpop.f32.mrb[88].mxu1 }
 0x56b   : > { %v5746_v61 = vpop.f32.mrb[89].mxu1 }
 0x56c   : > { %v5747_v49 = vadd.f32 %v5746_v61, %v5745_v14  ;;  %v5748_v34 = vpop.f32.mrb[90].mxu1 }
 0x56d   : > { %v5749_v62 = vpop.f32.mrb[91].mxu1 }
 0x56e   : > { %v8969_v25 = vadd.f32 %v5747_v49, %v8734_v8  ;;  %v5750_v26 = vadd.f32 %v5749_v62, %v5748_v34 }
 0x56f   : > { %4090 = vmatmul.mubr.bf16.gmra.mrb[196].mxu1 %v8452_v19 }
 0x570   : > { %v8973_v58 = vadd.f32 %v5750_v26, %v8736_v57  ;;  %5472 = vmatprep.mubr.msk.bf16.mxu1 %vm7557_vm6, %v9856_v11  ;;  %v6641_v11 = vld [vmem:[#allocation10 + $0x208] sm:$0xff]  }
 0x572   : > { %v5751_v1 = vpop.f32.mrb[92].mxu1 }
 0x573   : > { %v5752_v5 = vpop.f32.mrb[93].mxu1 }
 0x574   : > { %v5753_v10 = vadd.f32 %v5752_v5, %v5751_v1  ;;  %v5754_v23 = vpop.f32.mrb[94].mxu1 }
 0x575   : > { %v5755_v14 = vpop.f32.mrb[95].mxu1 }
 0x576   : > { %v8979_v61 = vadd.f32 %v5753_v10, %v8837_v27  ;;  %v5756_v8 = vadd.f32 %v5755_v14, %v5754_v23 }
 0x577   : > { %4098 = vmatmul.mubr.bf16.gmra.mrb[200].mxu1 %v8472_v9 }
 0x578   : > { %v8983_v62 = vadd.f32 %v5756_v8, %v8839_v55  ;;  %5475 = vmatprep.mubr.msk.bf16.mxu1 %vm7557_vm6, %v8522_v28 }
 0x57a   : > { %v5757_v57 = vpop.f32.mrb[96].mxu1 }
 0x57b   : > { %v5758_v49 = vpop.f32.mrb[97].mxu1 }
 0x57c   : > { %v5759_v34 = vadd.f32 %v5758_v49, %v5757_v57  ;;  %v5760_v26 = vpop.f32.mrb[98].mxu1 }
 0x57d   : > { %v5761_v1 = vpop.f32.mrb[99].mxu1 }
 0x57e   : > { %v8989_v5 = vadd.f32 %v5759_v34, %v8847_v20  ;;  %v5762_v27 = vadd.f32 %v5761_v1, %v5760_v26 }
 0x57f   : > { %4106 = vmatmul.mubr.bf16.gmra.mrb[204].mxu1 %v8492_v63 }
 0x580   : > { %v8993_v23 = vadd.f32 %v5762_v27, %v8849_v42  ;;  %5478 = vmatprep.mubr.msk.bf16.mxu1 %vm7557_vm6, %v9858_v59  ;;  %v9867_v42 = vld [vmem:[#allocation49_spill] sm:$0xff] }
 0x582   : > { %v5763_v55 = vpop.f32.mrb[100].mxu1 }
 0x583   : > { %v5764_v10 = vpop.f32.mrb[101].mxu1 }
 0x584   : > { %v5765_v14 = vadd.f32 %v5764_v10, %v5763_v55  ;;  %v5766_v8 = vpop.f32.mrb[102].mxu1 }
 0x585   : > { %v5767_v57 = vpop.f32.mrb[103].mxu1 }
 0x586   : > { %v8999_v49 = vadd.f32 %v5765_v14, %v8857_v43  ;;  %v5768_v20 = vadd.f32 %v5767_v57, %v5766_v8  ;;  %v9868_v14 = vld [vmem:[#allocation47_spill] sm:$0xff] }
 0x587   : > { %4114 = vmatmul.mubr.bf16.gmra.mrb[208].mxu1 %v8512_v41 }
 0x588   : > { %v9003_v34 = vadd.f32 %v5768_v20, %v8859_v60  ;;  %5481 = vmatprep.mubr.msk.bf16.mxu1 %vm7557_vm6, %v9867_v42 }
 0x58a   : > { %v5769_v26 = vpop.f32.mrb[104].mxu1 }
 0x58b   : > { %v5770_v1 = vpop.f32.mrb[105].mxu1 }
 0x58c   : > { %v5771_v27 = vadd.f32 %v5770_v1, %v5769_v26  ;;  %v5772_v59 = vpop.f32.mrb[106].mxu1 }
 0x58d   : > { %v5773_v55 = vpop.f32.mrb[107].mxu1 }
 0x58e   : > { %v9009_v10 = vadd.f32 %v5771_v27, %v8867_v24  ;;  %v5774_v43 = vadd.f32 %v5773_v55, %v5772_v59 }
 0x58f   : > { %4122 = vmatmul.mubr.bf16.gmra.mrb[212].mxu1 %v9868_v14 }
 0x590   : > { %v9013_v8 = vadd.f32 %v5774_v43, %v8869_v47  ;;  %4162 = vmatprep.mubr.bf16.mxu1 %v8616_v17  ;;  %v6642_v17 = vld [vmem:[#allocation10 + $0x210] sm:$0xff]  }
 0x592   : > { %v5775_v60 = vpop.f32.mrb[108].mxu1 }
 0x593   : > { %v5776_v57 = vpop.f32.mrb[109].mxu1 }
 0x594   : > { %v5777_v20 = vadd.f32 %v5776_v57, %v5775_v60  ;;  %v5778_v42 = vpop.f32.mrb[110].mxu1  ;;  %v6645_v57 = vld [vmem:[#allocation10 + $0x228] sm:$0xff]  }
 0x595   : > { %v5779_v28 = vpop.f32.mrb[111].mxu1 }
 0x596   : > { %v9017_v26 = vadd.f32 %v5777_v20, %v8877_v18  ;;  %v5780_v1 = vadd.f32 %v5779_v28, %v5778_v42  ;;  %v6643_v28 = vld [vmem:[#allocation10 + $0x218] sm:$0xff]  }
 0x597   : > { %5484 = vmatmul.mubr.msk.bf16.vlgmr.msra.gmra.mrb[216].mxu1 %vm7308_vm2, %v8630_v13 }
 0x598   : > { %v9023_v24 = vadd.f32 %v5780_v1, %v8879_v52  ;;  %4170 = vmatprep.mubr.bf16.mxu1 %v9860_v40  ;;  %6142 = vmatpush3.bf16.msra.mxu1 %v8909_v33  ;;  %v6644_v52 = vld [vmem:[#allocation10 + $0x220] sm:$0xff]  }
 0x599   : > { %6143 = vmatprep.subr.bf16.mxu1 %v6641_v11 }
 0x59a   : > { %v5781_v47 = vpop.f32.mrb[112].mxu1 }
 0x59b   : > { %v5782_v59 = vpop.f32.mrb[113].mxu1 }
 0x59c   : > { %v5783_v27 = vadd.f32 %v5782_v59, %v5781_v47  ;;  %v5784_v55 = vpop.f32.mrb[114].mxu1  ;;  %6144 = vmatpush3.bf16.msra.mxu1 %v6641_v11 }
 0x59d   : > { %v5785_v18 = vpop.f32.mrb[115].mxu1  ;;  %6145 = vmatprep.subr.bf16.mxu1 %v6642_v17 }
 0x59e   : > { %v9028_v42 = vadd.f32 %v5783_v27, %v8885_v56  ;;  %v5786_v13 = vadd.f32 %v5785_v18, %v5784_v55  ;;  %v6647_v27 = vld [vmem:[#allocation10 + $0x238] sm:$0xff]  }
 0x59f   : > { %5487 = vmatmul.mubr.msk.bf16.gmra.mrb[220].mxu1 %vm7308_vm2, %v8644_v12 }
 0x5a0   : > { %v9034_v40 = vadd.f32 %v5786_v13, %v8887_v2  ;;  %4178 = vmatprep.mubr.bf16.mxu1 %v8655_v31  ;;  %6146 = vmatpush3.bf16.msra.mxu1 %v6642_v17  ;;  %v6646_v2 = vld [vmem:[#allocation10 + $0x230] sm:$0xff]  }
 0x5a1   : > { %6147 = vmatprep.subr.bf16.mxu1 %v6643_v28 }
 0x5a2   : > { %v5787_v11 = vpop.f32.mrb[116].mxu1 }
 0x5a3   : > { %v5788_v33 = vpop.f32.mrb[117].mxu1 }
 0x5a4   : > { %v5789_v43 = vadd.f32 %v5788_v33, %v5787_v11  ;;  %v5790_v60 = vpop.f32.mrb[118].mxu1  ;;  %6148 = vmatpush3.bf16.msra.mxu1 %v6643_v28 }
 0x5a5   : > { %v5791_v56 = vpop.f32.mrb[119].mxu1  ;;  %6149 = vmatprep.subr.bf16.mxu1 %v6644_v52 }
 0x5a6   : > { %v9038_v20 = vadd.f32 %v5789_v43, %v8893_v3  ;;  %v5792_v12 = vadd.f32 %v5791_v56, %v5790_v60 }
 0x5a7   : > { %5490 = vmatmul.mubr.msk.bf16.gmra.mrb[224].mxu1 %vm7308_vm2, %v8678_v44 }
 0x5a8   : > { %v9044_v31 = vadd.f32 %v5792_v12, %v8895_v48  ;;  %4186 = vmatprep.mubr.bf16.mxu1 %v8649_v35  ;;  %6150 = vmatpush3.bf16.msra.mxu1 %v6644_v52 }
 0x5a9   : > { %6151 = vmatprep.subr.bf16.mxu1 %v6645_v57 }
 0x5aa   : > { %v5793_v1 = vpop.f32.mrb[120].mxu1 }
 0x5ab   : > { %v5794_v17 = vpop.f32.mrb[121].mxu1 }
 0x5ac   : > { %v5795_v47 = vadd.f32 %v5794_v17, %v5793_v1  ;;  %v5796_v59 = vpop.f32.mrb[122].mxu1  ;;  %6152 = vmatpush3.bf16.msra.mxu1 %v6645_v57  ;;  %v9869_v57 = vld [vmem:[#allocation50_spill] sm:$0xff] }
 0x5ad   : > { %v5797_v3 = vpop.f32.mrb[123].mxu1  ;;  %6153 = vmatprep.subr.bf16.mxu1 %v6646_v2 }
 0x5ae   : > { %v9048_v55 = vadd.f32 %v5795_v47, %v8901_v29  ;;  %v5798_v44 = vadd.f32 %v5797_v3, %v5796_v59  ;;  %v9870_v47 = vld [vmem:[#allocation31_spill] sm:$0xff] }
 0x5af   : > { %5493 = vmatmul.mubr.msk.bf16.gmra.mrb[228].mxu1 %vm7308_vm2, %v8680_v45  ;;  %v9871_v59 = vld [vmem:[#allocation51_spill] sm:$0xff] }
 0x5b0   : > { %v9054_v35 = vadd.f32 %v5798_v44, %v8903_v4  ;;  %4194 = vmatprep.mubr.bf16.mxu1 %v8334_v36  ;;  %6154 = vmatpush3.bf16.msra.mxu1 %v6646_v2 }
 0x5b1   : > { %6155 = vmatprep.subr.bf16.mxu1 %v6647_v27 }
 0x5b2   : > { %v5799_v48 = vpop.f32.mrb[124].mxu1 }
 0x5b3   : > { %v5800_v18 = vpop.f32.mrb[125].mxu1 }
 0x5b4   : > { %v5801_v28 = vadd.f32 %v5800_v18, %v5799_v48  ;;  %v5802_v13 = vpop.f32.mrb[126].mxu1  ;;  %6156 = vmatpush3.bf16.msra.mxu1 %v6647_v27 }
 0x5b5   : > { %v5803_v52 = vpop.f32.mrb[127].mxu1 }
 0x5b6   : > { %v9058_v29 = vadd.f32 %v5801_v28, %v8911_v50  ;;  %v5804_v11 = vadd.f32 %v5803_v52, %v5802_v13  ;;  %v9872_v28 = vld [vmem:[#allocation33_spill] sm:$0xff]  ;;  %v9873_v13 = vld [vmem:[#allocation56_spill] sm:$0xff] }
 0x5b7   : > { %5496 = vmatmul.mubr.msk.bf16.gmra.mrb[232].mxu1 %vm7308_vm2, %v8674_v6 }
 0x5b8   : > { %v9064_v45 = vadd.f32 %v5804_v11, %v8914_v46  ;;  %4202 = vmatprep.mubr.bf16.mxu1 %v8352_v0 }
 0x5ba   : > { %v5805_v36 = vpop.f32.mrb[128].mxu1 }
 0x5bb   : > { %v5806_v4 = vpop.f32.mrb[129].mxu1 }
 0x5bc   : > { %v5807_v33 = vadd.f32 %v5806_v4, %v5805_v36  ;;  %v5808_v43 = vpop.f32.mrb[130].mxu1 }
 0x5bd   : > { %v5809_v60 = vpop.f32.mrb[131].mxu1 }
 0x5be   : > { %v9068_v56 = vadd.f32 %v5807_v33, %v8920_v39  ;;  %v5810_v50 = vadd.f32 %v5809_v60, %v5808_v43  ;;  %v9874_v60 = vld [vmem:[#allocation35_spill] sm:$0xff] }
 0x5bf   : > { %5499 = vmatmul.mubr.msk.bf16.gmra.mrb[236].mxu1 %vm7308_vm2, %v8364_v21 }
 0x5c0   : > { %v9074_v6 = vadd.f32 %v5810_v50, %v9869_v57  ;;  %4210 = vmatprep.mubr.bf16.mxu1 %v8372_v30  ;;  %v9875_v50 = vld [vmem:[#allocation57_spill] sm:$0xff] }
 0x5c2   : > { %v5811_v46 = vpop.f32.mrb[132].mxu1 }
 0x5c3   : > { %v5812_v0 = vpop.f32.mrb[133].mxu1 }
 0x5c4   : > { %v5813_v12 = vadd.f32 %v5812_v0, %v5811_v46  ;;  %v5814_v2 = vpop.f32.mrb[134].mxu1 }
 0x5c5   : > { %v5815_v1 = vpop.f32.mrb[135].mxu1 }
 0x5c6   : > { %v9078_v17 = vadd.f32 %v5813_v12, %v8928_v54  ;;  %v5816_v39 = vadd.f32 %v5815_v1, %v5814_v2 }
 0x5c7   : > { %5502 = vmatmul.mubr.msk.bf16.gmra.mrb[240].mxu1 %vm7308_vm2, %v9870_v47  ;;  %v9877_v47 = vld [vmem:[#allocation58_spill] sm:$0xff] }
 0x5c8   : > { %v9084_v21 = vadd.f32 %v5816_v39, %v9871_v59  ;;  %4218 = vmatprep.mubr.bf16.mxu1 %v8392_v51  ;;  %v9876_v39 = vld [vmem:[#allocation37_spill] sm:$0xff] }
 0x5ca   : > { %v5817_v3 = vpop.f32.mrb[136].mxu1 }
 0x5cb   : > { %v5818_v30 = vpop.f32.mrb[137].mxu1 }
 0x5cc   : > { %v5819_v27 = vadd.f32 %v5818_v30, %v5817_v3  ;;  %v5820_v44 = vpop.f32.mrb[138].mxu1 }
 0x5cd   : > { %v5821_v48 = vpop.f32.mrb[139].mxu1 }
 0x5ce   : > { %v9088_v18 = vadd.f32 %v5819_v27, %v8936_v15  ;;  %v5822_v54 = vadd.f32 %v5821_v48, %v5820_v44 }
 0x5cf   : > { %5505 = vmatmul.mubr.msk.bf16.gmra.mrb[244].mxu1 %vm7308_vm2, %v9872_v28  ;;  %v9879_v28 = vld [vmem:[#allocation59_spill] sm:$0xff] }
 0x5d0   : > { %v9094_v52 = vadd.f32 %v5822_v54, %v9873_v13  ;;  %4226 = vmatprep.mubr.bf16.mxu1 %v8412_v53  ;;  %v9878_v54 = vld [vmem:[#allocation39_spill] sm:$0xff] }
 0x5d2   : > { %v5823_v11 = vpop.f32.mrb[140].mxu1 }
 0x5d3   : > { %v5824_v51 = vpop.f32.mrb[141].mxu1 }
 0x5d4   : > { %v5825_v36 = vadd.f32 %v5824_v51, %v5823_v11  ;;  %v5826_v4 = vpop.f32.mrb[142].mxu1 }
 0x5d5   : > { %v5827_v33 = vpop.f32.mrb[143].mxu1 }
 0x5d6   : > { %v9098_v43 = vadd.f32 %v5825_v36, %v8944_v38  ;;  %v5828_v15 = vadd.f32 %v5827_v33, %v5826_v4 }
 0x5d7   : > { %5508 = vmatmul.mubr.msk.bf16.gmra.mrb[248].mxu1 %vm7308_vm2, %v9874_v60 }
 0x5d8   : > { %v9104_v57 = vadd.f32 %v5828_v15, %v9875_v50  ;;  %4234 = vmatprep.mubr.bf16.mxu1 %v8432_v7  ;;  %v9880_v15 = vld [vmem:[#allocation41_spill] sm:$0xff] }
 0x5da   : > { %v5829_v46 = vpop.f32.mrb[144].mxu1 }
 0x5db   : > { %v5830_v53 = vpop.f32.mrb[145].mxu1 }
 0x5dc   : > { %v5831_v0 = vadd.f32 %v5830_v53, %v5829_v46  ;;  %v5832_v12 = vpop.f32.mrb[146].mxu1 }
 0x5dd   : > { %v5833_v2 = vpop.f32.mrb[147].mxu1 }
 0x5de   : > { %v9108_v1 = vadd.f32 %v5831_v0, %v8952_v16  ;;  %v5834_v38 = vadd.f32 %v5833_v2, %v5832_v12  ;;  %v9881_v2 = vld [vmem:[#allocation28_spill] sm:$0xff] }
 0x5df   : > { %5511 = vmatmul.mubr.msk.bf16.gmra.mrb[252].mxu1 %vm7308_vm2, %v9876_v39 }
 0x5e0   : > { %v9114_v59 = vadd.f32 %v5834_v38, %v9877_v47  ;;  %4242 = vmatprep.mubr.bf16.mxu1 %v8452_v19 }
 0x5e2   : > { %v5835_v3 = vpop.f32.mrb[148].mxu1 }
 0x5e3   : > { %v5836_v7 = vpop.f32.mrb[149].mxu1 }
 0x5e4   : > { %v5837_v30 = vadd.f32 %v5836_v7, %v5835_v3  ;;  %v5838_v27 = vpop.f32.mrb[150].mxu1 }
 0x5e5   : > { %v5839_v44 = vpop.f32.mrb[151].mxu1 }
 0x5e6   : > { %v9118_v48 = vadd.f32 %v5837_v30, %v8960_v32  ;;  %v5840_v16 = vadd.f32 %v5839_v44, %v5838_v27  ;;  %v9882_v30 = vld [vmem:[#allocation44_spill] sm:$0xff] }
 0x5e7   : > { %5514 = vmatmul.mubr.msk.bf16.gmra.mrb[0].mxu1 %vm7308_vm2, %v9878_v54 }
 0x5e8   : > { %v9124_v13 = vadd.f32 %v5840_v16, %v9879_v28  ;;  %4250 = vmatprep.mubr.bf16.mxu1 %v8472_v9 }
 0x5ea   : > { %v5857_v11 = vpop.f32.mrb[152].mxu1 }
 0x5eb   : > { %v5858_v19 = vpop.f32.mrb[153].mxu1 }
 0x5ec   : > { %v5859_v51 = vadd.f32 %v5858_v19, %v5857_v11  ;;  %v5860_v36 = vpop.f32.mrb[154].mxu1  ;;  %v9883_v11 = vld [vmem:[#allocation48_spill] sm:$0xff] }
 0x5ed   : > { %v5861_v4 = vpop.f32.mrb[155].mxu1 }
 0x5ee   : > { %v9128_v33 = vadd.f32 %v5859_v51, %v8969_v25  ;;  %v5862_v32 = vadd.f32 %v5861_v4, %v5860_v36  ;;  %v9885_v51 = vld [vmem:[#allocation26_spill] sm:$0xff] }
 0x5ef   : > { %5517 = vmatmul.mubr.msk.bf16.gmra.mrb[4].mxu1 %vm7308_vm2, %v9880_v15 }
 0x5f0   : > { %v9134_v60 = vadd.f32 %v5862_v32, %v8973_v58  ;;  %4258 = vmatprep.mubr.bf16.mxu1 %v8492_v63 }
 0x5f2   : > { %v5863_v50 = vpop.f32.mrb[156].mxu1 }
 0x5f3   : > { %v5864_v9 = vpop.f32.mrb[157].mxu1 }
 0x5f4   : > { %v5865_v46 = vadd.f32 %v5864_v9, %v5863_v50  ;;  %v5866_v53 = vpop.f32.mrb[158].mxu1 }
 0x5f5   : > { %v5867_v0 = vpop.f32.mrb[159].mxu1 }
 0x5f6   : > { %v9138_v12 = vadd.f32 %v5865_v46, %v8979_v61  ;;  %v5868_v25 = vadd.f32 %v5867_v0, %v5866_v53 }
 0x5f7   : > { %5520 = vmatmul.mubr.msk.bf16.gmra.mrb[8].mxu1 %vm7308_vm2, %v9881_v2  ;;  %v9889_v2 = vld [vmem:[#allocation52_spill] sm:$0xff] }
 0x5f8   : > { %v9144_v38 = vadd.f32 %v5868_v25, %v8983_v62  ;;  %4266 = vmatprep.mubr.bf16.mxu1 %v8512_v41 }
 0x5fa   : > { %v5869_v58 = vpop.f32.mrb[160].mxu1 }
 0x5fb   : > { %v5870_v63 = vpop.f32.mrb[161].mxu1 }
 0x5fc   : > { %v5871_v39 = vadd.f32 %v5870_v63, %v5869_v58  ;;  %v5872_v47 = vpop.f32.mrb[162].mxu1 }
 0x5fd   : > { %v5873_v3 = vpop.f32.mrb[163].mxu1 }
 0x5fe   : > { %v9148_v7 = vadd.f32 %v5871_v39, %v8989_v5  ;;  %v5874_v61 = vadd.f32 %v5873_v3, %v5872_v47 }
 0x5ff   : > { %5523 = vmatmul.mubr.msk.bf16.gmra.mrb[12].mxu1 %vm7308_vm2, %v9882_v30  ;;  %v9890_v30 = vld [vmem:[#allocation53_spill] sm:$0xff] }
 0x600   : > { %v9154_v27 = vadd.f32 %v5874_v61, %v8993_v23  ;;  %4274 = vmatprep.mubr.bf16.mxu1 %v9868_v14  ;;  %v9884_v23 = vmov 0.0|0.0   ;;  %v9886_v14 = vld [vmem:[#allocation45_spill] sm:$0xff] }
 0x601   : > { %v9887_v36 = vrot.slane %v9886_v14, 7 }
 0x602   : > { %v5875_v62 = vpop.f32.mrb[164].mxu1 }
 0x603   : > { %v5876_v41 = vpop.f32.mrb[165].mxu1  ;;  %v2838_v32 = vsel %vm624_vm3, %v9887_v36, %v9885_v51 }
 0x604   : > { %v5877_v44 = vadd.f32 %v5876_v41, %v5875_v62  ;;  %v5878_v16 = vpop.f32.mrb[166].mxu1  ;;  %v5528_v46 = vpack.c.bf16 %v9885_v51, %v2838_v32 }
 0x605   : > { %v5879_v54 = vpop.f32.mrb[167].mxu1 }
 0x606   : > { %v9158_v28 = vadd.f32 %v5877_v44, %v8999_v49  ;;  %v5880_v5 = vadd.f32 %v5879_v54, %v5878_v16 }
 0x607   : > { %5526 = vmatmul.mubr.msk.bf16.gmra.mrb[16].mxu1 %vm7308_vm2, %v9883_v11  ;;  %v9892_v11 = vld [vmem:[#allocation55_spill] sm:$0xff] }
 0x608   : > { %v9164_v19 = vadd.f32 %v5880_v5, %v9003_v34  ;;  %4282 = vmatprep.mubr.bf16.mxu1 %v9884_v23  ;;  %v9893_v23 = vld [vmem:[#allocation29_spill] sm:$0xff] }
 0x60a   : > { %v5881_v15 = vpop.f32.mrb[168].mxu1 }
 0x60b   : > { %v5882_v50 = vpop.f32.mrb[169].mxu1 }
 0x60c   : > { %v5883_v49 = vadd.f32 %v5882_v50, %v5881_v15  ;;  %v5884_v9 = vpop.f32.mrb[170].mxu1  ;;  %v9894_v50 = vld [vmem:[#allocation30_spill] sm:$0xff] }
 0x60d   : > { %v5885_v53 = vpop.f32.mrb[171].mxu1 }
 0x60e   : > { %v9174_v0 = vadd.f32 %v5883_v49, %v9009_v10  ;;  %v5886_v34 = vadd.f32 %v5885_v53, %v5884_v9  ;;  %v9895_v49 = vld [vmem:[#allocation32_spill] sm:$0xff] }
 0x60f   : > { %5529 = vmatmul.mubr.msk.bf16.gmra.mrb[20].mxu1 %vm7308_vm2, %v5528_v46 }
 0x610   : > { %v9179_v25 = vadd.f32 %v5886_v34, %v9013_v8  ;;  %6157 = vmatprep.mubr.msk.bf16.mxu1 %vm7557_vm6, %v9889_v2  ;;  %v9891_v8 = vld [vmem:[#allocation54_spill] sm:$0xff] }
 0x612   : > { %v5887_v58 = vpop.f32.mrb[172].mxu1 }
 0x613   : > { %v5888_v63 = vpop.f32.mrb[173].mxu1 }
 0x614   : > { %v5889_v39 = vadd.f32 %v5888_v63, %v5887_v58  ;;  %v5890_v47 = vpop.f32.mrb[174].mxu1  ;;  %v9896_v63 = vld [vmem:[#allocation34_spill] sm:$0xff] }
 0x615   : > { %v5891_v3 = vpop.f32.mrb[175].mxu1 }
 0x616   : > { %v9185_v61 = vadd.f32 %v5889_v39, %v9017_v26  ;;  %v5892_v10 = vadd.f32 %v5891_v3, %v5890_v47  ;;  %v9897_v39 = vld [vmem:[#allocation36_spill] sm:$0xff] }
 0x617   : > { %6158 = vmatmul.mubr.msk.bf16.vlgmr.msra.gmra.mrb[24].mxu1 %vm7557_vm6, %v9890_v30 }
 0x618   : > { %v9191_v22 = vadd.f32 %v5892_v10, %v9023_v24  ;;  %6161 = vmatprep.mubr.msk.bf16.mxu1 %vm7557_vm6, %v9891_v8 }
 0x61a   : > { %v5893_v62 = vpop.f32.mrb[176].mxu1 }
 0x61b   : > { %v5894_v41 = vpop.f32.mrb[177].mxu1 }
 0x61c   : > { %v5895_v44 = vadd.f32 %v5894_v41, %v5893_v62  ;;  %v5896_v16 = vpop.f32.mrb[178].mxu1  ;;  %v9898_v41 = vld [vmem:[#allocation38_spill] sm:$0xff] }
 0x61d   : > { %v5897_v54 = vpop.f32.mrb[179].mxu1 }
 0x61e   : > { %v9197_v26 = vadd.f32 %v5895_v44, %v9028_v42  ;;  %v5898_v5 = vadd.f32 %v5897_v54, %v5896_v16  ;;  %v9899_v44 = vld [vmem:[#allocation40_spill] sm:$0xff] }
 0x61f   : > { %6162 = vmatmul.mubr.msk.bf16.gmra.mrb[28].mxu1 %vm7557_vm6, %v9892_v11 }
 0x620   : > { %v9203_v24 = vadd.f32 %v5898_v5, %v9034_v40  ;;  %6165 = vmatprep.mubr.msk.bf16.mxu1 %vm7557_vm6, %v9893_v23 }
 0x622   : > { %v5899_v51 = vpop.f32.mrb[180].mxu1 }
 0x623   : > { %v5900_v14 = vpop.f32.mrb[181].mxu1 }
 0x624   : > { %v5901_v36 = vadd.f32 %v5900_v14, %v5899_v51  ;;  %v5902_v4 = vpop.f32.mrb[182].mxu1  ;;  %v9900_v14 = vld [vmem:[#allocation42_spill] sm:$0xff] }
 0x625   : > { %v5903_v32 = vpop.f32.mrb[183].mxu1 }
 0x626   : > { %v9209_v42 = vadd.f32 %v5901_v36, %v9038_v20  ;;  %v5904_v15 = vadd.f32 %v5903_v32, %v5902_v4  ;;  %v9901_v36 = vld [vmem:[#allocation27_spill] sm:$0xff] }
 0x627   : > { %6166 = vmatmul.mubr.msk.bf16.gmra.mrb[32].mxu1 %vm7557_vm6, %v9894_v50 }
 0x628   : > { %v9215_v40 = vadd.f32 %v5904_v15, %v9044_v31  ;;  %6169 = vmatprep.mubr.msk.bf16.mxu1 %vm7557_vm6, %v9895_v49 }
 0x62a   : > { %v5905_v9 = vpop.f32.mrb[184].mxu1 }
 0x62b   : > { %v5906_v46 = vpop.f32.mrb[185].mxu1 }
 0x62c   : > { %v5907_v53 = vadd.f32 %v5906_v46, %v5905_v9  ;;  %v5908_v34 = vpop.f32.mrb[186].mxu1  ;;  %v9902_v46 = vld [vmem:[#allocation46_spill] sm:$0xff] }
 0x62d   : > { %v5909_v2 = vpop.f32.mrb[187].mxu1 }
 0x62e   : > { %v9221_v20 = vadd.f32 %v5907_v53, %v9048_v55  ;;  %v5910_v58 = vadd.f32 %v5909_v2, %v5908_v34  ;;  %v9903_v53 = vld [vmem:[#allocation49_spill] sm:$0xff] }
 0x62f   : > { %6170 = vmatmul.mubr.msk.bf16.gmra.mrb[36].mxu1 %vm7557_vm6, %v9896_v63 }
 0x630   : > { %v9227_v31 = vadd.f32 %v5910_v58, %v9054_v35  ;;  %6173 = vmatprep.mubr.msk.bf16.mxu1 %vm7557_vm6, %v9897_v39 }
 0x632   : > { %v5911_v47 = vpop.f32.mrb[188].mxu1 }
 0x633   : > { %v5912_v3 = vpop.f32.mrb[189].mxu1 }
 0x634   : > { %v5913_v10 = vadd.f32 %v5912_v3, %v5911_v47  ;;  %v5914_v30 = vpop.f32.mrb[190].mxu1  ;;  %v9904_v3 = vld [vmem:[#allocation43_spill] sm:$0xff] }
 0x635   : > { %v5915_v8 = vpop.f32.mrb[191].mxu1 }
 0x636   : > { %v9233_v55 = vadd.f32 %v5913_v10, %v9058_v29  ;;  %v5916_v62 = vadd.f32 %v5915_v8, %v5914_v30 }
 0x637   : > { %6174 = vmatmul.mubr.msk.bf16.gmra.mrb[40].mxu1 %vm7557_vm6, %v9898_v41 }
 0x638   : > { %v9239_v35 = vadd.f32 %v5916_v62, %v9064_v45  ;;  %6177 = vmatprep.mubr.msk.bf16.mxu1 %vm7557_vm6, %v9899_v44 }
 0x63a   : > { %v5917_v16 = vpop.f32.mrb[192].mxu1 }
 0x63b   : > { %v5918_v54 = vpop.f32.mrb[193].mxu1 }
 0x63c   : > { %v5919_v5 = vadd.f32 %v5918_v54, %v5917_v16  ;;  %v5920_v11 = vpop.f32.mrb[194].mxu1 }
 0x63d   : > { %v5921_v23 = vpop.f32.mrb[195].mxu1 }
 0x63e   : > { %v9245_v29 = vadd.f32 %v5919_v5, %v9068_v56  ;;  %v5922_v51 = vadd.f32 %v5921_v23, %v5920_v11 }
 0x63f   : > { %6178 = vmatmul.mubr.msk.bf16.gmra.mrb[44].mxu1 %vm7557_vm6, %v9900_v14 }
 0x640   : > { %v9251_v45 = vadd.f32 %v5922_v51, %v9074_v6  ;;  %6181 = vmatprep.mubr.msk.bf16.mxu1 %vm7557_vm6, %v9901_v36 }
 0x642   : > { %v5923_v4 = vpop.f32.mrb[196].mxu1 }
 0x643   : > { %v5924_v32 = vpop.f32.mrb[197].mxu1 }
 0x644   : > { %v5925_v15 = vadd.f32 %v5924_v32, %v5923_v4  ;;  %v5926_v50 = vpop.f32.mrb[198].mxu1 }
 0x645   : > { %v5927_v49 = vpop.f32.mrb[199].mxu1 }
 0x646   : > { %v9257_v56 = vadd.f32 %v5925_v15, %v9078_v17  ;;  %v5928_v9 = vadd.f32 %v5927_v49, %v5926_v50 }
 0x647   : > { %6182 = vmatmul.mubr.msk.bf16.gmra.mrb[48].mxu1 %vm7557_vm6, %v9902_v46 }
 0x648   : > { %v9263_v6 = vadd.f32 %v5928_v9, %v9084_v21  ;;  %6185 = vmatprep.mubr.msk.bf16.mxu1 %vm7557_vm6, %v9903_v53 }
 0x64a   : > { %v5929_v34 = vpop.f32.mrb[200].mxu1 }
 0x64b   : > { %v5930_v2 = vpop.f32.mrb[201].mxu1 }
 0x64c   : > { %v5931_v58 = vadd.f32 %v5930_v2, %v5929_v34  ;;  %v5932_v63 = vpop.f32.mrb[202].mxu1 }
 0x64d   : > { %v5933_v39 = vpop.f32.mrb[203].mxu1 }
 0x64e   : > { %v9269_v17 = vadd.f32 %v5931_v58, %v9088_v18  ;;  %v5934_v47 = vadd.f32 %v5933_v39, %v5932_v63 }
 0x64f   : > { %6186 = vmatmul.mubr.msk.bf16.gmra.mrb[52].mxu1 %vm7557_vm6, %v9904_v3 }
 0x650   : > { %v9275_v21 = vadd.f32 %v5934_v47, %v9094_v52 }
 0x652   : > { %v5935_v10 = vpop.f32.mrb[204].mxu1 }
 0x653   : > { %v5936_v30 = vpop.f32.mrb[205].mxu1 }
 0x654   : > { %v5937_v8 = vadd.f32 %v5936_v30, %v5935_v10  ;;  %v5938_v62 = vpop.f32.mrb[206].mxu1 }
 0x655   : > { %v5939_v41 = vpop.f32.mrb[207].mxu1 }
 0x656   : > { %v9278_v44 = vadd.f32 %v5937_v8, %v9098_v43  ;;  %v5940_v16 = vadd.f32 %v5939_v41, %v5938_v62 }
 0x658   : > { %v9281_v18 = vadd.f32 %v5940_v16, %v9104_v57 }
 0x65a   : > { %v5941_v54 = vpop.f32.mrb[208].mxu1 }
 0x65b   : > { %v5942_v5 = vpop.f32.mrb[209].mxu1 }
 0x65c   : > { %v5943_v11 = vadd.f32 %v5942_v5, %v5941_v54  ;;  %v5944_v37 = vpop.f32.mrb[210].mxu1 }
 0x65d   : > { %v5945_v23 = vpop.f32.mrb[211].mxu1 }
 0x65e   : > { %v9284_v52 = vadd.f32 %v5943_v11, %v9108_v1  ;;  %v5946_v51 = vadd.f32 %v5945_v23, %v5944_v37 }
 0x660   : > { %v9287_v14 = vadd.f32 %v5946_v51, %v9114_v59 }
 0x662   : > { %v5947_v36 = vpop.f32.mrb[212].mxu1 }
 0x663   : > { %v5948_v4 = vpop.f32.mrb[213].mxu1 }
 0x664   : > { %v5949_v43 = vadd.f32 %v5948_v4, %v5947_v36  ;;  %v5950_v32 = vpop.f32.mrb[214].mxu1 }
 0x665   : > { %v5951_v15 = vpop.f32.mrb[215].mxu1 }
 0x666   : > { %v9290_v57 = vadd.f32 %v5949_v43, %v9118_v48  ;;  %v5952_v50 = vadd.f32 %v5951_v15, %v5950_v32 }
 0x668   : > { %v9293_v49 = vadd.f32 %v5952_v50, %v9124_v13 }
 0x66a   : > { %v5969_v9 = vpop.f32.mrb[216].mxu1 }
 0x66b   : > { %v5970_v46 = vpop.f32.mrb[217].mxu1 }
 0x66c   : > { %v5971_v1 = vadd.f32 %v5970_v46, %v5969_v9  ;;  %v5972_v53 = vpop.f32.mrb[218].mxu1 }
 0x66d   : > { %v5973_v34 = vpop.f32.mrb[219].mxu1 }
 0x66e   : > { %v5974_v2 = vadd.f32 %v5973_v34, %v5972_v53  ;;  %v9296_v59 = vadd.f32 %v5971_v1, %v9128_v33 }
 0x670   : > { %v9299_v58 = vadd.f32 %v5974_v2, %v9134_v60 }
 0x672   : > { %v5975_v63 = vpop.f32.mrb[220].mxu1 }
 0x673   : > { %v5976_v39 = vpop.f32.mrb[221].mxu1 }
 0x674   : > { %v5977_v48 = vadd.f32 %v5976_v39, %v5975_v63  ;;  %v5978_v47 = vpop.f32.mrb[222].mxu1 }
 0x675   : > { %v5979_v3 = vpop.f32.mrb[223].mxu1 }
 0x676   : > { %v5980_v10 = vadd.f32 %v5979_v3, %v5978_v47  ;;  %v9302_v13 = vadd.f32 %v5977_v48, %v9138_v12 }
 0x678   : > { %v9305_v30 = vadd.f32 %v5980_v10, %v9144_v38 }
 0x67a   : > { %v5981_v8 = vpop.f32.mrb[224].mxu1 }
 0x67b   : > { %v5982_v62 = vpop.f32.mrb[225].mxu1 }
 0x67c   : > { %v5983_v41 = vadd.f32 %v5982_v62, %v5981_v8  ;;  %v5984_v33 = vpop.f32.mrb[226].mxu1 }
 0x67d   : > { %v5985_v16 = vpop.f32.mrb[227].mxu1 }
 0x67e   : > { %v5986_v54 = vadd.f32 %v5985_v16, %v5984_v33  ;;  %v9308_v60 = vadd.f32 %v5983_v41, %v9148_v7 }
 0x680   : > { %v9311_v5 = vadd.f32 %v5986_v54, %v9154_v27 }
 0x682   : > { %v5987_v11 = vpop.f32.mrb[228].mxu1 }
 0x683   : > { %v5988_v37 = vpop.f32.mrb[229].mxu1 }
 0x684   : > { %v5989_v23 = vadd.f32 %v5988_v37, %v5987_v11  ;;  %v5990_v12 = vpop.f32.mrb[230].mxu1 }
 0x685   : > { %v5991_v51 = vpop.f32.mrb[231].mxu1 }
 0x686   : > { %v5992_v36 = vadd.f32 %v5991_v51, %v5990_v12  ;;  %v9314_v38 = vadd.f32 %v5989_v23, %v9158_v28 }
 0x688   : > { %v9317_v4 = vadd.f32 %v5992_v36, %v9164_v19 }
 0x68a   : > { %v5993_v43 = vpop.f32.mrb[232].mxu1 }
 0x68b   : > { %v5994_v32 = vpop.f32.mrb[233].mxu1 }
 0x68c   : > { %v5995_v15 = vadd.f32 %v5994_v32, %v5993_v43  ;;  %v5996_v7 = vpop.f32.mrb[234].mxu1 }
 0x68d   : > { %v5997_v50 = vpop.f32.mrb[235].mxu1 }
 0x68e   : > { %v5998_v9 = vadd.f32 %v5997_v50, %v5996_v7  ;;  %v9320_v27 = vadd.f32 %v5995_v15, %v9174_v0 }
 0x690   : > { %v9323_v46 = vadd.f32 %v5998_v9, %v9179_v25 }
 0x692   : > { %v5999_v1 = vpop.f32.mrb[236].mxu1 }
 0x693   : > { %v6000_v53 = vpop.f32.mrb[237].mxu1 }
 0x694   : > { %v6001_v34 = vadd.f32 %v6000_v53, %v5999_v1  ;;  %v6002_v28 = vpop.f32.mrb[238].mxu1 }
 0x695   : > { %v6003_v2 = vpop.f32.mrb[239].mxu1 }
 0x696   : > { %v6004_v63 = vadd.f32 %v6003_v2, %v6002_v28  ;;  %v9326_v19 = vadd.f32 %v6001_v34, %v9185_v61 }
 0x698   : > { %v9329_v39 = vadd.f32 %v6004_v63, %v9191_v22 }
 0x69a   : > { %v6005_v48 = vpop.f32.mrb[240].mxu1 }
 0x69b   : > { %v6006_v47 = vpop.f32.mrb[241].mxu1 }
 0x69c   : > { %v6007_v3 = vadd.f32 %v6006_v47, %v6005_v48  ;;  %v6008_v0 = vpop.f32.mrb[242].mxu1 }
 0x69d   : > { %v6009_v10 = vpop.f32.mrb[243].mxu1 }
 0x69e   : > { %v6010_v8 = vadd.f32 %v6009_v10, %v6008_v0  ;;  %v9332_v25 = vadd.f32 %v6007_v3, %v9197_v26 }
 0x6a0   : > { %v9335_v62 = vadd.f32 %v6010_v8, %v9203_v24 }
 0x6a2   : > { %v6011_v41 = vpop.f32.mrb[244].mxu1 }
 0x6a3   : > { %v6012_v33 = vpop.f32.mrb[245].mxu1 }
 0x6a4   : > { %v6013_v16 = vadd.f32 %v6012_v33, %v6011_v41  ;;  %v6014_v61 = vpop.f32.mrb[246].mxu1 }
 0x6a5   : > { %v6015_v54 = vpop.f32.mrb[247].mxu1 }
 0x6a6   : > { %v6016_v11 = vadd.f32 %v6015_v54, %v6014_v61  ;;  %v9338_v22 = vadd.f32 %v6013_v16, %v9209_v42 }
 0x6a8   : > { %v9341_v37 = vadd.f32 %v6016_v11, %v9215_v40 }
 0x6aa   : > { %v6017_v23 = vpop.f32.mrb[248].mxu1 }
 0x6ab   : > { %v6018_v12 = vpop.f32.mrb[249].mxu1 }
 0x6ac   : > { %v6019_v51 = vadd.f32 %v6018_v12, %v6017_v23  ;;  %v6020_v26 = vpop.f32.mrb[250].mxu1 }
 0x6ad   : > { %v6021_v36 = vpop.f32.mrb[251].mxu1 }
 0x6ae   : > { %v6022_v43 = vadd.f32 %v6021_v36, %v6020_v26  ;;  %v9344_v24 = vadd.f32 %v6019_v51, %v9221_v20 }
 0x6b0   : > { %v9347_v32 = vadd.f32 %v6022_v43, %v9227_v31 }
 0x6b2   : > { %v6023_v15 = vpop.f32.mrb[252].mxu1 }
 0x6b3   : > { %v6024_v7 = vpop.f32.mrb[253].mxu1 }
 0x6b4   : > { %v6025_v50 = vadd.f32 %v6024_v7, %v6023_v15  ;;  %v6026_v42 = vpop.f32.mrb[254].mxu1 }
 0x6b5   : > { %v6027_v9 = vpop.f32.mrb[255].mxu1 }
 0x6b6   : > { %v6028_v1 = vadd.f32 %v6027_v9, %v6026_v42  ;;  %v9350_v40 = vadd.f32 %v6025_v50, %v9233_v55 }
 0x6b8   : > { %v9353_v53 = vadd.f32 %v6028_v1, %v9239_v35 }
 0x6ba   : > { %v6029_v34 = vpop.f32.mrb[0].mxu1 }
 0x6bb   : > { %v6030_v28 = vpop.f32.mrb[1].mxu1 }
 0x6bc   : > { %v6031_v2 = vadd.f32 %v6030_v28, %v6029_v34  ;;  %v6032_v20 = vpop.f32.mrb[2].mxu1 }
 0x6bd   : > { %v6033_v63 = vpop.f32.mrb[3].mxu1 }
 0x6be   : > { %v6034_v48 = vadd.f32 %v6033_v63, %v6032_v20  ;;  %v9356_v31 = vadd.f32 %v6031_v2, %v9245_v29 }
 0x6c0   : > { %v9359_v47 = vadd.f32 %v6034_v48, %v9251_v45 }
 0x6c2   : > { %v6035_v3 = vpop.f32.mrb[4].mxu1 }
 0x6c3   : > { %v6036_v0 = vpop.f32.mrb[5].mxu1 }
 0x6c4   : > { %v6037_v10 = vadd.f32 %v6036_v0, %v6035_v3  ;;  %v6038_v55 = vpop.f32.mrb[6].mxu1 }
 0x6c5   : > { %v6039_v8 = vpop.f32.mrb[7].mxu1 }
 0x6c6   : > { %v6040_v41 = vadd.f32 %v6039_v8, %v6038_v55  ;;  %v9362_v35 = vadd.f32 %v6037_v10, %v9257_v56  ;;  %v9400_v8 = vld [vmem:[%s9629_s8] ss:$0 sm:$0xff] }
 0x6c8   : > { %v9365_v33 = vadd.f32 %v6040_v41, %v9263_v6 }
 0x6ca   : > { %v6041_v16 = vpop.f32.mrb[8].mxu1 }
 0x6cb   : > { %v6042_v61 = vpop.f32.mrb[9].mxu1 }
 0x6cc   : > { %v6043_v54 = vadd.f32 %v6042_v61, %v6041_v16  ;;  %v6044_v29 = vpop.f32.mrb[10].mxu1 }
 0x6cd   : > { %v6045_v11 = vpop.f32.mrb[11].mxu1 }
 0x6ce   : > { %v6046_v23 = vadd.f32 %v6045_v11, %v6044_v29  ;;  %v9368_v45 = vadd.f32 %v6043_v54, %v9269_v17 }
 0x6d0   : > { %v9371_v12 = vadd.f32 %v6046_v23, %v9275_v21 }
 0x6d2   : > { %v6047_v51 = vpop.f32.mrb[12].mxu1 }
 0x6d3   : > { %v6048_v26 = vpop.f32.mrb[13].mxu1 }
 0x6d4   : > { %v6049_v36 = vadd.f32 %v6048_v26, %v6047_v51  ;;  %v6050_v56 = vpop.f32.mrb[14].mxu1  ;;  %v6648_v51 = vld [vmem:[%s7269_s9 + $0x10] sm:$0xff] }
 0x6d5   : > { %v6051_v43 = vpop.f32.mrb[15].mxu1 }
 0x6d6   : > { %v6052_v15 = vadd.f32 %v6051_v43, %v6050_v56  ;;  %v9374_v6 = vadd.f32 %v6049_v36, %v9278_v44  ;;  %v6649_v36 = vld [vmem:[%s7269_s9] sm:$0xff] }
 0x6d8   : > { %v9377_v7 = vadd.f32 %v6052_v15, %v9281_v18 }
 0x6da   : > { %v6053_v50 = vpop.f32.mrb[16].mxu1 }
 0x6db   : > { %v6054_v42 = vpop.f32.mrb[17].mxu1 }
 0x6dc   : > { %v6055_v9 = vadd.f32 %v6054_v42, %v6053_v50  ;;  %v6056_v17 = vpop.f32.mrb[18].mxu1  ;;  %v6650_v50 = vld [vmem:[%s7269_s9 + $0x18] sm:$0xff] }
 0x6dd   : > { %v6057_v1 = vpop.f32.mrb[19].mxu1 }
 0x6de   : > { %v6058_v34 = vadd.f32 %v6057_v1, %v6056_v17  ;;  %v9380_v21 = vadd.f32 %v6055_v9, %v9284_v52  ;;  %v9394_v52 = vld [vmem:[%s9628_s7] ss:$0 sm:$0xff] }
 0x6e0   : > { %v9383_v28 = vadd.f32 %v6058_v34, %v9287_v14  ;;  %v6651_v34 = vld [vmem:[%s7269_s9 + $0x8] sm:$0xff] }
 0x6e2   : > { %v6059_v2 = vpop.f32.mrb[20].mxu1 }
 0x6e3   : > { %v6060_v20 = vpop.f32.mrb[21].mxu1 }
 0x6e4   : > { %v6061_v63 = vadd.f32 %v6060_v20, %v6059_v2  ;;  %v6062_v44 = vpop.f32.mrb[22].mxu1 }
 0x6e5   : > { %v6063_v48 = vpop.f32.mrb[23].mxu1 }
 0x6e6   : > { %v6064_v3 = vadd.f32 %v6063_v48, %v6062_v44  ;;  %v9386_v18 = vadd.f32 %v6061_v63, %v9290_v57 }
 0x6e8   : > { %v9389_v0 = vadd.f32 %v6064_v3, %v9293_v49 }
 0x6ea   : > { %v6159_v10 = vpop.f32.mrb[24].mxu1 }
 0x6eb   : > { %v4334_v14 = vadd.f32 %v6159_v10, %v9302_v13  ;;  %v4325_v55 = vpop.f32.mrb[25].mxu1 }
 0x6ec   : > { %v4326_v57 = vadd.f32 %v4325_v55, %v9296_v59  ;;  %v6160_v49 = vpop.f32.mrb[26].mxu1 }
 0x6ed   : > { %v4461_v41 = vmul.f32 %v9394_v52, %v4334_v14  ;;  %v4337_v16 = vadd.f32 %v6160_v49, %v9305_v30  ;;  %v4328_v61 = vpop.f32.mrb[27].mxu1 }
 0x6ee   : > { %v4459_v54 = vmul.f32 %v9394_v52, %v4326_v57  ;;  %v4329_v13 = vadd.f32 %v4328_v61, %v9299_v58 }
 0x6ef   : > { %v4500_v29 = vadd.f32 %v9400_v8, %v4461_v41  ;;  %v4462_v11 = vmul.f32 %v9394_v52, %v4337_v16 }
 0x6f0   : > { %v4498_v23 = vadd.f32 %v9400_v8, %v4459_v54  ;;  %v4460_v59 = vmul.f32 %v9394_v52, %v4329_v13  ;;  %v6653_v54 = vld [vmem:[%s7269_s9 + $0x20] sm:$0xff] }
 0x6f1   : > { %v4532_v26 = vadd.f32 %v6648_v51, %v4500_v29  ;;  %v4501_v30 = vadd.f32 %v9400_v8, %v4462_v11 }
 0x6f2   : > { %v4530_v56 = vadd.f32 %v6649_v36, %v4498_v23  ;;  %v4499_v43 = vadd.f32 %v9400_v8, %v4460_v59  ;;  %v6163_v15 = vpop.f32.mrb[28].mxu1  ;;  %v6654_v23 = vld [vmem:[%s7269_s9 + $0x38] sm:$0xff]  ;;  %v6655_v36 = vld [vmem:[%s7269_s9 + $0x28] sm:$0xff] }
 0x6f3   : > { %v4564_v58 = vmax.f32 %v4532_v26, 0.0  ;;  %v4533_v42 = vadd.f32 %v6650_v50, %v4501_v30  ;;  %v4350_v9 = vadd.f32 %v6163_v15, %v9314_v38  ;;  %v4341_v17 = vpop.f32.mrb[29].mxu1 }
 0x6f4   : > { %v4562_v1 = vmax.f32 %v4530_v56, 0.0  ;;  %v4531_v2 = vadd.f32 %v6651_v34, %v4499_v43  ;;  %v4342_v20 = vadd.f32 %v4341_v17, %v9308_v60  ;;  %v6164_v63 = vpop.f32.mrb[30].mxu1 }
 0x6f5   : > { %4596 = vst [vmem:[%s9421_s17 + $0x10] sm:$0xff] %v4564_v58  ;;  %v4565_v44 = vmax.f32 %v4533_v42, 0.0  ;;  %v4465_v48 = vmul.f32 %v9394_v52, %v4350_v9  ;;  %v4353_v38 = vadd.f32 %v6164_v63, %v9317_v4  ;;  %v4344_v3 = vpop.f32.mrb[31].mxu1  ;;  %v6652_v4 = vld [vmem:[%s7269_s9 + $0x30] sm:$0xff] }
 0x6f6   : > { %4594 = vst [vmem:[%s9421_s17] sm:$0xff] %v4562_v1  ;;  %v4563_v10 = vmax.f32 %v4531_v2, 0.0  ;;  %v4463_v60 = vmul.f32 %v9394_v52, %v4342_v20  ;;  %v4345_v14 = vadd.f32 %v4344_v3, %v9311_v5 }
 0x6f7   : > { %4597 = vst [vmem:[%s9421_s17 + $0x18] sm:$0xff] %v4565_v44  ;;  %v4504_v55 = vadd.f32 %v9400_v8, %v4465_v48  ;;  %v4466_v57 = vmul.f32 %v9394_v52, %v4353_v38  ;;  %v6657_v48 = vld [vmem:[%s7269_s9 + $0x40] sm:$0xff] }
 0x6f8   : > { %4595 = vst [vmem:[%s9421_s17 + $0x8] sm:$0xff] %v4563_v10  ;;  %v4502_v49 = vadd.f32 %v9400_v8, %v4463_v60  ;;  %v4464_v41 = vmul.f32 %v9394_v52, %v4345_v14  ;;  %v6658_v60 = vld [vmem:[%s7269_s9 + $0x58] sm:$0xff] }
 0x6f9   : > { %v4536_v16 = vadd.f32 %v6652_v4, %v4504_v55  ;;  %v4505_v61 = vadd.f32 %v9400_v8, %v4466_v57 }
 0x6fa   : > { %v4534_v13 = vadd.f32 %v6653_v54, %v4502_v49  ;;  %v4503_v5 = vadd.f32 %v9400_v8, %v4464_v41  ;;  %v6167_v29 = vpop.f32.mrb[32].mxu1  ;;  %v6659_v41 = vld [vmem:[%s7269_s9 + $0x48] sm:$0xff] }
 0x6fb   : > { %v4568_v11 = vmax.f32 %v4536_v16, 0.0  ;;  %v4537_v59 = vadd.f32 %v6654_v23, %v4505_v61  ;;  %v4366_v51 = vadd.f32 %v6167_v29, %v9326_v19  ;;  %v4357_v26 = vpop.f32.mrb[33].mxu1 }
 0x6fc   : > { %v4566_v30 = vmax.f32 %v4534_v13, 0.0  ;;  %v4535_v56 = vadd.f32 %v6655_v36, %v4503_v5  ;;  %v4358_v43 = vadd.f32 %v4357_v26, %v9320_v27  ;;  %v6168_v15 = vpop.f32.mrb[34].mxu1 }
 0x6fd   : > { %4600 = vst [vmem:[%s9421_s17 + $0x30] sm:$0xff] %v4568_v11  ;;  %v4569_v58 = vmax.f32 %v4537_v59, 0.0  ;;  %v4469_v50 = vmul.f32 %v9394_v52, %v4366_v51  ;;  %v4369_v42 = vadd.f32 %v6168_v15, %v9329_v39  ;;  %v4360_v9 = vpop.f32.mrb[35].mxu1  ;;  %v6656_v39 = vld [vmem:[%s7269_s9 + $0x50] sm:$0xff] }
 0x6fe   : > { %4598 = vst [vmem:[%s9421_s17 + $0x20] sm:$0xff] %v4566_v30  ;;  %v4567_v19 = vmax.f32 %v4535_v56, 0.0  ;;  %v4467_v17 = vmul.f32 %v9394_v52, %v4358_v43  ;;  %v4361_v1 = vadd.f32 %v4360_v9, %v9323_v46  ;;  %v6661_v56 = vld [vmem:[%s7269_s9 + $0x60] sm:$0xff] }
 0x6ff   : > { %4601 = vst [vmem:[%s9421_s17 + $0x38] sm:$0xff] %v4569_v58  ;;  %v4508_v27 = vadd.f32 %v9400_v8, %v4469_v50  ;;  %v4470_v34 = vmul.f32 %v9394_v52, %v4369_v42  ;;  %v6662_v50 = vld [vmem:[%s7269_s9 + $0x78] sm:$0xff] }
 0x700   : > { %4599 = vst [vmem:[%s9421_s17 + $0x28] sm:$0xff] %v4567_v19  ;;  %v4506_v2 = vadd.f32 %v9400_v8, %v4467_v17  ;;  %v4468_v20 = vmul.f32 %v9394_v52, %v4361_v1  ;;  %v6663_v1 = vld [vmem:[%s7269_s9 + $0x68] sm:$0xff] }
 0x701   : > { %v4540_v63 = vadd.f32 %v6656_v39, %v4508_v27  ;;  %v4509_v44 = vadd.f32 %v9400_v8, %v4470_v34 }
 0x702   : > { %v4538_v38 = vadd.f32 %v6657_v48, %v4506_v2  ;;  %v4507_v46 = vadd.f32 %v9400_v8, %v4468_v20  ;;  %v6171_v3 = vpop.f32.mrb[36].mxu1 }
 0x703   : > { %v4572_v10 = vmax.f32 %v4540_v63, 0.0  ;;  %v4541_v14 = vadd.f32 %v6658_v60, %v4509_v44  ;;  %v4382_v55 = vadd.f32 %v6171_v3, %v9338_v22  ;;  %v4373_v57 = vpop.f32.mrb[37].mxu1 }
 0x704   : > { %v4570_v49 = vmax.f32 %v4538_v38, 0.0  ;;  %v4539_v4 = vadd.f32 %v6659_v41, %v4507_v46  ;;  %v4374_v16 = vadd.f32 %v4373_v57, %v9332_v25  ;;  %v6172_v61 = vpop.f32.mrb[38].mxu1 }
 0x705   : > { %4604 = vst [vmem:[%s9421_s17 + $0x50] sm:$0xff] %v4572_v10  ;;  %v4573_v54 = vmax.f32 %v4541_v14, 0.0  ;;  %v4473_v13 = vmul.f32 %v9394_v52, %v4382_v55  ;;  %v4385_v5 = vadd.f32 %v6172_v61, %v9341_v37  ;;  %v4376_v29 = vpop.f32.mrb[39].mxu1  ;;  %v6660_v37 = vld [vmem:[%s7269_s9 + $0x70] sm:$0xff]  ;;  %v6665_v55 = vld [vmem:[%s7269_s9 + $0x80] sm:$0xff] }
 0x706   : > { %4602 = vst [vmem:[%s9421_s17 + $0x40] sm:$0xff] %v4570_v49  ;;  %v4571_v22 = vmax.f32 %v4539_v4, 0.0  ;;  %v4471_v11 = vmul.f32 %v9394_v52, %v4374_v16  ;;  %v4377_v23 = vadd.f32 %v4376_v29, %v9335_v62  ;;  %v6666_v4 = vld [vmem:[%s7269_s9 + $0x98] sm:$0xff] }
 0x707   : > { %4605 = vst [vmem:[%s9421_s17 + $0x58] sm:$0xff] %v4573_v54  ;;  %v4512_v25 = vadd.f32 %v9400_v8, %v4473_v13  ;;  %v4474_v59 = vmul.f32 %v9394_v52, %v4385_v5  ;;  %v6667_v5 = vld [vmem:[%s7269_s9 + $0x88] sm:$0xff] }
 0x708   : > { %4603 = vst [vmem:[%s9421_s17 + $0x48] sm:$0xff] %v4571_v22  ;;  %v4510_v51 = vadd.f32 %v9400_v8, %v4471_v11  ;;  %v4472_v26 = vmul.f32 %v9394_v52, %v4377_v23 }
 0x709   : > { %v4544_v30 = vadd.f32 %v6660_v37, %v4512_v25  ;;  %v4513_v36 = vadd.f32 %v9400_v8, %v4474_v59 }
 0x70a   : > { %v4542_v43 = vadd.f32 %v6661_v56, %v4510_v51  ;;  %v4511_v62 = vadd.f32 %v9400_v8, %v4472_v26  ;;  %v6175_v15 = vpop.f32.mrb[40].mxu1 }
 0x70b   : > { %v4576_v58 = vmax.f32 %v4544_v30, 0.0  ;;  %v4545_v42 = vadd.f32 %v6662_v50, %v4513_v36  ;;  %v4398_v9 = vadd.f32 %v6175_v15, %v9350_v40  ;;  %v4389_v19 = vpop.f32.mrb[41].mxu1  ;;  %v6669_v15 = vld [vmem:[%s7269_s9 + $0xa0] sm:$0xff] }
 0x70c   : > { %v4574_v17 = vmax.f32 %v4542_v43, 0.0  ;;  %v4543_v27 = vadd.f32 %v6663_v1, %v4511_v62  ;;  %v4390_v34 = vadd.f32 %v4389_v19, %v9344_v24  ;;  %v6176_v2 = vpop.f32.mrb[42].mxu1 }
 0x70d   : > { %4608 = vst [vmem:[%s9421_s17 + $0x70] sm:$0xff] %v4576_v58  ;;  %v4577_v20 = vmax.f32 %v4545_v42, 0.0  ;;  %v4477_v39 = vmul.f32 %v9394_v52, %v4398_v9  ;;  %v4401_v63 = vadd.f32 %v6176_v2, %v9353_v53  ;;  %v4392_v44 = vpop.f32.mrb[43].mxu1  ;;  %v6664_v53 = vld [vmem:[%s7269_s9 + $0x90] sm:$0xff]  ;;  %v6670_v9 = vld [vmem:[%s7269_s9 + $0xb8] sm:$0xff] }
 0x70e   : > { %4606 = vst [vmem:[%s9421_s17 + $0x60] sm:$0xff] %v4574_v17  ;;  %v4575_v40 = vmax.f32 %v4543_v27, 0.0  ;;  %v4475_v48 = vmul.f32 %v9394_v52, %v4390_v34  ;;  %v4393_v38 = vadd.f32 %v4392_v44, %v9347_v32  ;;  %v6671_v34 = vld [vmem:[%s7269_s9 + $0xa8] sm:$0xff] }
 0x70f   : > { %4609 = vst [vmem:[%s9421_s17 + $0x78] sm:$0xff] %v4577_v20  ;;  %v4516_v24 = vadd.f32 %v9400_v8, %v4477_v39  ;;  %v4478_v46 = vmul.f32 %v9394_v52, %v4401_v63 }
 0x710   : > { %4607 = vst [vmem:[%s9421_s17 + $0x68] sm:$0xff] %v4575_v40  ;;  %v4514_v3 = vadd.f32 %v9400_v8, %v4475_v48  ;;  %v4476_v10 = vmul.f32 %v9394_v52, %v4393_v38 }
 0x711   : > { %v4548_v60 = vadd.f32 %v6664_v53, %v4516_v24  ;;  %v4517_v14 = vadd.f32 %v9400_v8, %v4478_v46 }
 0x712   : > { %v4546_v57 = vadd.f32 %v6665_v55, %v4514_v3  ;;  %v4515_v32 = vadd.f32 %v9400_v8, %v4476_v10  ;;  %v6179_v49 = vpop.f32.mrb[44].mxu1 }
 0x713   : > { %v4580_v41 = vmax.f32 %v4548_v60, 0.0  ;;  %v4549_v16 = vadd.f32 %v6666_v4, %v4517_v14  ;;  %v4414_v61 = vadd.f32 %v6179_v49, %v9362_v35  ;;  %v4405_v54 = vpop.f32.mrb[45].mxu1  ;;  %v6673_v14 = vld [vmem:[%s7269_s9 + $0xc0] sm:$0xff]  ;;  %v6674_v49 = vld [vmem:[%s7269_s9 + $0xd8] sm:$0xff] }
 0x714   : > { %v4578_v13 = vmax.f32 %v4546_v57, 0.0  ;;  %v4547_v29 = vadd.f32 %v6667_v5, %v4515_v32  ;;  %v4406_v22 = vadd.f32 %v4405_v54, %v9356_v31  ;;  %v6180_v11 = vpop.f32.mrb[46].mxu1  ;;  %v6675_v54 = vld [vmem:[%s7269_s9 + $0xc8] sm:$0xff] }
 0x715   : > { %4612 = vst [vmem:[%s9421_s17 + $0x90] sm:$0xff] %v4580_v41  ;;  %v4581_v23 = vmax.f32 %v4549_v16, 0.0  ;;  %v4481_v25 = vmul.f32 %v9394_v52, %v4414_v61  ;;  %v4417_v59 = vadd.f32 %v6180_v11, %v9365_v33  ;;  %v4408_v51 = vpop.f32.mrb[47].mxu1  ;;  %v6668_v33 = vld [vmem:[%s7269_s9 + $0xb0] sm:$0xff] }
 0x716   : > { %4610 = vst [vmem:[%s9421_s17 + $0x80] sm:$0xff] %v4578_v13  ;;  %v4579_v35 = vmax.f32 %v4547_v29, 0.0  ;;  %v4479_v26 = vmul.f32 %v9394_v52, %v4406_v22  ;;  %v4409_v37 = vadd.f32 %v4408_v51, %v9359_v47 }
 0x717   : > { %4613 = vst [vmem:[%s9421_s17 + $0x98] sm:$0xff] %v4581_v23  ;;  %v4520_v31 = vadd.f32 %v9400_v8, %v4481_v25  ;;  %v4482_v30 = vmul.f32 %v9394_v52, %v4417_v59 }
 0x718   : > { %4611 = vst [vmem:[%s9421_s17 + $0x88] sm:$0xff] %v4579_v35  ;;  %v4518_v36 = vadd.f32 %v9400_v8, %v4479_v26  ;;  %v4480_v56 = vmul.f32 %v9394_v52, %v4409_v37  ;;  %v6676_v37 = vld [vmem:[%s7269_s9 + $0xf0] sm:$0xff] }
 0x719   : > { %v4552_v43 = vadd.f32 %v6668_v33, %v4520_v31  ;;  %v4521_v62 = vadd.f32 %v9400_v8, %v4482_v30 }
 0x71a   : > { %v4550_v58 = vadd.f32 %v6669_v15, %v4518_v36  ;;  %v4519_v47 = vadd.f32 %v9400_v8, %v4480_v56  ;;  %v6183_v50 = vpop.f32.mrb[48].mxu1  ;;  %v6677_v36 = vld [vmem:[%s7269_s9 + $0xe0] sm:$0xff] }
 0x71b   : > { %v4584_v42 = vmax.f32 %v4552_v43, 0.0  ;;  %v4553_v19 = vadd.f32 %v6670_v9, %v4521_v62  ;;  %v4430_v17 = vadd.f32 %v6183_v50, %v9374_v6  ;;  %v4421_v1 = vpop.f32.mrb[49].mxu1  ;;  %v6678_v43 = vld [vmem:[%s7269_s9 + $0xf8] sm:$0xff] }
 0x71c   : > { %v4582_v27 = vmax.f32 %v4550_v58, 0.0  ;;  %v4551_v2 = vadd.f32 %v6671_v34, %v4519_v47  ;;  %v4422_v20 = vadd.f32 %v4421_v1, %v9368_v45  ;;  %v6184_v39 = vpop.f32.mrb[50].mxu1 }
 0x71d   : > { %4616 = vst [vmem:[%s9421_s17 + $0xb0] sm:$0xff] %v4584_v42  ;;  %v4585_v63 = vmax.f32 %v4553_v19, 0.0  ;;  %v4485_v44 = vmul.f32 %v9394_v52, %v4430_v17  ;;  %v4433_v40 = vadd.f32 %v6184_v39, %v9377_v7  ;;  %v4424_v48 = vpop.f32.mrb[51].mxu1  ;;  %v6672_v7 = vld [vmem:[%s7269_s9 + $0xd0] sm:$0xff] }
 0x71e   : > { %4614 = vst [vmem:[%s9421_s17 + $0xa0] sm:$0xff] %v4582_v27  ;;  %v4583_v6 = vmax.f32 %v4551_v2, 0.0  ;;  %v4483_v38 = vmul.f32 %v9394_v52, %v4422_v20  ;;  %v4425_v24 = vadd.f32 %v4424_v48, %v9371_v12 }
 0x71f   : > { %4617 = vst [vmem:[%s9421_s17 + $0xb8] sm:$0xff] %v4585_v63  ;;  %v4524_v45 = vadd.f32 %v9400_v8, %v4485_v44  ;;  %v4486_v46 = vmul.f32 %v9394_v52, %v4433_v40 }
 0x720   : > { %4615 = vst [vmem:[%s9421_s17 + $0xa8] sm:$0xff] %v4583_v6  ;;  %v4522_v3 = vadd.f32 %v9400_v8, %v4483_v38  ;;  %v4484_v10 = vmul.f32 %v9394_v52, %v4425_v24 }
 0x721   : > { %v4556_v53 = vadd.f32 %v6672_v7, %v4524_v45  ;;  %v4525_v60 = vadd.f32 %v9400_v8, %v4486_v46 }
 0x722   : > { %v4554_v55 = vadd.f32 %v6673_v14, %v4522_v3  ;;  %v4523_v12 = vadd.f32 %v9400_v8, %v4484_v10  ;;  %v6187_v57 = vpop.f32.mrb[52].mxu1 }
 0x723   : > { %v4588_v32 = vmax.f32 %v4556_v53, 0.0  ;;  %v4557_v41 = vadd.f32 %v6674_v49, %v4525_v60  ;;  %v4446_v4 = vadd.f32 %v6187_v57, %v9386_v18  ;;  %v4437_v16 = vpop.f32.mrb[53].mxu1 }
 0x724   : > { %v4586_v61 = vmax.f32 %v4554_v55, 0.0  ;;  %v4555_v13 = vadd.f32 %v6675_v54, %v4523_v12  ;;  %v4438_v5 = vadd.f32 %v4437_v16, %v9380_v21  ;;  %v6188_v29 = vpop.f32.mrb[54].mxu1 }
 0x725   : > { %4620 = vst [vmem:[%s9421_s17 + $0xd0] sm:$0xff] %v4588_v32  ;;  %v4589_v22 = vmax.f32 %v4557_v41, 0.0  ;;  %v4489_v11 = vmul.f32 %v9394_v52, %v4446_v4  ;;  %v4449_v23 = vadd.f32 %v6188_v29, %v9389_v0  ;;  %v4440_v25 = vpop.f32.mrb[55].mxu1 }
 0x726   : > { %4618 = vst [vmem:[%s9421_s17 + $0xc0] sm:$0xff] %v4586_v61  ;;  %v4587_v18 = vmax.f32 %v4555_v13, 0.0  ;;  %v4487_v59 = vmul.f32 %v9394_v52, %v4438_v5  ;;  %v4441_v51 = vadd.f32 %v4440_v25, %v9383_v28 }
 0x727   : > { %4621 = vst [vmem:[%s9421_s17 + $0xd8] sm:$0xff] %v4589_v22  ;;  %v4528_v21 = vadd.f32 %v9400_v8, %v4489_v11  ;;  %v4490_v35 = vmul.f32 %v9394_v52, %v4449_v23 }
 0x728   : > { %4619 = vst [vmem:[%s9421_s17 + $0xc8] sm:$0xff] %v4587_v18  ;;  %v4526_v26 = vadd.f32 %v9400_v8, %v4487_v59  ;;  %v4488_v0 = vmul.f32 %v9394_v52, %v4441_v51  ;;  %v6679_v52 = vld [vmem:[%s7269_s9 + $0xe8] sm:$0xff]  ;;  %s6931_s9 = smov [#allocation11]  }
 0x729   : > { %v4560_v31 = vadd.f32 %v6676_v37, %v4528_v21  ;;  %v4529_v30 = vadd.f32 %v9400_v8, %v4490_v35  ;;  %s6830_s13 = sshll.u32 %s6931_s9, 4  ;;  %s6831_s13 = int_to_ptr.vmem [resolvable:$false] %s6830_s13 }
 0x72a   : > { %v4558_v28 = vadd.f32 %v6677_v36, %v4526_v26  ;;  %v4527_v56 = vadd.f32 %v9400_v8, %v4488_v0  ;;  %s6832_s21 = scalar_lea.vmem %s6831_s13, 8192  ;;  %p6833_p1 = scmp.lt.s32.totalorder %s9569_s24, %s6831_s13 }
 0x72b   : > { %v4592_v33 = vmax.f32 %v4560_v31, 0.0  ;;  %v4561_v62 = vadd.f32 %v6678_v43, %v4529_v30  ;;  %p6834_p13 = scmp.lt.s32.totalorder %s6832_s21, %s6826_s1 }
 0x72c   : > { %v4590_v15 = vmax.f32 %v4558_v28, 0.0  ;;  %v4559_v58 = vadd.f32 %v6679_v52, %v4527_v56 }
 0x72d   : > { %4624 = vst [vmem:[%s9421_s17 + $0xf0] sm:$0xff] %v4592_v33  ;;  %v4593_v47 = vmax.f32 %v4561_v62, 0.0  ;;  %p6835_p5 = por %p6834_p13, %p6833_p1 }
 0x72e   : > { %4622 = vst [vmem:[%s9421_s17 + $0xe0] sm:$0xff] %v4590_v15  ;;  %v4591_v8 = vmax.f32 %v4559_v58, 0.0 }
 0x72f   : > { %4625 = vst [vmem:[%s9421_s17 + $0xf8] sm:$0xff] %v4593_v47  ;;  %p6836_p9 = pnand %p6835_p5, %p6829_p8 }
 0x730   : > { %4623 = vst [vmem:[%s9421_s17 + $0xe8] sm:$0xff] %v4591_v8 }
 0x731   : > { %6839 = shalt.err (!%p6836_p9)
}
 0x732   : > { %s6840_s15 = scalar_lea.hbm %s9567_s27, 4096  ;;  %s6844_s14 = scalar_lea.hbm %s9907_s25, 8192 }
 0x733   : > { %p6841_p6 = scmp.ne.s32.totalorder %s9567_s27, %s6840_s15  ;;  %p6845_p3 = scmp.lt.u32.totalorder %s9567_s27, %s9907_s25 }
 0x734   : > { %p6846_p7 = scmp.lt.u32.totalorder %s6844_s14, %s6840_s15  ;;  %p6848_p2 = scmp.lt.u32.totalorder %s6840_s15, %s9567_s27 }
 0x735   : > { %p6842_p4 = pnand %p6841_p6, %p9908_p11 }
 0x736   : > { %p6847_p12 = por %p6846_p7, %p6845_p3 }
 0x737   : > { %p6843_p10 = pneg %p6842_p4 }
 0x738   : > { %p6849_p0 = por %p6848_p2, %p6847_p12 }
 0x73a   : > { %p6850_p8 = pnand %p6849_p0, %p6843_p10 }
 0x73c   : > { %6853 = shalt.err (!%p6850_p8)
}
 0x73d   : > { %s6932_s12 = smov 128   ;;  %s6933_s19 = smov 8  }
 0x73e   : > { %6415 = dma.vmem_to_hbm [thread:$0]  (%p9908_p11), %s9569_s24, 4096, %s9567_s27, %s4627_s22, %s6932_s12, %s6932_s12, %s6933_s19  }
 0x73f PF: > { %s9909_s17 = sld [smem:[#allocation16_spill]]  ;;  %s9910_s11 = sld [smem:[#allocation22_spill]] }
 0x740   : > { %s9911_s20 = sld [smem:[#allocation20_spill]] }
 0x745   : > { %s4658_s16 = sand.u32 1, %s9909_s17   ;;  %p9912_p1 = scmp.ne.s32.totalorder %s9910_s11, 0 }
 0x746   : > { %p9913_p13 = scmp.ge.s32.totalorder %s9911_s20, 2  ;;  %s4659_s3 = scalar_lea.sflag [#allocation4], %s4658_s16 }
 0x748   : > { %p6435_p5 = pnand %p9913_p13, %p9912_p1 }
 0x74a   : > { %6891 = dma.done.wait (!%p6435_p5), %s4659_s3, 4096  }
 0x74b   : > { %6893 = vsyncadd (!%p6435_p5), %s4659_s3, 4294963200  ;;  %s29_s14 = sadd.s32 1, %s9911_s20   ;;  %s9914_s1 = sld [smem:[#allocation17_spill]] }
 0x74c   : > { %p26_p9 = scmp.ge.s32.totalorder %s29_s14, 4   ;;  %s9915_s11 = sld [smem:[#allocation24_spill]] }
 0x74d   : > { %s9916_s12 = sld [smem:[#allocation19_spill]]  ;;  %s9917_s13 = sld [smem:[#allocation23_spill]] }
 0x74e   : > { %s9918_s30 = smov %s6900_s10  ;;  %28 = sbr.rel (!%p26_p9) target bundleno = 13 (0xd), region = 133 }
 0x751   : > { %s9919_s10 = smov %s9914_s1 }
 0x755   :  { %4664 = vsyncpa [#allocation3], 1 }
 0x756   :  { %4666 = vsyncpa [#allocation3 + $0x1], 1 }
 0x757   :  { %4667 = vsyncpa [#allocation6], 1 }
 0x758   :  { %4669 = vsyncpa [#allocation6 + $0x1], 1 }
 0x759   :  { %4670 = vsyncpa [#allocation9], 1 }
 0x75a   :  { %4671 = vsyncpa [#allocation4], 1 }
 0x75b   :  { %4673 = vsyncpa [#allocation4 + $0x1], 1 }

</bundles_post_ra>
